<compile_context>
chip_gen: v7x
topology: tpu7x:2x2x1
jax: 0.10.0
libtpu: 0.0.40
codegen_flags: <defaults>
</compile_context>

<pallas_src>
import jax
import jax.numpy as jnp
import numpy as np
from jax.experimental import pallas as pl
from jax.experimental.pallas import tpu as pltpu

NUM_CLASSES = 15  # the reference module hard-codes 15 output units


# ---------------------------------------------------------------------------
# Helper: pick how many images share one conv grid step.
# ---------------------------------------------------------------------------
def _pick_group(n, per_img_bytes, budget_bytes=6 * 1024 * 1024):
    """Largest divisor of n whose per-step block stays under `budget_bytes`
    (double-buffer headroom vs the 32 MiB v7x scoped-VMEM default), preferring
    choices that leave >= 2 grid steps so the 'parallel' axis feeds both
    TensorCores on v7x and the pipeline has something to overlap."""
    cap = max(1, budget_bytes // max(per_img_bytes, 1))
    best, best_multi = 1, None
    for d in range(1, n + 1):
        if n % d == 0 and d <= cap:
            best = d
            if n // d >= 2:
                best_multi = d
    return best_multi if best_multi is not None else best


# ---------------------------------------------------------------------------
# Kernel 1: fused 3x3 conv (pad=1, stride=1) + bias + ReLU + 2x2 max-pool via
# im2col matmuls -- one wide matmul per 2x2 pool-window position, Nb images
# per grid step, max-accumulated into an f32 VMEM scratch.
# ---------------------------------------------------------------------------
def _make_conv_pool_kernel(nb):
    def kernel(p_ref, w_ref, b_ref, o_ref, acc_ref):
        # p_ref: (nb, 4, Kp, M) bf16 im2col slabs (slab = pool-window position)
        # w_ref: (Cout, Kp) bf16   b_ref: (Cout, 1) f32
        # o_ref: (nb, Cout, M)     acc_ref: (Cout, M) f32 scratch
        w = w_ref[...]
        b = b_ref[...]
        for img in range(nb):
            acc_ref[...] = jnp.dot(w, p_ref[img, 0],
                                   preferred_element_type=jnp.float32)
            for par in range(1, 4):
                acc_ref[...] = jnp.maximum(
                    acc_ref[...],
                    jnp.dot(w, p_ref[img, par],
                            preferred_element_type=jnp.float32))
            # per-channel bias + ReLU commute with the max-pool done above
            o_ref[img] = jnp.maximum(acc_ref[...] + b, 0.0).astype(o_ref.dtype)
    return kernel


def conv3x3_relu_pool(x, wt, bt, out_dtype=jnp.bfloat16):
    """x: (N, Cin, H, W); wt: (Cout, Kp) bf16, K = 9*Cin ordered (ky,kx,cin),
    zero-padded to Kp; bt: (Cout, 1) f32.
    Returns pooled activations channel-major: (N, Cout, (H//2)*(W//2))."""
    N, Cin, H, W = x.shape
    Cout, Kp = wt.shape
    K = 9 * Cin
    H2, W2 = H // 2, W // 2
    M = H2 * W2

    xb = x.astype(jnp.bfloat16)
    xp = jnp.pad(xb, ((0, 0), (0, 0), (1, 1), (1, 1)))  # spatial pad = 1

    # im2col with the 2x2-pool decomposition: slab (dy,dx) holds, for every
    # pooled position (i,u), the 3x3xCin patch of the conv output at
    # (2i+dy, 2u+dx).  K index = (ky*3+kx)*Cin + c.  K->Kp zero padding is a
    # zero tap folded into the same concatenate (no extra full-tensor copy).
    slabs = []
    for dy in (0, 1):
        for dx in (0, 1):
            taps = [
                xp[:, :, dy + ky:dy + ky + H:2, dx + kx:dx + kx + W:2]
                .reshape(N, Cin, M)
                for ky in range(3) for kx in range(3)
            ]
            if Kp != K:
                taps.append(jnp.zeros((N, Kp - K, M), jnp.bfloat16))
            slabs.append(jnp.concatenate(taps, axis=1))      # (N, Kp, M)
    patches = jnp.stack(slabs, axis=1)                        # (N, 4, Kp, M)

    per_img = 4 * Kp * M * 2 + Cout * M * 2                   # bf16 bytes/img
    nb = _pick_group(N, per_img)
    grid = (N // nb,)

    return pl.pallas_call(
        _make_conv_pool_kernel(nb),
        out_shape=jax.ShapeDtypeStruct((N, Cout, M), out_dtype),
        grid=grid,
        in_specs=[
            pl.BlockSpec((nb, 4, Kp, M), lambda g: (g, 0, 0, 0)),
            pl.BlockSpec((Cout, Kp), lambda g: (0, 0)),
            pl.BlockSpec((Cout, 1), lambda g: (0, 0)),
        ],
        out_specs=pl.BlockSpec((nb, Cout, M), lambda g: (g, 0, 0)),
        scratch_shapes=[pltpu.VMEM((Cout, M), jnp.float32)],
        compiler_params=pltpu.CompilerParams(
            dimension_semantics=("parallel",)),   # batch groups are independent
    )(patches, wt, bt)


# ---------------------------------------------------------------------------
# Kernel 2: fused FC stack  out = relu(x @ W1 + b1) @ W2 + b2
# K grid axis with f32 VMEM accumulator; x / W1 stream in bf16.
# ---------------------------------------------------------------------------
def fc_kernel(x_ref, w1_ref, b1_ref, w2_ref, b2_ref, o_ref, acc_ref):
    k = pl.program_id(0)

    @pl.when(k == 0)
    def _():
        acc_ref[...] = jnp.zeros_like(acc_ref)

    acc_ref[...] += jnp.dot(x_ref[...], w1_ref[...],
                            preferred_element_type=jnp.float32)

    @pl.when(k == pl.num_programs(0) - 1)
    def _():
        h = jnp.maximum(acc_ref[...] + b1_ref[...], 0.0)
        out = jnp.dot(h, w2_ref[...], preferred_element_type=jnp.float32)
        o_ref[...] = (out + b2_ref[...]).astype(o_ref.dtype)


def fc_forward(f, w1, b1, w2, b2):
    """f: (N, K) bf16; w1: (K, H1) bf16; b1: (1, H1); w2: (H1, C); b2: (1, C)."""
    N, K = f.shape
    H1 = w1.shape[1]
    C = w2.shape[1]
    tk = 4096 if (K % 4096 == 0) else K        # K-tiles overlap weight DMA/MXU
    return pl.pallas_call(
        fc_kernel,
        out_shape=jax.ShapeDtypeStruct((N, C), jnp.float32),
        grid=(K // tk,),
        in_specs=[
            pl.BlockSpec((N, tk), lambda k: (0, k)),
            pl.BlockSpec((tk, H1), lambda k: (k, 0)),
            pl.BlockSpec((1, H1), lambda k: (0, 0)),
            pl.BlockSpec((H1, C), lambda k: (0, 0)),
            pl.BlockSpec((1, C), lambda k: (0, 0)),
        ],
        out_specs=pl.BlockSpec((N, C), lambda k: (0, 0)),
        scratch_shapes=[pltpu.VMEM((N, H1), jnp.float32)],
        compiler_params=pltpu.CompilerParams(
            dimension_semantics=("arbitrary",)),   # K is a reduction axis
    )(f, w1, b1, w2, b2)


# ---------------------------------------------------------------------------
# One-time (outside jit) parameter re-layout / dtype conversion.
# ---------------------------------------------------------------------------
def prepare_params(w1, b1, w2, b2, fw1, fb1, fw2, fb2):
    def conv_weight(w):  # (3,3,Cin,Cout) HWIO -> (Cout, Kp) bf16, (ky,kx,cin)
        cout = w.shape[-1]
        k = w.shape[0] * w.shape[1] * w.shape[2]
        kp = ((k + 7) // 8) * 8
        wt = jnp.transpose(w, (3, 0, 1, 2)).reshape(cout, k)
        if kp != k:
            wt = jnp.pad(wt, ((0, 0), (0, kp - k)))
        return wt.astype(jnp.bfloat16)

    return (conv_weight(w1), b1.reshape(-1, 1).astype(jnp.float32),
            conv_weight(w2), b2.reshape(-1, 1).astype(jnp.float32),
            fw1.astype(jnp.bfloat16), fb1.reshape(1, -1).astype(jnp.float32),
            fw2.astype(jnp.float32), fb2.reshape(1, -1).astype(jnp.float32))


# ---------------------------------------------------------------------------
# Full forward pass (Pallas kernels + free reshapes, all channel-major)
# ---------------------------------------------------------------------------
@jax.jit
def symbol_classifier_forward(x_nchw, cw1, cb1, cw2, cb2, fw1, fb1, fw2, fb2):
    N, _, H, W = x_nchw.shape
    # conv block 1: (N,3,64,64) -> (N,32,32*32) bf16, channel-major
    y = conv3x3_relu_pool(x_nchw, cw1, cb1)
    y = y.reshape(N, cw1.shape[0], H // 2, W // 2)            # free reshape
    # conv block 2: -> (N,64,16*16) bf16; already in torch x.view(N,-1) order
    y = conv3x3_relu_pool(y, cw2, cb2)
    f = y.reshape(N, -1)                                       # (N, 16384), free
    return fc_forward(f, fw1, fb1, fw2, fb2)                   # (N, 15) f32


# ---------------------------------------------------------------------------
# Pure-JAX reference for the correctness check (f32, HIGHEST precision)
# ---------------------------------------------------------------------------
def reference_forward(x_nchw, w1, b1, w2, b2, fw1, fb1, fw2, fb2):
    hi = jax.lax.Precision.HIGHEST
    x = jnp.transpose(x_nchw, (0, 2, 3, 1)).astype(jnp.float32)

    def conv_block(y, w, b):
        y = jax.lax.conv_general_dilated(
            y, w, window_strides=(1, 1), padding="SAME",
            dimension_numbers=("NHWC", "HWIO", "NHWC"), precision=hi)
        y = jax.nn.relu(y + b)
        return jax.lax.reduce_window(y, -jnp.inf, jax.lax.max,
                                     (1, 2, 2, 1), (1, 2, 2, 1), "VALID")

    y = conv_block(x, w1, b1)
    y = conv_block(y, w2, b2)
    f = jnp.transpose(y, (0, 3, 1, 2)).reshape(y.shape[0], -1)
    h = jax.nn.relu(jnp.dot(f, fw1, precision=hi) + fb1)
    return jnp.dot(h, fw2, precision=hi) + fb2


# ---------------------------------------------------------------------------
if __name__ == "__main__":
    key = jax.random.PRNGKey(0)
    ks = jax.random.split(key, 9)

    N = 2
    # the FC layer (64*16*16 inputs) implies 64x64 spatial inputs with 3 channels
    x = jax.random.normal(ks[0], (N, 3, 64, 64), jnp.float32)

    # deterministic synthetic parameters (He-style scaling, no checkpoint load)
    w1 = jax.random.normal(ks[1], (3, 3, 3, 32), jnp.float32) * (2.0 / 27) ** 0.5
    b1 = jax.random.normal(ks[2], (32,), jnp.float32) * 0.01
    w2 = jax.random.normal(ks[3], (3, 3, 32, 64), jnp.float32) * (2.0 / 288) ** 0.5
    b2 = jax.random.normal(ks[4], (64,), jnp.float32) * 0.01
    fw1 = jax.random.normal(ks[5], (64 * 16 * 16, 128), jnp.float32) * (2.0 / 16384) ** 0.5
    fb1 = jax.random.normal(ks[6], (128,), jnp.float32) * 0.01
    fw2 = jax.random.normal(ks[7], (128, NUM_CLASSES), jnp.float32) * (2.0 / 128) ** 0.5
    fb2 = jax.random.normal(ks[8], (NUM_CLASSES,), jnp.float32) * 0.01

    # one-time layout/dtype prep (outside jit; fc1 stored in bf16 once)
    params = prepare_params(w1, b1, w2, b2, fw1, fb1, fw2, fb2)

    out = jax.block_until_ready(symbol_classifier_forward(x, *params))
    assert out.shape == (N, NUM_CLASSES)

    ref = jax.block_until_ready(
        reference_forward(x, w1, b1, w2, b2, fw1, fb1, fw2, fb2))
    # bf16 streaming of every dominant tensor -> slightly looser tolerance
    np.testing.assert_allclose(np.asarray(out), np.asarray(ref),
                               rtol=1e-1, atol=1e-1)

    print("KERNEL_OK")
</pallas_src>

<mosaic_0001>
module attributes {stable_mosaic.version = 11 : i64} {
  func.func @kernel(%arg0: i32, %arg1: memref<1x4x32x1024xbf16, #tpu.memory_space<vmem>>, %arg2: memref<32x32xbf16, #tpu.memory_space<vmem>>, %arg3: memref<32x1xf32, #tpu.memory_space<vmem>>, %arg4: memref<1x32x1024xbf16, #tpu.memory_space<vmem>>, %arg5: memref<32x1024xf32, #tpu.memory_space<vmem>>) attributes {dimension_semantics = [#tpu.dimension_semantics<parallel>], iteration_bounds = array<i64: 2>, scalar_prefetch = 0 : i64, scratch_operands = 1 : i64, tpu.core_type = #tpu.core_type<tc>, window_params = [{transform_indices = @transform_0, window_bounds = array<i64: 1, 4, 32, 1024>}, {pipeline_mode = #tpu.pipeline_mode<synchronous>, transform_indices = @transform_1, window_bounds = array<i64: 32, 32>}, {pipeline_mode = #tpu.pipeline_mode<synchronous>, transform_indices = @transform_2, window_bounds = array<i64: 32, 1>}, {transform_indices = @transform_3, window_bounds = array<i64: 1, 32, 1024>}]} {
    %c0 = arith.constant 0 : index
    %c0_0 = arith.constant 0 : index
    %0 = vector.load %arg2[%c0, %c0_0] : memref<32x32xbf16, #tpu.memory_space<vmem>>, vector<32x32xbf16>
    %c0_1 = arith.constant 0 : index
    %c0_2 = arith.constant 0 : index
    %1 = vector.load %arg3[%c0_1, %c0_2] : memref<32x1xf32, #tpu.memory_space<vmem>>, vector<32x1xf32>
    %c0_3 = arith.constant 0 : index
    %c0_4 = arith.constant 0 : index
    %c0_5 = arith.constant 0 : index
    %c0_6 = arith.constant 0 : index
    %2 = vector.load %arg1[%c0_3, %c0_4, %c0_5, %c0_6] : memref<1x4x32x1024xbf16, #tpu.memory_space<vmem>>, vector<1x1x32x1024xbf16>
    %3 = vector.shape_cast %2 : vector<1x1x32x1024xbf16> to vector<32x1024xbf16>
    %cst = arith.constant dense<0.000000e+00> : vector<32x1024xf32>
    %4 = tpu.matmul %0, %3, %cst {dimension_numbers = #tpu.dot_dimension_numbers<[1], [0], [0], [1], [0, 0, 1, 1], [], []>} : vector<32x32xbf16>, vector<32x1024xbf16>, vector<32x1024xf32> -> vector<32x1024xf32>
    %c0_7 = arith.constant 0 : index
    %c0_8 = arith.constant 0 : index
    %5 = vector.load %arg5[%c0_7, %c0_8] : memref<32x1024xf32, #tpu.memory_space<vmem>>, vector<32x1024xf32>
    tpu.vector_store %arg5[%c0_7, %c0_8], %4 {strides = array<i32>} : memref<32x1024xf32, #tpu.memory_space<vmem>>, vector<32x1024xf32>,
    %c0_9 = arith.constant 0 : index
    %c0_10 = arith.constant 0 : index
    %6 = vector.load %arg5[%c0_9, %c0_10] : memref<32x1024xf32, #tpu.memory_space<vmem>>, vector<32x1024xf32>
    %c0_11 = arith.constant 0 : index
    %c1 = arith.constant 1 : index
    %c0_12 = arith.constant 0 : index
    %c0_13 = arith.constant 0 : index
    %7 = vector.load %arg1[%c0_11, %c1, %c0_12, %c0_13] : memref<1x4x32x1024xbf16, #tpu.memory_space<vmem>>, vector<1x1x32x1024xbf16>
    %8 = vector.shape_cast %7 : vector<1x1x32x1024xbf16> to vector<32x1024xbf16>
    %cst_14 = arith.constant dense<0.000000e+00> : vector<32x1024xf32>
    %9 = tpu.matmul %0, %8, %cst_14 {dimension_numbers = #tpu.dot_dimension_numbers<[1], [0], [0], [1], [0, 0, 1, 1], [], []>} : vector<32x32xbf16>, vector<32x1024xbf16>, vector<32x1024xf32> -> vector<32x1024xf32>
    %10 = arith.maximumf %6, %9 : vector<32x1024xf32>
    %c0_15 = arith.constant 0 : index
    %c0_16 = arith.constant 0 : index
    %11 = vector.load %arg5[%c0_15, %c0_16] : memref<32x1024xf32, #tpu.memory_space<vmem>>, vector<32x1024xf32>
    tpu.vector_store %arg5[%c0_15, %c0_16], %10 {strides = array<i32>} : memref<32x1024xf32, #tpu.memory_space<vmem>>, vector<32x1024xf32>,
    %c0_17 = arith.constant 0 : index
    %c0_18 = arith.constant 0 : index
    %12 = vector.load %arg5[%c0_17, %c0_18] : memref<32x1024xf32, #tpu.memory_space<vmem>>, vector<32x1024xf32>
    %c0_19 = arith.constant 0 : index
    %c2 = arith.constant 2 : index
    %c0_20 = arith.constant 0 : index
    %c0_21 = arith.constant 0 : index
    %13 = vector.load %arg1[%c0_19, %c2, %c0_20, %c0_21] : memref<1x4x32x1024xbf16, #tpu.memory_space<vmem>>, vector<1x1x32x1024xbf16>
    %14 = vector.shape_cast %13 : vector<1x1x32x1024xbf16> to vector<32x1024xbf16>
    %cst_22 = arith.constant dense<0.000000e+00> : vector<32x1024xf32>
    %15 = tpu.matmul %0, %14, %cst_22 {dimension_numbers = #tpu.dot_dimension_numbers<[1], [0], [0], [1], [0, 0, 1, 1], [], []>} : vector<32x32xbf16>, vector<32x1024xbf16>, vector<32x1024xf32> -> vector<32x1024xf32>
    %16 = arith.maximumf %12, %15 : vector<32x1024xf32>
    %c0_23 = arith.constant 0 : index
    %c0_24 = arith.constant 0 : index
    %17 = vector.load %arg5[%c0_23, %c0_24] : memref<32x1024xf32, #tpu.memory_space<vmem>>, vector<32x1024xf32>
    tpu.vector_store %arg5[%c0_23, %c0_24], %16 {strides = array<i32>} : memref<32x1024xf32, #tpu.memory_space<vmem>>, vector<32x1024xf32>,
    %c0_25 = arith.constant 0 : index
    %c0_26 = arith.constant 0 : index
    %18 = vector.load %arg5[%c0_25, %c0_26] : memref<32x1024xf32, #tpu.memory_space<vmem>>, vector<32x1024xf32>
    %c0_27 = arith.constant 0 : index
    %c3 = arith.constant 3 : index
    %c0_28 = arith.constant 0 : index
    %c0_29 = arith.constant 0 : index
    %19 = vector.load %arg1[%c0_27, %c3, %c0_28, %c0_29] : memref<1x4x32x1024xbf16, #tpu.memory_space<vmem>>, vector<1x1x32x1024xbf16>
    %20 = vector.shape_cast %19 : vector<1x1x32x1024xbf16> to vector<32x1024xbf16>
    %cst_30 = arith.constant dense<0.000000e+00> : vector<32x1024xf32>
    %21 = tpu.matmul %0, %20, %cst_30 {dimension_numbers = #tpu.dot_dimension_numbers<[1], [0], [0], [1], [0, 0, 1, 1], [], []>} : vector<32x32xbf16>, vector<32x1024xbf16>, vector<32x1024xf32> -> vector<32x1024xf32>
    %22 = arith.maximumf %18, %21 : vector<32x1024xf32>
    %c0_31 = arith.constant 0 : index
    %c0_32 = arith.constant 0 : index
    %23 = vector.load %arg5[%c0_31, %c0_32] : memref<32x1024xf32, #tpu.memory_space<vmem>>, vector<32x1024xf32>
    tpu.vector_store %arg5[%c0_31, %c0_32], %22 {strides = array<i32>} : memref<32x1024xf32, #tpu.memory_space<vmem>>, vector<32x1024xf32>,
    %c0_33 = arith.constant 0 : index
    %c0_34 = arith.constant 0 : index
    %24 = vector.load %arg5[%c0_33, %c0_34] : memref<32x1024xf32, #tpu.memory_space<vmem>>, vector<32x1024xf32>
    %25 = vector.broadcast %1 : vector<32x1xf32> to vector<32x1024xf32>
    %26 = arith.addf %24, %25 : vector<32x1024xf32>
    %cst_35 = arith.constant 0.000000e+00 : f32
    %27 = vector.broadcast %cst_35 : f32 to vector<32x1024xf32>
    %28 = arith.maximumf %26, %27 : vector<32x1024xf32>
    %29 = arith.truncf %28 : vector<32x1024xf32> to vector<32x1024xbf16>
    %c0_36 = arith.constant 0 : index
    %c0_37 = arith.constant 0 : index
    %c0_38 = arith.constant 0 : index
    %30 = vector.load %arg4[%c0_36, %c0_37, %c0_38] : memref<1x32x1024xbf16, #tpu.memory_space<vmem>>, vector<1x32x1024xbf16>
    %31 = vector.shape_cast %30 : vector<1x32x1024xbf16> to vector<32x1024xbf16>
    %32 = vector.shape_cast %29 : vector<32x1024xbf16> to vector<1x32x1024xbf16>
    tpu.vector_store %arg4[%c0_36, %c0_37, %c0_38], %32 {strides = array<i32>} : memref<1x32x1024xbf16, #tpu.memory_space<vmem>>, vector<1x32x1024xbf16>,
    return
  }
  func.func @transform_0(%arg0: i32) -> (i32, i32, i32, i32) {
    %c0_i32 = arith.constant 0 : i32
    %c0_i32_0 = arith.constant 0 : i32
    %c0_i32_1 = arith.constant 0 : i32
    %c0_i32_2 = arith.constant 0 : i32
    return %arg0, %c0_i32, %c0_i32_0, %c0_i32_1 : i32, i32, i32, i32
  }
  func.func @transform_1(%arg0: i32) -> (i32, i32) {
    %c0_i32 = arith.constant 0 : i32
    %c0_i32_0 = arith.constant 0 : i32
    %c0_i32_1 = arith.constant 0 : i32
    return %c0_i32, %c0_i32_0 : i32, i32
  }
  func.func @transform_2(%arg0: i32) -> (i32, i32) {
    %c0_i32 = arith.constant 0 : i32
    %c0_i32_0 = arith.constant 0 : i32
    %c0_i32_1 = arith.constant 0 : i32
    return %c0_i32, %c0_i32_0 : i32, i32
  }
  func.func @transform_3(%arg0: i32) -> (i32, i32, i32) {
    %c0_i32 = arith.constant 0 : i32
    %c0_i32_0 = arith.constant 0 : i32
    %c0_i32_1 = arith.constant 0 : i32
    return %arg0, %c0_i32, %c0_i32_0 : i32, i32, i32
  }
}

module attributes {stable_mosaic.version = 11 : i64} {
  func.func @kernel(%arg0: i32, %arg1: memref<1x4x288x256xbf16, #tpu.memory_space<vmem>>, %arg2: memref<64x288xbf16, #tpu.memory_space<vmem>>, %arg3: memref<64x1xf32, #tpu.memory_space<vmem>>, %arg4: memref<1x64x256xbf16, #tpu.memory_space<vmem>>, %arg5: memref<64x256xf32, #tpu.memory_space<vmem>>) attributes {dimension_semantics = [#tpu.dimension_semantics<parallel>], iteration_bounds = array<i64: 2>, scalar_prefetch = 0 : i64, scratch_operands = 1 : i64, tpu.core_type = #tpu.core_type<tc>, window_params = [{transform_indices = @transform_0, window_bounds = array<i64: 1, 4, 288, 256>}, {pipeline_mode = #tpu.pipeline_mode<synchronous>, transform_indices = @transform_1, window_bounds = array<i64: 64, 288>}, {pipeline_mode = #tpu.pipeline_mode<synchronous>, transform_indices = @transform_2, window_bounds = array<i64: 64, 1>}, {transform_indices = @transform_3, window_bounds = array<i64: 1, 64, 256>}]} {
    %c0 = arith.constant 0 : index
    %c0_0 = arith.constant 0 : index
    %0 = vector.load %arg2[%c0, %c0_0] : memref<64x288xbf16, #tpu.memory_space<vmem>>, vector<64x288xbf16>
    %c0_1 = arith.constant 0 : index
    %c0_2 = arith.constant 0 : index
    %1 = vector.load %arg3[%c0_1, %c0_2] : memref<64x1xf32, #tpu.memory_space<vmem>>, vector<64x1xf32>
    %c0_3 = arith.constant 0 : index
    %c0_4 = arith.constant 0 : index
    %c0_5 = arith.constant 0 : index
    %c0_6 = arith.constant 0 : index
    %2 = vector.load %arg1[%c0_3, %c0_4, %c0_5, %c0_6] : memref<1x4x288x256xbf16, #tpu.memory_space<vmem>>, vector<1x1x288x256xbf16>
    %3 = vector.shape_cast %2 : vector<1x1x288x256xbf16> to vector<288x256xbf16>
    %cst = arith.constant dense<0.000000e+00> : vector<64x256xf32>
    %4 = tpu.matmul %0, %3, %cst {dimension_numbers = #tpu.dot_dimension_numbers<[1], [0], [0], [1], [0, 0, 1, 1], [], []>} : vector<64x288xbf16>, vector<288x256xbf16>, vector<64x256xf32> -> vector<64x256xf32>
    %c0_7 = arith.constant 0 : index
    %c0_8 = arith.constant 0 : index
    %5 = vector.load %arg5[%c0_7, %c0_8] : memref<64x256xf32, #tpu.memory_space<vmem>>, vector<64x256xf32>
    tpu.vector_store %arg5[%c0_7, %c0_8], %4 {strides = array<i32>} : memref<64x256xf32, #tpu.memory_space<vmem>>, vector<64x256xf32>,
    %c0_9 = arith.constant 0 : index
    %c0_10 = arith.constant 0 : index
    %6 = vector.load %arg5[%c0_9, %c0_10] : memref<64x256xf32, #tpu.memory_space<vmem>>, vector<64x256xf32>
    %c0_11 = arith.constant 0 : index
    %c1 = arith.constant 1 : index
    %c0_12 = arith.constant 0 : index
    %c0_13 = arith.constant 0 : index
    %7 = vector.load %arg1[%c0_11, %c1, %c0_12, %c0_13] : memref<1x4x288x256xbf16, #tpu.memory_space<vmem>>, vector<1x1x288x256xbf16>
    %8 = vector.shape_cast %7 : vector<1x1x288x256xbf16> to vector<288x256xbf16>
    %cst_14 = arith.constant dense<0.000000e+00> : vector<64x256xf32>
    %9 = tpu.matmul %0, %8, %cst_14 {dimension_numbers = #tpu.dot_dimension_numbers<[1], [0], [0], [1], [0, 0, 1, 1], [], []>} : vector<64x288xbf16>, vector<288x256xbf16>, vector<64x256xf32> -> vector<64x256xf32>
    %10 = arith.maximumf %6, %9 : vector<64x256xf32>
    %c0_15 = arith.constant 0 : index
    %c0_16 = arith.constant 0 : index
    %11 = vector.load %arg5[%c0_15, %c0_16] : memref<64x256xf32, #tpu.memory_space<vmem>>, vector<64x256xf32>
    tpu.vector_store %arg5[%c0_15, %c0_16], %10 {strides = array<i32>} : memref<64x256xf32, #tpu.memory_space<vmem>>, vector<64x256xf32>,
    %c0_17 = arith.constant 0 : index
    %c0_18 = arith.constant 0 : index
    %12 = vector.load %arg5[%c0_17, %c0_18] : memref<64x256xf32, #tpu.memory_space<vmem>>, vector<64x256xf32>
    %c0_19 = arith.constant 0 : index
    %c2 = arith.constant 2 : index
    %c0_20 = arith.constant 0 : index
    %c0_21 = arith.constant 0 : index
    %13 = vector.load %arg1[%c0_19, %c2, %c0_20, %c0_21] : memref<1x4x288x256xbf16, #tpu.memory_space<vmem>>, vector<1x1x288x256xbf16>
    %14 = vector.shape_cast %13 : vector<1x1x288x256xbf16> to vector<288x256xbf16>
    %cst_22 = arith.constant dense<0.000000e+00> : vector<64x256xf32>
    %15 = tpu.matmul %0, %14, %cst_22 {dimension_numbers = #tpu.dot_dimension_numbers<[1], [0], [0], [1], [0, 0, 1, 1], [], []>} : vector<64x288xbf16>, vector<288x256xbf16>, vector<64x256xf32> -> vector<64x256xf32>
    %16 = arith.maximumf %12, %15 : vector<64x256xf32>
    %c0_23 = arith.constant 0 : index
    %c0_24 = arith.constant 0 : index
    %17 = vector.load %arg5[%c0_23, %c0_24] : memref<64x256xf32, #tpu.memory_space<vmem>>, vector<64x256xf32>
    tpu.vector_store %arg5[%c0_23, %c0_24], %16 {strides = array<i32>} : memref<64x256xf32, #tpu.memory_space<vmem>>, vector<64x256xf32>,
    %c0_25 = arith.constant 0 : index
    %c0_26 = arith.constant 0 : index
    %18 = vector.load %arg5[%c0_25, %c0_26] : memref<64x256xf32, #tpu.memory_space<vmem>>, vector<64x256xf32>
    %c0_27 = arith.constant 0 : index
    %c3 = arith.constant 3 : index
    %c0_28 = arith.constant 0 : index
    %c0_29 = arith.constant 0 : index
    %19 = vector.load %arg1[%c0_27, %c3, %c0_28, %c0_29] : memref<1x4x288x256xbf16, #tpu.memory_space<vmem>>, vector<1x1x288x256xbf16>
    %20 = vector.shape_cast %19 : vector<1x1x288x256xbf16> to vector<288x256xbf16>
    %cst_30 = arith.constant dense<0.000000e+00> : vector<64x256xf32>
    %21 = tpu.matmul %0, %20, %cst_30 {dimension_numbers = #tpu.dot_dimension_numbers<[1], [0], [0], [1], [0, 0, 1, 1], [], []>} : vector<64x288xbf16>, vector<288x256xbf16>, vector<64x256xf32> -> vector<64x256xf32>
    %22 = arith.maximumf %18, %21 : vector<64x256xf32>
    %c0_31 = arith.constant 0 : index
    %c0_32 = arith.constant 0 : index
    %23 = vector.load %arg5[%c0_31, %c0_32] : memref<64x256xf32, #tpu.memory_space<vmem>>, vector<64x256xf32>
    tpu.vector_store %arg5[%c0_31, %c0_32], %22 {strides = array<i32>} : memref<64x256xf32, #tpu.memory_space<vmem>>, vector<64x256xf32>,
    %c0_33 = arith.constant 0 : index
    %c0_34 = arith.constant 0 : index
    %24 = vector.load %arg5[%c0_33, %c0_34] : memref<64x256xf32, #tpu.memory_space<vmem>>, vector<64x256xf32>
    %25 = vector.broadcast %1 : vector<64x1xf32> to vector<64x256xf32>
    %26 = arith.addf %24, %25 : vector<64x256xf32>
    %cst_35 = arith.constant 0.000000e+00 : f32
    %27 = vector.broadcast %cst_35 : f32 to vector<64x256xf32>
    %28 = arith.maximumf %26, %27 : vector<64x256xf32>
    %29 = arith.truncf %28 : vector<64x256xf32> to vector<64x256xbf16>
    %c0_36 = arith.constant 0 : index
    %c0_37 = arith.constant 0 : index
    %c0_38 = arith.constant 0 : index
    %30 = vector.load %arg4[%c0_36, %c0_37, %c0_38] : memref<1x64x256xbf16, #tpu.memory_space<vmem>>, vector<1x64x256xbf16>
    %31 = vector.shape_cast %30 : vector<1x64x256xbf16> to vector<64x256xbf16>
    %32 = vector.shape_cast %29 : vector<64x256xbf16> to vector<1x64x256xbf16>
    tpu.vector_store %arg4[%c0_36, %c0_37, %c0_38], %32 {strides = array<i32>} : memref<1x64x256xbf16, #tpu.memory_space<vmem>>, vector<1x64x256xbf16>,
    return
  }
  func.func @transform_0(%arg0: i32) -> (i32, i32, i32, i32) {
    %c0_i32 = arith.constant 0 : i32
    %c0_i32_0 = arith.constant 0 : i32
    %c0_i32_1 = arith.constant 0 : i32
    %c0_i32_2 = arith.constant 0 : i32
    return %arg0, %c0_i32, %c0_i32_0, %c0_i32_1 : i32, i32, i32, i32
  }
  func.func @transform_1(%arg0: i32) -> (i32, i32) {
    %c0_i32 = arith.constant 0 : i32
    %c0_i32_0 = arith.constant 0 : i32
    %c0_i32_1 = arith.constant 0 : i32
    return %c0_i32, %c0_i32_0 : i32, i32
  }
  func.func @transform_2(%arg0: i32) -> (i32, i32) {
    %c0_i32 = arith.constant 0 : i32
    %c0_i32_0 = arith.constant 0 : i32
    %c0_i32_1 = arith.constant 0 : i32
    return %c0_i32, %c0_i32_0 : i32, i32
  }
  func.func @transform_3(%arg0: i32) -> (i32, i32, i32) {
    %c0_i32 = arith.constant 0 : i32
    %c0_i32_0 = arith.constant 0 : i32
    %c0_i32_1 = arith.constant 0 : i32
    return %arg0, %c0_i32, %c0_i32_0 : i32, i32, i32
  }
}

module attributes {stable_mosaic.version = 11 : i64} {
  func.func @fc_kernel(%arg0: i32, %arg1: memref<2x4096xbf16, #tpu.memory_space<vmem>>, %arg2: memref<4096x128xbf16, #tpu.memory_space<vmem>>, %arg3: memref<1x128xf32, #tpu.memory_space<vmem>>, %arg4: memref<128x15xf32, #tpu.memory_space<vmem>>, %arg5: memref<1x15xf32, #tpu.memory_space<vmem>>, %arg6: memref<2x15xf32, #tpu.memory_space<vmem>>, %arg7: memref<2x128xf32, #tpu.memory_space<vmem>>) attributes {dimension_semantics = [#tpu.dimension_semantics<arbitrary>], iteration_bounds = array<i64: 4>, scalar_prefetch = 0 : i64, scratch_operands = 1 : i64, tpu.core_type = #tpu.core_type<tc>, window_params = [{transform_indices = @transform_0, window_bounds = array<i64: 2, 4096>}, {transform_indices = @transform_1, window_bounds = array<i64: 4096, 128>}, {pipeline_mode = #tpu.pipeline_mode<synchronous>, transform_indices = @transform_2, window_bounds = array<i64: 1, 128>}, {pipeline_mode = #tpu.pipeline_mode<synchronous>, transform_indices = @transform_3, window_bounds = array<i64: 128, 15>}, {pipeline_mode = #tpu.pipeline_mode<synchronous>, transform_indices = @transform_4, window_bounds = array<i64: 1, 15>}, {pipeline_mode = #tpu.pipeline_mode<synchronous>, transform_indices = @transform_5, window_bounds = array<i64: 2, 15>}]} {
    %c0_i32 = arith.constant 0 : i32
    %0 = arith.cmpi eq, %arg0, %c0_i32 : i32
    %1 = arith.extui %0 : i1 to i32
    %c0_i32_0 = arith.constant 0 : i32
    %2 = arith.cmpi ne, %1, %c0_i32_0 : i32
    scf.if %2 {
      %cst_9 = arith.constant 0.000000e+00 : f32
      %12 = vector.broadcast %cst_9 : f32 to vector<2x128xf32>
      %c0_10 = arith.constant 0 : index
      %c0_11 = arith.constant 0 : index
      %13 = vector.load %arg7[%c0_10, %c0_11] : memref<2x128xf32, #tpu.memory_space<vmem>>, vector<2x128xf32>
      tpu.vector_store %arg7[%c0_10, %c0_11], %12 {strides = array<i32>} : memref<2x128xf32, #tpu.memory_space<vmem>>, vector<2x128xf32>,
    } else {
    }
    %c0 = arith.constant 0 : index
    %c0_1 = arith.constant 0 : index
    %3 = vector.load %arg7[%c0, %c0_1] : memref<2x128xf32, #tpu.memory_space<vmem>>, vector<2x128xf32>
    %c0_2 = arith.constant 0 : index
    %c0_3 = arith.constant 0 : index
    %4 = vector.load %arg1[%c0_2, %c0_3] : memref<2x4096xbf16, #tpu.memory_space<vmem>>, vector<2x4096xbf16>
    %c0_4 = arith.constant 0 : index
    %c0_5 = arith.constant 0 : index
    %5 = vector.load %arg2[%c0_4, %c0_5] : memref<4096x128xbf16, #tpu.memory_space<vmem>>, vector<4096x128xbf16>
    %cst = arith.constant dense<0.000000e+00> : vector<2x128xf32>
    %6 = tpu.matmul %4, %5, %cst {dimension_numbers = #tpu.dot_dimension_numbers<[1], [0], [0], [1], [0, 0, 1, 1], [], []>} : vector<2x4096xbf16>, vector<4096x128xbf16>, vector<2x128xf32> -> vector<2x128xf32>
    %7 = arith.addf %3, %6 : vector<2x128xf32>
    %c0_6 = arith.constant 0 : index
    %c0_7 = arith.constant 0 : index
    %8 = vector.load %arg7[%c0_6, %c0_7] : memref<2x128xf32, #tpu.memory_space<vmem>>, vector<2x128xf32>
    tpu.vector_store %arg7[%c0_6, %c0_7], %7 {strides = array<i32>} : memref<2x128xf32, #tpu.memory_space<vmem>>, vector<2x128xf32>,
    %c3_i32 = arith.constant 3 : i32
    %9 = arith.cmpi eq, %arg0, %c3_i32 : i32
    %10 = arith.extui %9 : i1 to i32
    %c0_i32_8 = arith.constant 0 : i32
    %11 = arith.cmpi ne, %10, %c0_i32_8 : i32
    scf.if %11 {
      %c0_9 = arith.constant 0 : index
      %c0_10 = arith.constant 0 : index
      %12 = vector.load %arg7[%c0_9, %c0_10] : memref<2x128xf32, #tpu.memory_space<vmem>>, vector<2x128xf32>
      %c0_11 = arith.constant 0 : index
      %c0_12 = arith.constant 0 : index
      %13 = vector.load %arg3[%c0_11, %c0_12] : memref<1x128xf32, #tpu.memory_space<vmem>>, vector<1x128xf32>
      %14 = vector.broadcast %13 : vector<1x128xf32> to vector<2x128xf32>
      %15 = arith.addf %12, %14 : vector<2x128xf32>
      %cst_13 = arith.constant 0.000000e+00 : f32
      %16 = vector.broadcast %cst_13 : f32 to vector<2x128xf32>
      %17 = arith.maximumf %15, %16 : vector<2x128xf32>
      %c0_14 = arith.constant 0 : index
      %c0_15 = arith.constant 0 : index
      %18 = vector.load %arg4[%c0_14, %c0_15] : memref<128x15xf32, #tpu.memory_space<vmem>>, vector<128x15xf32>
      %cst_16 = arith.constant dense<0.000000e+00> : vector<2x15xf32>
      %19 = tpu.matmul %17, %18, %cst_16 {dimension_numbers = #tpu.dot_dimension_numbers<[1], [0], [0], [1], [0, 0, 1, 1], [], []>} : vector<2x128xf32>, vector<128x15xf32>, vector<2x15xf32> -> vector<2x15xf32>
      %c0_17 = arith.constant 0 : index
      %c0_18 = arith.constant 0 : index
      %20 = vector.load %arg5[%c0_17, %c0_18] : memref<1x15xf32, #tpu.memory_space<vmem>>, vector<1x15xf32>
      %21 = vector.broadcast %20 : vector<1x15xf32> to vector<2x15xf32>
      %22 = arith.addf %19, %21 : vector<2x15xf32>
      %c0_19 = arith.constant 0 : index
      %c0_20 = arith.constant 0 : index
      %23 = vector.load %arg6[%c0_19, %c0_20] : memref<2x15xf32, #tpu.memory_space<vmem>>, vector<2x15xf32>
      tpu.vector_store %arg6[%c0_19, %c0_20], %22 {strides = array<i32>} : memref<2x15xf32, #tpu.memory_space<vmem>>, vector<2x15xf32>,
    } else {
    }
    return
  }
  func.func @transform_0(%arg0: i32) -> (i32, i32) {
    %c0_i32 = arith.constant 0 : i32
    %c0_i32_0 = arith.constant 0 : i32
    return %c0_i32, %arg0 : i32, i32
  }
  func.func @transform_1(%arg0: i32) -> (i32, i32) {
    %c0_i32 = arith.constant 0 : i32
    %c0_i32_0 = arith.constant 0 : i32
    return %arg0, %c0_i32 : i32, i32
  }
  func.func @transform_2(%arg0: i32) -> (i32, i32) {
    %c0_i32 = arith.constant 0 : i32
    %c0_i32_0 = arith.constant 0 : i32
    %c0_i32_1 = arith.constant 0 : i32
    return %c0_i32, %c0_i32_0 : i32, i32
  }
  func.func @transform_3(%arg0: i32) -> (i32, i32) {
    %c0_i32 = arith.constant 0 : i32
    %c0_i32_0 = arith.constant 0 : i32
    %c0_i32_1 = arith.constant 0 : i32
    return %c0_i32, %c0_i32_0 : i32, i32
  }
  func.func @transform_4(%arg0: i32) -> (i32, i32) {
    %c0_i32 = arith.constant 0 : i32
    %c0_i32_0 = arith.constant 0 : i32
    %c0_i32_1 = arith.constant 0 : i32
    return %c0_i32, %c0_i32_0 : i32, i32
  }
  func.func @transform_5(%arg0: i32) -> (i32, i32) {
    %c0_i32 = arith.constant 0 : i32
    %c0_i32_0 = arith.constant 0 : i32
    %c0_i32_1 = arith.constant 0 : i32
    return %c0_i32, %c0_i32_0 : i32, i32
  }
}

</mosaic_0001>

<bundles_post_ra>
// kernel: symbol_classifier_forward.3
= control target key start
LH: loop header
LB: loop body
LE: loop exit
PB: predicated region body
PF: predicated region fallthrough
CT: control target
= control target key end

     0   :  { %s2268_s12 = smov 0   ;;  %s2917_s0 = inlined_call_operand.vmem [shape: bf16[2,4,32,1024], index: 0, kind: input, shape index: {}]   ;;  %s2918_s1 = inlined_call_operand.vmem [shape: bf16[32,32], index: 1, kind: input, shape index: {}]   ;;  %s2919_s2 = inlined_call_operand.vmem [shape: f32[32,1], index: 2, kind: input, shape index: {}]   ;;  %s2920_s3 = inlined_call_operand.vmem [shape: bf16[2,32,1024], index: 3, kind: output, shape index: {}]  }
   0x1 LB: > { %s2035_s13 = sadd.s32 4294967295, %s2245_s12   ;;  %p2039_p0 = scmp.ge.s32.totalorder %s2245_s12, 1  ;;  %s2245_s12 = sphi %s2268_s12, %s13_s12  }
   0x2   : > { %p137_p1 = scmp.lt.s32.totalorder %s2245_s12, 3 }
   0x4   : > { %p138_p2 = pnand %p2039_p0, %p137_p1 }
   0x6   : > { %141 = sbr.rel (%p138_p2) target bundleno = 375 (0x177), region = 32 }
   0xd   : > { %p161_p3 = scmp.lt.s32.totalorder %s2035_s13, 1  ;;  %v2247_v0 = vmov 0   ;;  %v2303_v23 = vld [vmem:[%s2918_s1] sm:$0xff]   ;;  %vm286_vm0 = vcmask 261120   ;;  %v2322_v40 = vld [vmem:[%s2918_s1 + $0x8] sm:$0xff]   ;;  %v178_v42 = vld [vmem:[%s2919_s2 + $0x10] sm:$0xff] }
   0xe   : > { %325 = vmatprep.mubr.bf16.mxu0 %v2247_v0  ;;  %378 = vmatprep.mubr.bf16.mxu1 %v2247_v0  ;;  %v176_v41 = vld [vmem:[%s2919_s2] sm:$0xff]  ;;  %v177_v45 = vld [vmem:[%s2919_s2 + $0x8] sm:$0xff]  ;;  %v179_v49 = vld [vmem:[%s2919_s2 + $0x18] sm:$0xff] }
   0xf   : > { %s2990_s13 = smov (!%p161_p3, %s2035_s13), 1  ;;  %2235 = vset.pattern.permute.xlu0 %v2247_v0  ;;  %2236 = vset.pattern.permute.xlu1 %v2247_v0 }
  0x10   : > { %s2208_s14 = sshll.u32 %s2990_s13, 9  ;;  %1786 = vperm.xlu0 %2235, %v176_v41   ;;  %1796 = vperm.xlu1 %2236, %v178_v42   ;;  %s2209_s30 = sshll.u32 %s2990_s13, 7 }
  0x11   : > { %s2286_s17 = scalar_lea.vmem %s2917_s0, %s2208_s14  ;;  %s2845_s6 = scalar_lea.vmem %s2920_s3, %s2209_s30 }
  0x12   : > { %v180_v1 = vld [vmem:[%s2286_s17] sm:$0xff]  ;;  %v181_v3 = vld [vmem:[%s2286_s17 + $0x8] sm:$0xff]  ;;  %v182_v14 = vld [vmem:[%s2286_s17 + $0x10] sm:$0xff] }
  0x13   : > { %v184_v2 = vld [vmem:[%s2286_s17 + $0x20] sm:$0xff]  ;;  %v185_v5 = vld [vmem:[%s2286_s17 + $0x28] sm:$0xff]  ;;  %v186_v16 = vld [vmem:[%s2286_s17 + $0x30] sm:$0xff] }
  0x14   : > { %v2047_v4 = vcombine.high %v180_v1, %v184_v2  ;;  %v2046_v6 = vcombine.low %v180_v1, %v184_v2  ;;  %v188_v7 = vld [vmem:[%s2286_s17 + $0x40] sm:$0xff]  ;;  %v2049_v9 = vcombine.high %v181_v3, %v185_v5  ;;  %v2048_v10 = vcombine.low %v181_v3, %v185_v5  ;;  %v189_v12 = vld [vmem:[%s2286_s17 + $0x48] sm:$0xff]  ;;  %v183_v17 = vld [vmem:[%s2286_s17 + $0x18] sm:$0xff]  ;;  %1791 = vperm.xlu0 %2235, %v177_v45  }
  0x15   : > { %v192_v8 = vld [vmem:[%s2286_s17 + $0x60] sm:$0xff]  ;;  %v193_v13 = vld [vmem:[%s2286_s17 + $0x68] sm:$0xff]  ;;  %v187_v18 = vld [vmem:[%s2286_s17 + $0x38] sm:$0xff]  ;;  %v2051_v21 = vcombine.high %v182_v14, %v186_v16  ;;  %v2050_v26 = vcombine.low %v182_v14, %v186_v16  ;;  %1801 = vperm.xlu1 %2236, %v179_v49  }
  0x16   : > { %v2055_v11 = vcombine.high %v188_v7, %v192_v8  ;;  %293 = vmatprep.subr.bf16.mxu0 %v2047_v4  ;;  %v2057_v15 = vcombine.high %v189_v12, %v193_v13  ;;  %346 = vmatprep.subr.bf16.mxu1 %v2049_v9  ;;  %v2054_v19 = vcombine.low %v188_v7, %v192_v8  ;;  %v190_v24 = vld [vmem:[%s2286_s17 + $0x50] sm:$0xff]  ;;  %v191_v27 = vld [vmem:[%s2286_s17 + $0x58] sm:$0xff]  ;;  %v2070_v31 = vld [vmem:[%s2286_s17 + $0x80] sm:$0xff] }
  0x17   : > { %294 = vmatpush1.bf16.msra.mxu0 %v2046_v6  ;;  %347 = vmatpush1.bf16.msra.mxu1 %v2048_v10  ;;  %v2056_v20 = vcombine.low %v189_v12, %v193_v13  ;;  %v2053_v22 = vcombine.high %v183_v17, %v187_v18  ;;  %v194_v25 = vld [vmem:[%s2286_s17 + $0x70] sm:$0xff]  ;;  %v195_v28 = vld [vmem:[%s2286_s17 + $0x78] sm:$0xff]  ;;  %v2052_v29 = vcombine.low %v183_v17, %v187_v18  ;;  %v2074_v32 = vld [vmem:[%s2286_s17 + $0xa0] sm:$0xff] }
  0x18   : > { %295 = vmatprep.subr.bf16.mxu0 %v2055_v11  ;;  %348 = vmatprep.subr.bf16.mxu1 %v2057_v15  ;;  %v2059_v30 = vcombine.high %v190_v24, %v194_v25  ;;  %v2061_v33 = vcombine.high %v191_v27, %v195_v28  ;;  %v2071_v34 = vld [vmem:[%s2286_s17 + $0x88] sm:$0xff]  ;;  %v2058_v36 = vcombine.low %v190_v24, %v194_v25  ;;  %v2078_v43 = vld [vmem:[%s2286_s17 + $0xc0] sm:$0xff]  ;;  %v2072_v52 = vld [vmem:[%s2286_s17 + $0x90] sm:$0xff] }
  0x19   : > { %v2075_v35 = vld [vmem:[%s2286_s17 + $0xa8] sm:$0xff]  ;;  %v2060_v37 = vcombine.low %v191_v27, %v195_v28  ;;  %v2087_v38 = vcombine.high %v2070_v31, %v2074_v32  ;;  %v2082_v44 = vld [vmem:[%s2286_s17 + $0xe0] sm:$0xff]  ;;  %v2086_v46 = vcombine.low %v2070_v31, %v2074_v32  ;;  %v2076_v53 = vld [vmem:[%s2286_s17 + $0xb0] sm:$0xff] }
  0x1a   : > { %v2089_v39 = vcombine.high %v2071_v34, %v2075_v35  ;;  %v2079_v47 = vld [vmem:[%s2286_s17 + $0xc8] sm:$0xff]  ;;  %v2088_v50 = vcombine.low %v2071_v34, %v2075_v35  ;;  %v2095_v51 = vcombine.high %v2078_v43, %v2082_v44  ;;  %v2073_v55 = vld [vmem:[%s2286_s17 + $0x98] sm:$0xff]  ;;  %v2094_v57 = vcombine.low %v2078_v43, %v2082_v44  ;;  %v2080_v61 = vld [vmem:[%s2286_s17 + $0xd0] sm:$0xff] }
  0x1b   : > { %296 = vmatpush1.bf16.msra.mxu0 %v2054_v19  ;;  %349 = vmatpush1.bf16.msra.mxu1 %v2056_v20  ;;  %v2083_v48 = vld [vmem:[%s2286_s17 + $0xe8] sm:$0xff]  ;;  %v2077_v56 = vld [vmem:[%s2286_s17 + $0xb8] sm:$0xff]  ;;  %v2091_v59 = vcombine.high %v2072_v52, %v2076_v53  ;;  %v2084_v62 = vld [vmem:[%s2286_s17 + $0xf0] sm:$0xff]  ;;  %v2090_v63 = vcombine.low %v2072_v52, %v2076_v53 }
  0x1c   : > { %399 = vmatprep.subr.bf16.mxu0 %v2051_v21  ;;  %452 = vmatprep.subr.bf16.mxu1 %v2053_v22  ;;  %v2097_v54 = vcombine.high %v2079_v47, %v2083_v48  ;;  %v2096_v58 = vcombine.low %v2079_v47, %v2083_v48  ;;  %v2093_v60 = vcombine.high %v2073_v55, %v2077_v56  ;;  %v2081_v1 = vld [vmem:[%s2286_s17 + $0xd8] sm:$0xff]  ;;  %v2110_v5 = vld [vmem:[%s2286_s17 + $0x100] sm:$0xff]  ;;  %v2111_v8 = vld [vmem:[%s2286_s17 + $0x108] sm:$0xff] }
  0x1d   : > { %v2085_v2 = vld [vmem:[%s2286_s17 + $0xf8] sm:$0xff]  ;;  %v2092_v3 = vcombine.low %v2073_v55, %v2077_v56  ;;  %v2099_v4 = vcombine.high %v2080_v61, %v2084_v62  ;;  %v2114_v6 = vld [vmem:[%s2286_s17 + $0x120] sm:$0xff]  ;;  %v2115_v9 = vld [vmem:[%s2286_s17 + $0x128] sm:$0xff]  ;;  %v2098_v10 = vcombine.low %v2080_v61, %v2084_v62 }
  0x1e   : > { %2062 = vmatmul.mubr.msk.bf16.vlgmr.msra.gmra.mrb[0].mxu0 %vm286_vm0, %v2303_v23  ;;  %2064 = vmatmul.mubr.msk.bf16.vlgmr.msra.gmra.mrb[0].mxu1 %vm286_vm0, %v2303_v23  ;;  %v2101_v7 = vcombine.high %v2081_v1, %v2085_v2  ;;  %v2100_v11 = vcombine.low %v2081_v1, %v2085_v2  ;;  %v2127_v12 = vcombine.high %v2110_v5, %v2114_v6  ;;  %v2118_v14 = vld [vmem:[%s2286_s17 + $0x140] sm:$0xff]  ;;  %v2119_v17 = vld [vmem:[%s2286_s17 + $0x148] sm:$0xff]  ;;  %v2112_v21 = vld [vmem:[%s2286_s17 + $0x110] sm:$0xff] }
  0x1f   : > { %400 = vmatpush1.bf16.msra.mxu0 %v2050_v26  ;;  %453 = vmatpush1.bf16.msra.mxu1 %v2052_v29  ;;  %v2129_v13 = vcombine.high %v2111_v8, %v2115_v9  ;;  %v2122_v15 = vld [vmem:[%s2286_s17 + $0x160] sm:$0xff]  ;;  %v2126_v16 = vcombine.low %v2110_v5, %v2114_v6  ;;  %v2123_v18 = vld [vmem:[%s2286_s17 + $0x168] sm:$0xff]  ;;  %v2128_v19 = vcombine.low %v2111_v8, %v2115_v9  ;;  %v2116_v22 = vld [vmem:[%s2286_s17 + $0x130] sm:$0xff] }
  0x20   : > { %335 = vmatprep.mubr.bf16.mxu0 %v2247_v0  ;;  %388 = vmatprep.mubr.bf16.mxu1 %v2247_v0  ;;  %v2135_v20 = vcombine.high %v2118_v14, %v2122_v15  ;;  %v2137_v24 = vcombine.high %v2119_v17, %v2123_v18  ;;  %v2113_v25 = vld [vmem:[%s2286_s17 + $0x118] sm:$0xff]  ;;  %v2134_v27 = vcombine.low %v2118_v14, %v2122_v15  ;;  %v2120_v31 = vld [vmem:[%s2286_s17 + $0x150] sm:$0xff]  ;;  %v2151_v42 = vld [vmem:[%s2286_s17 + $0x188] sm:$0xff] }
  0x21   : > { %401 = vmatprep.subr.bf16.mxu0 %v2059_v30  ;;  %454 = vmatprep.subr.bf16.mxu1 %v2061_v33  ;;  %v2117_v26 = vld [vmem:[%s2286_s17 + $0x138] sm:$0xff]  ;;  %v2136_v28 = vcombine.low %v2119_v17, %v2123_v18  ;;  %v2131_v29 = vcombine.high %v2112_v21, %v2116_v22  ;;  %v2124_v32 = vld [vmem:[%s2286_s17 + $0x170] sm:$0xff]  ;;  %v2130_v33 = vcombine.low %v2112_v21, %v2116_v22  ;;  %v2155_v43 = vld [vmem:[%s2286_s17 + $0x1a8] sm:$0xff] }
  0x22   : > { %v2133_v30 = vcombine.high %v2113_v25, %v2117_v26  ;;  %v2121_v34 = vld [vmem:[%s2286_s17 + $0x158] sm:$0xff]  ;;  %v2138_v44 = vcombine.low %v2120_v31, %v2124_v32  ;;  %v2169_v47 = vcombine.high %v2151_v42, %v2155_v43  ;;  %v2158_v48 = vld [vmem:[%s2286_s17 + $0x1c0] sm:$0xff]  ;;  %v2163_v52 = vld [vmem:[%s2286_s17 + $0x1e8] sm:$0xff]  ;;  %v2168_v53 = vcombine.low %v2151_v42, %v2155_v43 }
  0x23   : > { %402 = vmatpush1.bf16.msra.mxu0 %v2058_v36  ;;  %455 = vmatpush1.bf16.msra.mxu1 %v2060_v37  ;;  %v2125_v35 = vld [vmem:[%s2286_s17 + $0x178] sm:$0xff]  ;;  %v2132_v36 = vcombine.low %v2113_v25, %v2117_v26  ;;  %v2139_v37 = vcombine.high %v2120_v31, %v2124_v32  ;;  %v2162_v49 = vld [vmem:[%s2286_s17 + $0x1e0] sm:$0xff]  ;;  %v2152_v55 = vld [vmem:[%s2286_s17 + $0x190] sm:$0xff] }
  0x24   : > { %666 = vmatprep.subr.bf16.mxu0 %v2087_v38  ;;  %719 = vmatprep.subr.bf16.mxu1 %v2089_v39  ;;  %v2150_v38 = vld [vmem:[%s2286_s17 + $0x180] sm:$0xff]  ;;  %v2141_v41 = vcombine.high %v2121_v34, %v2125_v35  ;;  %v2140_v45 = vcombine.low %v2121_v34, %v2125_v35  ;;  %v2156_v56 = vld [vmem:[%s2286_s17 + $0x1b0] sm:$0xff]  ;;  %v2165_v5 = vld [vmem:[%s2286_s17 + $0x1f8] sm:$0xff] }
  0x25   : > { %v2154_v39 = vld [vmem:[%s2286_s17 + $0x1a0] sm:$0xff]  ;;  %v2171_v62 = vcombine.high %v2152_v55, %v2156_v56  ;;  %v2160_v1 = vld [vmem:[%s2286_s17 + $0x1d0] sm:$0xff] }
  0x26   : > { %2063 = vmatmul.mubr.msk.bf16.gmra.mrb[4].mxu0 %vm286_vm0, %v2322_v40  ;;  %2065 = vmatmul.mubr.msk.bf16.gmra.mrb[4].mxu1 %vm286_vm0, %v2322_v40  ;;  %v2164_v2 = vld [vmem:[%s2286_s17 + $0x1f0] sm:$0xff] }
  0x27   : > { %431 = vmatprep.mubr.bf16.mxu0 %v2247_v0  ;;  %484 = vmatprep.mubr.bf16.mxu1 %v2247_v0  ;;  %v2178_v9 = vcombine.low %v2160_v1, %v2164_v2 }
  0x2e   : > { %2066 = vmatmul.mubr.msk.bf16.vlgmr.msra.gmra.mrb[8].mxu0 %vm286_vm0, %v2303_v23  ;;  %2068 = vmatmul.mubr.msk.bf16.vlgmr.msra.gmra.mrb[8].mxu1 %vm286_vm0, %v2303_v23 }
  0x2f   : > { %667 = vmatpush1.bf16.msra.mxu0 %v2086_v46  ;;  %720 = vmatpush1.bf16.msra.mxu1 %v2088_v50  ;;  %v2167_v46 = vcombine.high %v2150_v38, %v2154_v39  ;;  %v2166_v50 = vcombine.low %v2150_v38, %v2154_v39 }
  0x30   : > { %441 = vmatprep.mubr.bf16.mxu0 %v2247_v0  ;;  %494 = vmatprep.mubr.bf16.mxu1 %v2247_v0 }
  0x31   : > { %668 = vmatprep.subr.bf16.mxu0 %v2095_v51  ;;  %721 = vmatprep.subr.bf16.mxu1 %v2097_v54  ;;  %v2159_v51 = vld [vmem:[%s2286_s17 + $0x1c8] sm:$0xff]  ;;  %v2175_v54 = vcombine.high %v2158_v48, %v2162_v49 }
  0x32   : > { %v2176_v61 = vcombine.low %v2159_v51, %v2163_v52 }
  0x33   : > { %669 = vmatpush1.bf16.msra.mxu0 %v2094_v57  ;;  %722 = vmatpush1.bf16.msra.mxu1 %v2096_v58  ;;  %v2177_v57 = vcombine.high %v2159_v51, %v2163_v52  ;;  %v2153_v58 = vld [vmem:[%s2286_s17 + $0x198] sm:$0xff] }
  0x34   : > { %772 = vmatprep.subr.bf16.mxu0 %v2091_v59  ;;  %825 = vmatprep.subr.bf16.mxu1 %v2093_v60  ;;  %v2157_v59 = vld [vmem:[%s2286_s17 + $0x1b8] sm:$0xff]  ;;  %v2174_v60 = vcombine.low %v2158_v48, %v2162_v49 }
  0x35   : > { %v2172_v6 = vcombine.low %v2153_v58, %v2157_v59 }
  0x36   : > { %2067 = vmatmul.mubr.msk.bf16.gmra.mrb[12].mxu0 %vm286_vm0, %v2322_v40  ;;  %2069 = vmatmul.mubr.msk.bf16.gmra.mrb[12].mxu1 %vm286_vm0, %v2322_v40 }
  0x37   : > { %698 = vmatprep.mubr.bf16.mxu0 %v2247_v0  ;;  %751 = vmatprep.mubr.bf16.mxu1 %v2247_v0 }
  0x3e   : > { %2102 = vmatmul.mubr.msk.bf16.vlgmr.msra.gmra.mrb[16].mxu0 %vm286_vm0, %v2303_v23  ;;  %2104 = vmatmul.mubr.msk.bf16.vlgmr.msra.gmra.mrb[16].mxu1 %vm286_vm0, %v2303_v23 }
  0x3f   : > { %773 = vmatpush1.bf16.msra.mxu0 %v2090_v63  ;;  %826 = vmatpush1.bf16.msra.mxu1 %v2092_v3  ;;  %v2173_v63 = vcombine.high %v2153_v58, %v2157_v59  ;;  %v2170_v3 = vcombine.low %v2152_v55, %v2156_v56 }
  0x40   : > { %708 = vmatprep.mubr.bf16.mxu0 %v2247_v0  ;;  %761 = vmatprep.mubr.bf16.mxu1 %v2247_v0 }
  0x41   : > { %774 = vmatprep.subr.bf16.mxu0 %v2099_v4  ;;  %827 = vmatprep.subr.bf16.mxu1 %v2101_v7  ;;  %v2161_v4 = vld [vmem:[%s2286_s17 + $0x1d8] sm:$0xff]  ;;  %v2179_v7 = vcombine.high %v2160_v1, %v2164_v2 }
  0x42   : > { %v2181_v8 = vcombine.high %v2161_v4, %v2165_v5 }
  0x43   : > { %775 = vmatpush1.bf16.msra.mxu0 %v2098_v10  ;;  %828 = vmatpush1.bf16.msra.mxu1 %v2100_v11  ;;  %v2180_v10 = vcombine.low %v2161_v4, %v2165_v5 }
  0x44   : > { %1071 = vmatprep.subr.bf16.mxu0 %v2127_v12  ;;  %1124 = vmatprep.subr.bf16.mxu1 %v2129_v13 }
  0x46   : > { %2103 = vmatmul.mubr.msk.bf16.gmra.mrb[20].mxu0 %vm286_vm0, %v2322_v40  ;;  %2105 = vmatmul.mubr.msk.bf16.gmra.mrb[20].mxu1 %vm286_vm0, %v2322_v40 }
  0x47   : > { %804 = vmatprep.mubr.bf16.mxu0 %v2247_v0  ;;  %857 = vmatprep.mubr.bf16.mxu1 %v2247_v0 }
  0x4e   : > { %2106 = vmatmul.mubr.msk.bf16.vlgmr.msra.gmra.mrb[24].mxu0 %vm286_vm0, %v2303_v23  ;;  %2108 = vmatmul.mubr.msk.bf16.vlgmr.msra.gmra.mrb[24].mxu1 %vm286_vm0, %v2303_v23 }
  0x4f   : > { %1072 = vmatpush1.bf16.msra.mxu0 %v2126_v16  ;;  %1125 = vmatpush1.bf16.msra.mxu1 %v2128_v19 }
  0x50   : > { %814 = vmatprep.mubr.bf16.mxu0 %v2247_v0  ;;  %867 = vmatprep.mubr.bf16.mxu1 %v2247_v0 }
  0x51   : > { %1073 = vmatprep.subr.bf16.mxu0 %v2135_v20  ;;  %1126 = vmatprep.subr.bf16.mxu1 %v2137_v24 }
  0x53   : > { %1074 = vmatpush1.bf16.msra.mxu0 %v2134_v27  ;;  %1127 = vmatpush1.bf16.msra.mxu1 %v2136_v28 }
  0x54   : > { %1177 = vmatprep.subr.bf16.mxu0 %v2131_v29  ;;  %1230 = vmatprep.subr.bf16.mxu1 %v2133_v30 }
  0x56   : > { %2107 = vmatmul.mubr.msk.bf16.gmra.mrb[28].mxu0 %vm286_vm0, %v2322_v40  ;;  %2109 = vmatmul.mubr.msk.bf16.gmra.mrb[28].mxu1 %vm286_vm0, %v2322_v40 }
  0x57   : > { %1103 = vmatprep.mubr.bf16.mxu0 %v2247_v0  ;;  %1156 = vmatprep.mubr.bf16.mxu1 %v2247_v0 }
  0x5e   : > { %2142 = vmatmul.mubr.msk.bf16.vlgmr.msra.gmra.mrb[32].mxu0 %vm286_vm0, %v2303_v23  ;;  %2144 = vmatmul.mubr.msk.bf16.vlgmr.msra.gmra.mrb[32].mxu1 %vm286_vm0, %v2303_v23 }
  0x5f   : > { %1178 = vmatpush1.bf16.msra.mxu0 %v2130_v33  ;;  %1231 = vmatpush1.bf16.msra.mxu1 %v2132_v36 }
  0x60   : > { %1113 = vmatprep.mubr.bf16.mxu0 %v2247_v0  ;;  %1166 = vmatprep.mubr.bf16.mxu1 %v2247_v0 }
  0x61   : > { %1179 = vmatprep.subr.bf16.mxu0 %v2139_v37  ;;  %1232 = vmatprep.subr.bf16.mxu1 %v2141_v41 }
  0x63   : > { %1180 = vmatpush1.bf16.msra.mxu0 %v2138_v44  ;;  %1233 = vmatpush1.bf16.msra.mxu1 %v2140_v45 }
  0x64   : > { %1476 = vmatprep.subr.bf16.mxu0 %v2167_v46  ;;  %1529 = vmatprep.subr.bf16.mxu1 %v2169_v47 }
  0x66   : > { %2143 = vmatmul.mubr.msk.bf16.gmra.mrb[36].mxu0 %vm286_vm0, %v2322_v40  ;;  %2145 = vmatmul.mubr.msk.bf16.gmra.mrb[36].mxu1 %vm286_vm0, %v2322_v40 }
  0x67   : > { %1209 = vmatprep.mubr.bf16.mxu0 %v2247_v0  ;;  %1262 = vmatprep.mubr.bf16.mxu1 %v2247_v0 }
  0x6e   : > { %2146 = vmatmul.mubr.msk.bf16.vlgmr.msra.gmra.mrb[40].mxu0 %vm286_vm0, %v2303_v23  ;;  %2148 = vmatmul.mubr.msk.bf16.vlgmr.msra.gmra.mrb[40].mxu1 %vm286_vm0, %v2303_v23 }
  0x6f   : > { %1477 = vmatpush1.bf16.msra.mxu0 %v2166_v50  ;;  %1530 = vmatpush1.bf16.msra.mxu1 %v2168_v53 }
  0x70   : > { %1219 = vmatprep.mubr.bf16.mxu0 %v2247_v0  ;;  %1272 = vmatprep.mubr.bf16.mxu1 %v2247_v0 }
  0x71   : > { %1478 = vmatprep.subr.bf16.mxu0 %v2175_v54  ;;  %1531 = vmatprep.subr.bf16.mxu1 %v2177_v57 }
  0x73   : > { %1479 = vmatpush1.bf16.msra.mxu0 %v2174_v60  ;;  %1532 = vmatpush1.bf16.msra.mxu1 %v2176_v61 }
  0x74   : > { %1582 = vmatprep.subr.bf16.mxu0 %v2171_v62  ;;  %1635 = vmatprep.subr.bf16.mxu1 %v2173_v63 }
  0x76   : > { %2147 = vmatmul.mubr.msk.bf16.gmra.mrb[44].mxu0 %vm286_vm0, %v2322_v40  ;;  %2149 = vmatmul.mubr.msk.bf16.gmra.mrb[44].mxu1 %vm286_vm0, %v2322_v40 }
  0x77   : > { %1508 = vmatprep.mubr.bf16.mxu0 %v2247_v0  ;;  %1561 = vmatprep.mubr.bf16.mxu1 %v2247_v0 }
  0x7e   : > { %2182 = vmatmul.mubr.msk.bf16.vlgmr.msra.gmra.mrb[48].mxu0 %vm286_vm0, %v2303_v23  ;;  %2184 = vmatmul.mubr.msk.bf16.vlgmr.msra.gmra.mrb[48].mxu1 %vm286_vm0, %v2303_v23 }
  0x7f   : > { %1583 = vmatpush1.bf16.msra.mxu0 %v2170_v3  ;;  %1636 = vmatpush1.bf16.msra.mxu1 %v2172_v6 }
  0x80   : > { %1518 = vmatprep.mubr.bf16.mxu0 %v2247_v0  ;;  %1571 = vmatprep.mubr.bf16.mxu1 %v2247_v0 }
  0x81   : > { %1584 = vmatprep.subr.bf16.mxu0 %v2179_v7  ;;  %1637 = vmatprep.subr.bf16.mxu1 %v2181_v8 }
  0x83   : > { %1585 = vmatpush1.bf16.msra.mxu0 %v2178_v9  ;;  %1638 = vmatpush1.bf16.msra.mxu1 %v2180_v10 }
  0x86   : > { %2183 = vmatmul.mubr.msk.bf16.gmra.mrb[52].mxu0 %vm286_vm0, %v2322_v40  ;;  %2185 = vmatmul.mubr.msk.bf16.gmra.mrb[52].mxu1 %vm286_vm0, %v2322_v40 }
  0x87   : > { %1614 = vmatprep.mubr.bf16.mxu0 %v2247_v0  ;;  %1667 = vmatprep.mubr.bf16.mxu1 %v2247_v0 }
  0x8e   : > { %2186 = vmatmul.mubr.msk.bf16.vlgmr.msra.gmra.mrb[56].mxu0 %vm286_vm0, %v2303_v23  ;;  %2188 = vmatmul.mubr.msk.bf16.vlgmr.msra.gmra.mrb[56].mxu1 %vm286_vm0, %v2303_v23 }
  0x8f   : > { %1624 = vmatprep.mubr.bf16.mxu0 %v2247_v0  ;;  %1677 = vmatprep.mubr.bf16.mxu1 %v2247_v0 }
  0x96   : > { %2187 = vmatmul.mubr.msk.bf16.gmra.mrb[60].mxu0 %vm286_vm0, %v2322_v40  ;;  %2189 = vmatmul.mubr.msk.bf16.gmra.mrb[60].mxu1 %vm286_vm0, %v2322_v40 }
  0xf1   : > { %v2468_v11 = vpop.f32.mrb[0].mxu0  ;;  %v2470_v12 = vpop.f32.mrb[0].mxu1 }
  0xf2   : > { %v2472_v13 = vpop.f32.mrb[1].mxu0  ;;  %v2474_v14 = vpop.f32.mrb[1].mxu1 }
  0xf3   : > { %v2476_v15 = vpop.f32.mrb[2].mxu0  ;;  %v2478_v23 = vpop.f32.mrb[2].mxu1 }
  0xf4   : > { %v2480_v16 = vpop.f32.mrb[3].mxu0  ;;  %v2482_v0 = vpop.f32.mrb[3].mxu1 }
  0xf9   : > { %v2484_v17 = vpop.f32.mrb[4].mxu0  ;;  %v2486_v18 = vpop.f32.mrb[4].mxu1 }
  0xfa   : > { %v2488_v40 = vpop.f32.mrb[5].mxu0  ;;  %v2490_v19 = vpop.f32.mrb[5].mxu1 }
  0xfb   : > { %v2492_v20 = vpop.f32.mrb[6].mxu0  ;;  %v2494_v21 = vpop.f32.mrb[6].mxu1 }
  0xfc   : > { %v2496_v22 = vpop.f32.mrb[7].mxu0  ;;  %v2498_v24 = vpop.f32.mrb[7].mxu1 }
 0x101   : > { %v2500_v25 = vpop.f32.mrb[8].mxu0  ;;  %v2502_v26 = vpop.f32.mrb[8].mxu1 }
 0x102   : > { %v2504_v27 = vpop.f32.mrb[9].mxu0  ;;  %v2506_v28 = vpop.f32.mrb[9].mxu1 }
 0x103   : > { %v2508_v29 = vpop.f32.mrb[10].mxu0  ;;  %v2510_v30 = vpop.f32.mrb[10].mxu1 }
 0x104   : > { %v2512_v31 = vpop.f32.mrb[11].mxu0  ;;  %v2514_v32 = vpop.f32.mrb[11].mxu1 }
 0x109   : > { %v2516_v33 = vpop.f32.mrb[12].mxu0  ;;  %v2518_v34 = vpop.f32.mrb[12].mxu1 }
 0x10a   : > { %2933 = vst [vmem:[#allocation3_spill] sm:$0xff] %v2516_v33  ;;  %v2520_v35 = vpop.f32.mrb[13].mxu0  ;;  %v2522_v36 = vpop.f32.mrb[13].mxu1 }
 0x10b   : > { %2934 = vst [vmem:[#allocation4_spill] sm:$0xff] %v2520_v35  ;;  %v2524_v37 = vpop.f32.mrb[14].mxu0  ;;  %v2526_v38 = vpop.f32.mrb[14].mxu1 }
 0x10c   : > { %2935 = vst [vmem:[#allocation5_spill] sm:$0xff] %v2524_v37  ;;  %v2528_v39 = vpop.f32.mrb[15].mxu0  ;;  %v2530_v41 = vpop.f32.mrb[15].mxu1 }
 0x10d   : > { %2936 = vst [vmem:[#allocation6_spill] sm:$0xff] %v2528_v39 }
 0x111   : > { %v2532_v42 = vpop.f32.mrb[16].mxu0  ;;  %v2536_v44 = vpop.f32.mrb[16].mxu1 }
 0x112   : > { %v2538_v45 = vpop.f32.mrb[17].mxu0  ;;  %v2544_v48 = vpop.f32.mrb[17].mxu1  ;;  %v2945_v50 = vmax.f32 %v2468_v11, %v2532_v42 }
 0x113   : > { %v2546_v49 = vpop.f32.mrb[18].mxu0  ;;  %v2552_v52 = vpop.f32.mrb[18].mxu1  ;;  %v2947_v8 = vmax.f32 %v2472_v13, %v2538_v45 }
 0x114   : > { %v2554_v53 = vpop.f32.mrb[19].mxu0  ;;  %v2560_v56 = vpop.f32.mrb[19].mxu1  ;;  %v2949_v42 = vmax.f32 %v2476_v15, %v2546_v49 }
 0x119   : > { %v2564_v58 = vpop.f32.mrb[20].mxu0  ;;  %v2568_v60 = vpop.f32.mrb[20].mxu1 }
 0x11a   : > { %v2570_v61 = vpop.f32.mrb[21].mxu0  ;;  %v2576_v1 = vpop.f32.mrb[21].mxu1 }
 0x11b   : > { %v2578_v2 = vpop.f32.mrb[22].mxu0  ;;  %v2584_v5 = vpop.f32.mrb[22].mxu1 }
 0x11c   : > { %v2586_v6 = vpop.f32.mrb[23].mxu0  ;;  %v2592_v9 = vpop.f32.mrb[23].mxu1 }
 0x121   : > { %v2596_v63 = vpop.f32.mrb[24].mxu0  ;;  %v2600_v3 = vpop.f32.mrb[24].mxu1 }
 0x122   : > { %v2602_v62 = vpop.f32.mrb[25].mxu0  ;;  %v2608_v59 = vpop.f32.mrb[25].mxu1 }
 0x123   : > { %v2610_v57 = vpop.f32.mrb[26].mxu0  ;;  %v2616_v55 = vpop.f32.mrb[26].mxu1 }
 0x124   : > { %v2618_v54 = vpop.f32.mrb[27].mxu0  ;;  %v2624_v51 = vpop.f32.mrb[27].mxu1 }
 0x125   : > { %2937 = vst [vmem:[#allocation7_spill] sm:$0xff] %v2618_v54 }
 0x129   : > { %v2628_v47 = vpop.f32.mrb[28].mxu0  ;;  %v2632_v10 = vpop.f32.mrb[28].mxu1 }
 0x12a   : > { %2938 = vst [vmem:[#allocation8_spill] sm:$0xff] %v2628_v47  ;;  %2939 = vst [vmem:[#allocation9_spill] sm:$0xff] %v2632_v10  ;;  %v2634_v46 = vpop.f32.mrb[29].mxu0  ;;  %v2640_v43 = vpop.f32.mrb[29].mxu1 }
 0x12b   : > { %2940 = vst [vmem:[#allocation10_spill] sm:$0xff] %v2634_v46  ;;  %2941 = vst [vmem:[#allocation11_spill] sm:$0xff] %v2640_v43  ;;  %v2642_v54 = vpop.f32.mrb[30].mxu0  ;;  %v2648_v47 = vpop.f32.mrb[30].mxu1  ;;  %v2946_v43 = vmax.f32 %v2470_v12, %v2536_v44  ;;  %v2950_v44 = vmax.f32 %v2478_v23, %v2552_v52  ;;  %v2954_v52 = vmax.f32 %v2486_v18, %v2568_v60 }
 0x12c   : > { %2942 = vst [vmem:[#allocation12_spill] sm:$0xff] %v2642_v54  ;;  %v2650_v33 = vpop.f32.mrb[31].mxu0  ;;  %v2656_v46 = vpop.f32.mrb[31].mxu1 }
 0x12d   : > { %2943 = vst [vmem:[#allocation13_spill] sm:$0xff] %v2650_v33  ;;  %2944 = vst [vmem:[#allocation14_spill] sm:$0xff] %v2656_v46  ;;  %v2948_v46 = vmax.f32 %v2474_v14, %v2544_v48 }
 0x131   : > { %v1105_v10 = vpop.f32.mrb[32].mxu0  ;;  %v1158_v54 = vpop.f32.mrb[32].mxu1 }
 0x132   : > { %v2663_v4 = vmax.f32 %v2945_v50, %v1105_v10  ;;  %v1107_v37 = vpop.f32.mrb[33].mxu0  ;;  %v2668_v7 = vmax.f32 %v2946_v43, %v1158_v54  ;;  %v1160_v39 = vpop.f32.mrb[33].mxu1 }
 0x133   : > { %v2673_v33 = vmax.f32 %v2947_v8, %v1107_v37  ;;  %v1109_v35 = vpop.f32.mrb[34].mxu0  ;;  %v2678_v11 = vmax.f32 %v2948_v46, %v1160_v39  ;;  %v1162_v12 = vpop.f32.mrb[34].mxu1  ;;  %v2951_v37 = vmax.f32 %v2480_v16, %v2554_v53  ;;  %v2952_v39 = vmax.f32 %v2482_v0, %v2560_v56 }
 0x134   : > { %v2683_v50 = vmax.f32 %v2949_v42, %v1109_v35  ;;  %v1111_v43 = vpop.f32.mrb[35].mxu0  ;;  %v2688_v13 = vmax.f32 %v2950_v44, %v1162_v12  ;;  %v1164_v14 = vpop.f32.mrb[35].mxu1  ;;  %v2953_v35 = vmax.f32 %v2484_v17, %v2564_v58  ;;  %v2955_v53 = vmax.f32 %v2488_v40, %v2570_v61 }
 0x135   : > { %v2693_v45 = vmax.f32 %v2951_v37, %v1111_v43  ;;  %v2698_v46 = vmax.f32 %v2952_v39, %v1164_v14  ;;  %v2956_v8 = vmax.f32 %v2490_v19, %v2576_v1  ;;  %v2957_v58 = vmax.f32 %v2492_v20, %v2578_v2 }
 0x136   : > { %v2958_v42 = vmax.f32 %v2494_v21, %v2584_v5  ;;  %v2959_v61 = vmax.f32 %v2496_v22, %v2586_v6  ;;  %v2960_v1 = vmax.f32 %v2498_v24, %v2592_v9  ;;  %v2961_v2 = vmax.f32 %v2500_v25, %v2596_v63 }
 0x137   : > { %v2962_v37 = vmax.f32 %v2502_v26, %v2600_v3  ;;  %v2963_v6 = vmax.f32 %v2504_v27, %v2602_v62  ;;  %v2964_v39 = vmax.f32 %v2506_v28, %v2608_v59  ;;  %v2965_v63 = vmax.f32 %v2508_v29, %v2610_v57  ;;  %v2967_v62 = vld [vmem:[#allocation7_spill] sm:$0xff]  ;;  %v2780_v57 = vpop.permute.xlu0 %1786 }
 0x138   : > { %v2969_v59 = vmax.f32 %v2514_v32, %v2624_v51 }
 0x139   : > { %v1115_v15 = vpop.f32.mrb[36].mxu0  ;;  %v1168_v23 = vpop.f32.mrb[36].mxu1 }
 0x13a   : > { %v2703_v48 = vmax.f32 %v2953_v35, %v1115_v15  ;;  %v1117_v49 = vpop.f32.mrb[37].mxu0  ;;  %v2708_v16 = vmax.f32 %v2954_v52, %v1168_v23  ;;  %v1170_v0 = vpop.f32.mrb[37].mxu1  ;;  %v2966_v35 = vmax.f32 %v2510_v30, %v2616_v55  ;;  %v2968_v23 = vmax.f32 %v2512_v31, %v2967_v62  ;;  %v2973_v31 = vld [vmem:[#allocation9_spill] sm:$0xff]  ;;  %v2987_v62 = vld [vmem:[#allocation14_spill] sm:$0xff] }
 0x13b   : > { %v2713_v54 = vmax.f32 %v2955_v53, %v1117_v49  ;;  %v1119_v56 = vpop.f32.mrb[38].mxu0  ;;  %v2718_v17 = vmax.f32 %v2956_v8, %v1170_v0  ;;  %v1172_v18 = vpop.f32.mrb[38].mxu1  ;;  %v2970_v53 = vld [vmem:[#allocation3_spill] sm:$0xff]  ;;  %v2971_v0 = vld [vmem:[#allocation8_spill] sm:$0xff] }
 0x13c   : > { %v2723_v10 = vmax.f32 %v2957_v58, %v1119_v56  ;;  %v1121_v60 = vpop.f32.mrb[39].mxu0  ;;  %v2728_v40 = vmax.f32 %v2958_v42, %v1172_v18  ;;  %v1174_v19 = vpop.f32.mrb[39].mxu1  ;;  %v2972_v56 = vmax.f32 %v2970_v53, %v2971_v0  ;;  %v2974_v58 = vmax.f32 %v2518_v34, %v2973_v31  ;;  %v2976_v42 = vld [vmem:[#allocation10_spill] sm:$0xff] }
 0x13d   : > { %v2733_v12 = vmax.f32 %v2959_v61, %v1121_v60  ;;  %v2738_v43 = vmax.f32 %v2960_v1, %v1174_v19  ;;  %v2975_v60 = vld [vmem:[#allocation4_spill] sm:$0xff]  ;;  %v2978_v1 = vld [vmem:[#allocation11_spill] sm:$0xff]  ;;  %v2824_v53 = vpop.permute.xlu1 %1796 }
 0x13e   : > { %v2977_v32 = vmax.f32 %v2975_v60, %v2976_v42 }
 0x141   : > { %v1211_v20 = vpop.f32.mrb[40].mxu0  ;;  %v1264_v21 = vpop.f32.mrb[40].mxu1 }
 0x142   : > { %v2743_v44 = vmax.f32 %v2961_v2, %v1211_v20  ;;  %v1213_v5 = vpop.f32.mrb[41].mxu0  ;;  %v2748_v22 = vmax.f32 %v2962_v37, %v1264_v21  ;;  %v1266_v24 = vpop.f32.mrb[41].mxu1  ;;  %v2979_v20 = vmax.f32 %v2522_v36, %v2978_v1  ;;  %v2980_v21 = vld [vmem:[#allocation5_spill] sm:$0xff] }
 0x143   : > { %v2753_v14 = vmax.f32 %v2963_v6, %v1213_v5  ;;  %v1215_v9 = vpop.f32.mrb[42].mxu0  ;;  %v2758_v25 = vmax.f32 %v2964_v39, %v1266_v24  ;;  %v1268_v26 = vpop.f32.mrb[42].mxu1  ;;  %v2981_v5 = vld [vmem:[#allocation12_spill] sm:$0xff] }
 0x144   : > { %v2763_v15 = vmax.f32 %v2965_v63, %v1215_v9  ;;  %v1217_v3 = vpop.f32.mrb[43].mxu0  ;;  %v2768_v27 = vmax.f32 %v2966_v35, %v1268_v26  ;;  %v1270_v28 = vpop.f32.mrb[43].mxu1  ;;  %v2982_v37 = vmax.f32 %v2980_v21, %v2981_v5  ;;  %v2983_v9 = vmax.f32 %v2526_v38, %v2648_v47  ;;  %v2984_v63 = vld [vmem:[#allocation6_spill] sm:$0xff]  ;;  %v2985_v26 = vld [vmem:[#allocation13_spill] sm:$0xff] }
 0x145   : > { %v2773_v49 = vmax.f32 %v2968_v23, %v1217_v3  ;;  %v2778_v52 = vmax.f32 %v2969_v59, %v1270_v28  ;;  %v2986_v3 = vmax.f32 %v2984_v63, %v2985_v26  ;;  %v2988_v23 = vmax.f32 %v2530_v41, %v2987_v62  ;;  %v2822_v59 = vpop.permute.xlu0 %1791 }
 0x149   : > { %v1221_v29 = vpop.f32.mrb[44].mxu0  ;;  %v1274_v55 = vpop.f32.mrb[44].mxu1 }
 0x14a   : > { %v2785_v30 = vmax.f32 %v2972_v56, %v1221_v29  ;;  %v1223_v8 = vpop.f32.mrb[45].mxu0  ;;  %v2790_v18 = vmax.f32 %v2974_v58, %v1274_v55  ;;  %v1276_v61 = vpop.f32.mrb[45].mxu1 }
 0x14b   : > { %v2795_v51 = vmax.f32 %v2977_v32, %v1223_v8  ;;  %v1225_v19 = vpop.f32.mrb[46].mxu0  ;;  %v2800_v2 = vmax.f32 %v2979_v20, %v1276_v61  ;;  %v1278_v34 = vpop.f32.mrb[46].mxu1 }
 0x14c   : > { %v2805_v6 = vmax.f32 %v2982_v37, %v1225_v19  ;;  %v1227_v24 = vpop.f32.mrb[47].mxu0  ;;  %v2810_v39 = vmax.f32 %v2983_v9, %v1278_v34  ;;  %v1280_v36 = vpop.f32.mrb[47].mxu1 }
 0x14d   : > { %v2815_v35 = vmax.f32 %v2986_v3, %v1227_v24  ;;  %v2820_v28 = vmax.f32 %v2988_v23, %v1280_v36  ;;  %v2848_v3 = vpop.permute.xlu1 %1801 }
 0x151   : > { %v1510_v29 = vpop.f32.mrb[48].mxu0  ;;  %v1563_v47 = vpop.f32.mrb[48].mxu1 }
 0x152   : > { %v1688_v38 = vmax.f32 %v2663_v4, %v1510_v29  ;;  %v1512_v0 = vpop.f32.mrb[49].mxu0  ;;  %v1690_v56 = vmax.f32 %v2668_v7, %v1563_v47  ;;  %v1565_v8 = vpop.f32.mrb[49].mxu1 }
 0x153   : > { %v1689_v55 = vmax.f32 %v2673_v33, %v1512_v0  ;;  %v1514_v31 = vpop.f32.mrb[50].mxu0  ;;  %v1691_v58 = vmax.f32 %v2678_v11, %v1565_v8  ;;  %v1567_v42 = vpop.f32.mrb[50].mxu1 }
 0x154   : > { %v1804_v41 = vadd.f32 %v2780_v57, %v1688_v38  ;;  %v1696_v60 = vmax.f32 %v2683_v50, %v1514_v31  ;;  %v1516_v32 = vpop.f32.mrb[51].mxu0  ;;  %v1806_v61 = vadd.f32 %v2780_v57, %v1690_v56  ;;  %v1698_v19 = vmax.f32 %v2688_v13, %v1567_v42  ;;  %v1569_v33 = vpop.f32.mrb[51].mxu1 }
 0x155   : > { %v1805_v4 = vadd.f32 %v2780_v57, %v1689_v55  ;;  %v1697_v7 = vmax.f32 %v2693_v45, %v1516_v32  ;;  %v1807_v20 = vadd.f32 %v2780_v57, %v1691_v58  ;;  %v1699_v21 = vmax.f32 %v2698_v46, %v1569_v33 }
 0x156   : > { %v1836_v1 = vmax.f32 %v1804_v41, 0.0  ;;  %v1812_v11 = vadd.f32 %v2822_v59, %v1696_v60  ;;  %v1838_v50 = vmax.f32 %v1806_v61, 0.0  ;;  %v1814_v34 = vadd.f32 %v2822_v59, %v1698_v19 }
 0x157   : > { %v1837_v5 = vmax.f32 %v1805_v4, 0.0  ;;  %v1813_v37 = vadd.f32 %v2822_v59, %v1697_v7  ;;  %v1839_v13 = vmax.f32 %v1807_v20, 0.0  ;;  %v1815_v45 = vadd.f32 %v2822_v59, %v1699_v21 }
 0x158   : > { %v1844_v24 = vmax.f32 %v1812_v11, 0.0  ;;  %v1846_v63 = vmax.f32 %v1814_v34, 0.0 }
 0x159   : > { %v2210_v9 = vpack.c.bf16 %v1837_v5, %v1836_v1  ;;  %v1845_v46 = vmax.f32 %v1813_v37, 0.0  ;;  %v1520_v26 = vpop.f32.mrb[52].mxu0  ;;  %v2211_v36 = vpack.c.bf16 %v1839_v13, %v1838_v50  ;;  %v1847_v62 = vmax.f32 %v1815_v45, 0.0  ;;  %v1573_v29 = vpop.f32.mrb[52].mxu1 }
 0x15a   : > { %v1704_v23 = vmax.f32 %v2703_v48, %v1520_v26  ;;  %v1522_v38 = vpop.f32.mrb[53].mxu0  ;;  %v1706_v0 = vmax.f32 %v2708_v16, %v1573_v29  ;;  %v1575_v55 = vpop.f32.mrb[53].mxu1 }
 0x15b   : > { %1964 = vst [vmem:[%s2845_s6] sm:$0xff] %v2210_v9  ;;  %v2214_v47 = vpack.c.bf16 %v1845_v46, %v1844_v24  ;;  %v1705_v56 = vmax.f32 %v2713_v54, %v1522_v38  ;;  %v1524_v8 = vpop.f32.mrb[54].mxu0  ;;  %1965 = vst [vmem:[%s2845_s6 + $0x8] sm:$0xff] %v2211_v36  ;;  %v2215_v31 = vpack.c.bf16 %v1847_v62, %v1846_v63  ;;  %v1577_v60 = vpop.f32.mrb[54].mxu1 }
 0x15c   : > { %v1820_v41 = vadd.f32 %v2824_v53, %v1704_v23  ;;  %v1707_v58 = vmax.f32 %v2718_v17, %v1575_v55  ;;  %v1712_v48 = vmax.f32 %v2723_v10, %v1524_v8  ;;  %v1526_v42 = vpop.f32.mrb[55].mxu0  ;;  %v1822_v32 = vadd.f32 %v2824_v53, %v1706_v0  ;;  %v1579_v4 = vpop.f32.mrb[55].mxu1 }
 0x15d   : > { %1968 = vst [vmem:[%s2845_s6 + $0x20] sm:$0xff] %v2214_v47  ;;  %v1821_v16 = vadd.f32 %v2824_v53, %v1705_v56  ;;  %v1714_v54 = vmax.f32 %v2728_v40, %v1577_v60  ;;  %v1713_v61 = vmax.f32 %v2733_v12, %v1526_v42  ;;  %1969 = vst [vmem:[%s2845_s6 + $0x28] sm:$0xff] %v2215_v31 }
 0x15e   : > { %v1852_v19 = vmax.f32 %v1820_v41, 0.0  ;;  %v1823_v7 = vadd.f32 %v2824_v53, %v1707_v58  ;;  %v1715_v17 = vmax.f32 %v2738_v43, %v1579_v4  ;;  %v1828_v10 = vadd.f32 %v2848_v3, %v1712_v48 }
 0x15f   : > { %v1854_v33 = vmax.f32 %v1822_v32, 0.0  ;;  %v1853_v1 = vmax.f32 %v1821_v16, 0.0  ;;  %v1829_v20 = vadd.f32 %v2848_v3, %v1713_v61  ;;  %v1830_v21 = vadd.f32 %v2848_v3, %v1714_v54 }
 0x160   : > { %v1855_v11 = vmax.f32 %v1823_v7, 0.0  ;;  %v1831_v40 = vadd.f32 %v2848_v3, %v1715_v17  ;;  %v1860_v12 = vmax.f32 %v1828_v10, 0.0 }
 0x161   : > { %v2218_v50 = vpack.c.bf16 %v1853_v1, %v1852_v19  ;;  %v1861_v5 = vmax.f32 %v1829_v20, 0.0  ;;  %v1862_v37 = vmax.f32 %v1830_v21, 0.0  ;;  %v1616_v34 = vpop.f32.mrb[56].mxu0  ;;  %v1669_v24 = vpop.f32.mrb[56].mxu1 }
 0x162   : > { %v2219_v13 = vpack.c.bf16 %v1855_v11, %v1854_v33  ;;  %v1863_v43 = vmax.f32 %v1831_v40, 0.0  ;;  %v1692_v45 = vmax.f32 %v2743_v44, %v1616_v34  ;;  %v1618_v9 = vpop.f32.mrb[57].mxu0  ;;  %v1694_v63 = vmax.f32 %v2748_v22, %v1669_v24  ;;  %v1671_v36 = vpop.f32.mrb[57].mxu1 }
 0x163   : > { %1972 = vst [vmem:[%s2845_s6 + $0x40] sm:$0xff] %v2218_v50  ;;  %v2222_v46 = vpack.c.bf16 %v1861_v5, %v1860_v12  ;;  %v1693_v26 = vmax.f32 %v2753_v14, %v1618_v9  ;;  %v1620_v62 = vpop.f32.mrb[58].mxu0  ;;  %v1695_v38 = vmax.f32 %v2758_v25, %v1671_v36  ;;  %v1673_v47 = vpop.f32.mrb[58].mxu1 }
 0x164   : > { %1973 = vst [vmem:[%s2845_s6 + $0x48] sm:$0xff] %v2219_v13  ;;  %v2223_v23 = vpack.c.bf16 %v1863_v43, %v1862_v37  ;;  %v1808_v29 = vadd.f32 %v2780_v57, %v1692_v45  ;;  %v1700_v44 = vmax.f32 %v2763_v15, %v1620_v62  ;;  %v1622_v0 = vpop.f32.mrb[59].mxu0  ;;  %v1810_v56 = vadd.f32 %v2780_v57, %v1694_v63  ;;  %v1675_v8 = vpop.f32.mrb[59].mxu1 }
 0x165   : > { %1976 = vst [vmem:[%s2845_s6 + $0x60] sm:$0xff] %v2222_v46  ;;  %v1809_v22 = vadd.f32 %v2780_v57, %v1693_v26  ;;  %v1702_v14 = vmax.f32 %v2768_v27, %v1673_v47  ;;  %v1701_v55 = vmax.f32 %v2773_v49, %v1622_v0  ;;  %v1811_v41 = vadd.f32 %v2780_v57, %v1695_v38 }
 0x166   : > { %1977 = vst [vmem:[%s2845_s6 + $0x68] sm:$0xff] %v2223_v23  ;;  %v1840_v31 = vmax.f32 %v1808_v29, 0.0  ;;  %v1816_v25 = vadd.f32 %v2822_v59, %v1700_v44  ;;  %v1703_v15 = vmax.f32 %v2778_v52, %v1675_v8  ;;  %v1842_v58 = vmax.f32 %v1810_v56, 0.0 }
 0x167   : > { %v1841_v48 = vmax.f32 %v1809_v22, 0.0  ;;  %v1818_v60 = vadd.f32 %v2822_v59, %v1702_v14  ;;  %v1817_v42 = vadd.f32 %v2822_v59, %v1701_v55  ;;  %v1843_v32 = vmax.f32 %v1811_v41, 0.0 }
 0x168   : > { %v1848_v27 = vmax.f32 %v1816_v25, 0.0  ;;  %v1819_v49 = vadd.f32 %v2822_v59, %v1703_v15 }
 0x169   : > { %v2212_v16 = vpack.c.bf16 %v1841_v48, %v1840_v31  ;;  %v1850_v54 = vmax.f32 %v1818_v60, 0.0  ;;  %v1849_v61 = vmax.f32 %v1817_v42, 0.0  ;;  %v1626_v57 = vpop.f32.mrb[60].mxu0  ;;  %v2213_v4 = vpack.c.bf16 %v1843_v32, %v1842_v58  ;;  %v1679_v7 = vpop.f32.mrb[60].mxu1 }
 0x16a   : > { %v1851_v19 = vmax.f32 %v1819_v49, 0.0  ;;  %v1708_v52 = vmax.f32 %v2785_v30, %v1626_v57  ;;  %v1628_v17 = vpop.f32.mrb[61].mxu0  ;;  %v1710_v33 = vmax.f32 %v2790_v18, %v1679_v7  ;;  %v1681_v59 = vpop.f32.mrb[61].mxu1 }
 0x16b   : > { %1966 = vst [vmem:[%s2845_s6 + $0x10] sm:$0xff] %v2212_v16  ;;  %v2216_v10 = vpack.c.bf16 %v1849_v61, %v1848_v27  ;;  %v1709_v1 = vmax.f32 %v2795_v51, %v1628_v17  ;;  %v1630_v20 = vpop.f32.mrb[62].mxu0  ;;  %1967 = vst [vmem:[%s2845_s6 + $0x18] sm:$0xff] %v2213_v4  ;;  %v1711_v40 = vmax.f32 %v2800_v2, %v1681_v59  ;;  %v1683_v12 = vpop.f32.mrb[62].mxu1 }
 0x16c   : > { %v2217_v21 = vpack.c.bf16 %v1851_v19, %v1850_v54  ;;  %v1824_v11 = vadd.f32 %v2824_v53, %v1708_v52  ;;  %v1716_v30 = vmax.f32 %v2805_v6, %v1630_v20  ;;  %v1632_v50 = vpop.f32.mrb[63].mxu0  ;;  %v1826_v5 = vadd.f32 %v2824_v53, %v1710_v33  ;;  %v1685_v34 = vpop.f32.mrb[63].mxu1 }
 0x16d   : > { %1970 = vst [vmem:[%s2845_s6 + $0x30] sm:$0xff] %v2216_v10  ;;  %v1825_v18 = vadd.f32 %v2824_v53, %v1709_v1  ;;  %v1718_v51 = vmax.f32 %v2810_v39, %v1683_v12  ;;  %v1717_v37 = vmax.f32 %v2815_v35, %v1632_v50  ;;  %v1827_v43 = vadd.f32 %v2824_v53, %v1711_v40 }
 0x16e   : > { %1971 = vst [vmem:[%s2845_s6 + $0x38] sm:$0xff] %v2217_v21  ;;  %v1856_v13 = vmax.f32 %v1824_v11, 0.0  ;;  %v1832_v2 = vadd.f32 %v2848_v3, %v1716_v30  ;;  %v1719_v6 = vmax.f32 %v2820_v28, %v1685_v34  ;;  %v1858_v45 = vmax.f32 %v1826_v5, 0.0 }
 0x16f   : > { %v1857_v24 = vmax.f32 %v1825_v18, 0.0  ;;  %v1834_v9 = vadd.f32 %v2848_v3, %v1718_v51  ;;  %v1833_v39 = vadd.f32 %v2848_v3, %v1717_v37  ;;  %v1859_v35 = vmax.f32 %v1827_v43, 0.0 }
 0x170   : > { %v1864_v46 = vmax.f32 %v1832_v2, 0.0  ;;  %v1835_v63 = vadd.f32 %v2848_v3, %v1719_v6 }
 0x171   : > { %v2220_v26 = vpack.c.bf16 %v1857_v24, %v1856_v13  ;;  %v1866_v36 = vmax.f32 %v1834_v9, 0.0  ;;  %v1865_v53 = vmax.f32 %v1833_v39, 0.0  ;;  %v2221_v62 = vpack.c.bf16 %v1859_v35, %v1858_v45 }
 0x172   : > { %v1867_v23 = vmax.f32 %v1835_v63, 0.0 }
 0x173   : > { %1974 = vst [vmem:[%s2845_s6 + $0x50] sm:$0xff] %v2220_v26  ;;  %v2224_v29 = vpack.c.bf16 %v1865_v53, %v1864_v46  ;;  %1975 = vst [vmem:[%s2845_s6 + $0x58] sm:$0xff] %v2221_v62 }
 0x174   : > { %v2225_v28 = vpack.c.bf16 %v1867_v23, %v1866_v36 }
 0x175   : > { %1978 = vst [vmem:[%s2845_s6 + $0x70] sm:$0xff] %v2224_v29 }
 0x176   : > { %1979 = vst [vmem:[%s2845_s6 + $0x78] sm:$0xff] %v2225_v28 }
 0x177 PF: > { %s13_s12 = sadd.s32 1, %s2245_s12  }
 0x178   : > { %p10_p4 = scmp.ge.s32.totalorder %s13_s12, 4  }
 0x17a   :  { %12 = sbr.rel (!%p10_p4) target bundleno = 1 (0x1), region = 65 }

// kernel: symbol_classifier_forward.4
= control target key start
LH: loop header
LB: loop body
LE: loop exit
PB: predicated region body
PF: predicated region fallthrough
CT: control target
= control target key end

     0   :  { %s2723_s12 = smov 0   ;;  %s3174_s0 = inlined_call_operand.vmem [shape: bf16[2,4,288,256], index: 0, kind: input, shape index: {}]   ;;  %s3175_s1 = inlined_call_operand.vmem [shape: bf16[64,288], index: 1, kind: input, shape index: {}]   ;;  %s3176_s2 = inlined_call_operand.vmem [shape: f32[64,1], index: 2, kind: input, shape index: {}]   ;;  %s3177_s3 = inlined_call_operand.vmem [shape: bf16[2,64,256], index: 3, kind: output, shape index: {}]  }
   0x1 LB: > { %s2079_s13 = sadd.s32 4294967295, %s2700_s12   ;;  %p2083_p0 = scmp.ge.s32.totalorder %s2700_s12, 1  ;;  %s2700_s12 = sphi %s2723_s12, %s13_s12  }
   0x2   : > { %p137_p1 = scmp.lt.s32.totalorder %s2700_s12, 3 }
   0x4   : > { %p138_p2 = pnand %p2083_p0, %p137_p1 }
   0x5   : > { %p161_p3 = scmp.lt.s32.totalorder (!%p138_p2), %s2079_s13, 1  ;;  %v2734_v0 = vld [vmem:[%s3175_s1 + $0x4] ss:$12 sps:$4 sm:$0xff] (!%p138_p2)   ;;  %v2702_v1 = vmov (!%p138_p2), 0   ;;  %vm472_vm0 = vcmask (!%p138_p2), 261120  }
   0x6   : > { %141 = sbr.rel (%p138_p2) target bundleno = 460 (0x1cc), region = 32  ;;  %2460 = vset.pattern.permute.xlu0 (!%p138_p2), %v2702_v1  ;;  %2461 = vset.pattern.permute.xlu1 (!%p138_p2), %v2702_v1 }
   0x7   : > { %517 = vmatprep.mubr.bf16.mxu0 (!%p138_p2), %v2734_v0  ;;  %912 = vmatprep.mubr.bf16.mxu1 (!%p138_p2), %v2734_v0 }
   0xd   : > { %s3179_s13 = smov (!%p161_p3, %s2079_s13), 1 }
   0xe   : > { %s2450_s16 = smul.u32 1152, %s3179_s13 }
  0x10   : > { %s2746_s19 = scalar_lea.vmem %s3174_s0, %s2450_s16 }
  0x11   : > { %v2462_v2 = vld [vmem:[%s2746_s19 + $0x4] ss:$8 sps:$4 sm:$0xff]   ;;  %v2466_v4 = vld [vmem:[%s2746_s19] ss:$8 sps:$4 sm:$0xff]   ;;  %v2468_v6 = vld [vmem:[%s2746_s19 + $0x14] ss:$8 sps:$4 sm:$0xff]  }
  0x12   : > { %v2464_v3 = vld [vmem:[%s2746_s19 + $0x124] ss:$8 sps:$4 sm:$0xff]   ;;  %485 = vmatprep.subr.bf16.mxu0 %v2462_v2  ;;  %v2467_v5 = vld [vmem:[%s2746_s19 + $0x120] ss:$8 sps:$4 sm:$0xff]   ;;  %v2470_v7 = vld [vmem:[%s2746_s19 + $0x134] ss:$8 sps:$4 sm:$0xff]  }
  0x13   : > { %880 = vmatprep.subr.bf16.mxu1 %v2464_v3  ;;  %486 = vmatpush1.bf16.msra.mxu0 %v2466_v4  ;;  %v2472_v8 = vld [vmem:[%s2746_s19 + $0x10] ss:$8 sps:$4 sm:$0xff]   ;;  %v2474_v10 = vld [vmem:[%s2746_s19 + $0x24] ss:$8 sps:$4 sm:$0xff]   ;;  %v2478_v12 = vld [vmem:[%s2746_s19 + $0x20] ss:$8 sps:$4 sm:$0xff]  }
  0x14   : > { %881 = vmatpush1.bf16.msra.mxu1 %v2467_v5  ;;  %487 = vmatprep.subr.bf16.mxu0 %v2468_v6  ;;  %v2473_v9 = vld [vmem:[%s2746_s19 + $0x130] ss:$8 sps:$4 sm:$0xff]   ;;  %v2476_v11 = vld [vmem:[%s2746_s19 + $0x144] ss:$8 sps:$4 sm:$0xff]   ;;  %v2479_v13 = vld [vmem:[%s2746_s19 + $0x140] ss:$8 sps:$4 sm:$0xff]  }
  0x15   : > { %882 = vmatprep.subr.bf16.mxu1 %v2470_v7  ;;  %v2480_v14 = vld [vmem:[%s2746_s19 + $0x34] ss:$8 sps:$4 sm:$0xff]   ;;  %v2484_v16 = vld [vmem:[%s2746_s19 + $0x30] ss:$8 sps:$4 sm:$0xff]   ;;  %v2486_v18 = vld [vmem:[%s2746_s19 + $0x44] ss:$8 sps:$4 sm:$0xff]  }
  0x16   : > { %v2482_v15 = vld [vmem:[%s2746_s19 + $0x154] ss:$8 sps:$4 sm:$0xff]   ;;  %v2485_v17 = vld [vmem:[%s2746_s19 + $0x150] ss:$8 sps:$4 sm:$0xff]   ;;  %v2488_v19 = vld [vmem:[%s2746_s19 + $0x164] ss:$8 sps:$4 sm:$0xff]  }
  0x17   : > { %488 = vmatpush1.bf16.msra.mxu0 %v2472_v8  ;;  %v2490_v20 = vld [vmem:[%s2746_s19 + $0x40] ss:$8 sps:$4 sm:$0xff]   ;;  %v2492_v22 = vld [vmem:[%s2746_s19 + $0x54] ss:$8 sps:$4 sm:$0xff]   ;;  %v2496_v24 = vld [vmem:[%s2746_s19 + $0x50] ss:$8 sps:$4 sm:$0xff]  }
  0x18   : > { %883 = vmatpush1.bf16.msra.mxu1 %v2473_v9  ;;  %489 = vmatprep.subr.bf16.mxu0 %v2474_v10  ;;  %v2491_v21 = vld [vmem:[%s2746_s19 + $0x160] ss:$8 sps:$4 sm:$0xff]   ;;  %v2494_v23 = vld [vmem:[%s2746_s19 + $0x174] ss:$8 sps:$4 sm:$0xff]   ;;  %v2497_v25 = vld [vmem:[%s2746_s19 + $0x170] ss:$8 sps:$4 sm:$0xff]  }
  0x19   : > { %884 = vmatprep.subr.bf16.mxu1 %v2476_v11  ;;  %v2498_v26 = vld [vmem:[%s2746_s19 + $0x64] ss:$8 sps:$4 sm:$0xff]   ;;  %v2502_v28 = vld [vmem:[%s2746_s19 + $0x60] ss:$8 sps:$4 sm:$0xff]   ;;  %v2504_v30 = vld [vmem:[%s2746_s19 + $0x74] ss:$8 sps:$4 sm:$0xff]  }
  0x1a   : > { %v2500_v27 = vld [vmem:[%s2746_s19 + $0x184] ss:$8 sps:$4 sm:$0xff]   ;;  %v2503_v29 = vld [vmem:[%s2746_s19 + $0x180] ss:$8 sps:$4 sm:$0xff]   ;;  %v2506_v31 = vld [vmem:[%s2746_s19 + $0x194] ss:$8 sps:$4 sm:$0xff]  }
  0x1b   : > { %490 = vmatpush1.bf16.msra.mxu0 %v2478_v12  ;;  %v2508_v32 = vld [vmem:[%s2746_s19 + $0x70] ss:$8 sps:$4 sm:$0xff]   ;;  %v2510_v34 = vld [vmem:[%s2746_s19 + $0x84] ss:$8 sps:$4 sm:$0xff]   ;;  %v2514_v36 = vld [vmem:[%s2746_s19 + $0x80] ss:$8 sps:$4 sm:$0xff]  }
  0x1c   : > { %885 = vmatpush1.bf16.msra.mxu1 %v2479_v13  ;;  %491 = vmatprep.subr.bf16.mxu0 %v2480_v14  ;;  %v2509_v33 = vld [vmem:[%s2746_s19 + $0x190] ss:$8 sps:$4 sm:$0xff]   ;;  %v2512_v35 = vld [vmem:[%s2746_s19 + $0x1a4] ss:$8 sps:$4 sm:$0xff]   ;;  %v2515_v37 = vld [vmem:[%s2746_s19 + $0x1a0] ss:$8 sps:$4 sm:$0xff]  }
  0x1d   : > { %886 = vmatprep.subr.bf16.mxu1 %v2482_v15  ;;  %v2516_v38 = vld [vmem:[%s2746_s19 + $0x94] ss:$8 sps:$4 sm:$0xff]   ;;  %v2520_v40 = vld [vmem:[%s2746_s19 + $0x90] ss:$8 sps:$4 sm:$0xff]   ;;  %v2522_v42 = vld [vmem:[%s2746_s19 + $0xa4] ss:$8 sps:$4 sm:$0xff]  }
  0x1e   : > { %v2518_v39 = vld [vmem:[%s2746_s19 + $0x1b4] ss:$8 sps:$4 sm:$0xff]   ;;  %v2521_v41 = vld [vmem:[%s2746_s19 + $0x1b0] ss:$8 sps:$4 sm:$0xff]   ;;  %v2524_v43 = vld [vmem:[%s2746_s19 + $0x1c4] ss:$8 sps:$4 sm:$0xff]  }
  0x1f   : > { %492 = vmatpush1.bf16.msra.mxu0 %v2484_v16  ;;  %v2526_v44 = vld [vmem:[%s2746_s19 + $0xa0] ss:$8 sps:$4 sm:$0xff]   ;;  %v2528_v46 = vld [vmem:[%s2746_s19 + $0xb4] ss:$8 sps:$4 sm:$0xff]   ;;  %v2532_v48 = vld [vmem:[%s2746_s19 + $0xb0] ss:$8 sps:$4 sm:$0xff]  }
  0x20   : > { %887 = vmatpush1.bf16.msra.mxu1 %v2485_v17  ;;  %493 = vmatprep.subr.bf16.mxu0 %v2486_v18  ;;  %v2527_v45 = vld [vmem:[%s2746_s19 + $0x1c0] ss:$8 sps:$4 sm:$0xff]   ;;  %v2530_v47 = vld [vmem:[%s2746_s19 + $0x1d4] ss:$8 sps:$4 sm:$0xff]   ;;  %v2533_v49 = vld [vmem:[%s2746_s19 + $0x1d0] ss:$8 sps:$4 sm:$0xff]  }
  0x21   : > { %888 = vmatprep.subr.bf16.mxu1 %v2488_v19  ;;  %v2534_v50 = vld [vmem:[%s2746_s19 + $0xc4] ss:$8 sps:$4 sm:$0xff]   ;;  %v2538_v52 = vld [vmem:[%s2746_s19 + $0xc0] ss:$8 sps:$4 sm:$0xff]   ;;  %v2540_v54 = vld [vmem:[%s2746_s19 + $0xd4] ss:$8 sps:$4 sm:$0xff]  }
  0x22   : > { %v2536_v51 = vld [vmem:[%s2746_s19 + $0x1e4] ss:$8 sps:$4 sm:$0xff]   ;;  %v2539_v53 = vld [vmem:[%s2746_s19 + $0x1e0] ss:$8 sps:$4 sm:$0xff]   ;;  %v2542_v55 = vld [vmem:[%s2746_s19 + $0x1f4] ss:$8 sps:$4 sm:$0xff]  }
  0x23   : > { %494 = vmatpush1.bf16.msra.mxu0 %v2490_v20  ;;  %v2544_v56 = vld [vmem:[%s2746_s19 + $0xd0] ss:$8 sps:$4 sm:$0xff]   ;;  %v2546_v58 = vld [vmem:[%s2746_s19 + $0xe4] ss:$8 sps:$4 sm:$0xff]   ;;  %v2550_v60 = vld [vmem:[%s2746_s19 + $0xe0] ss:$8 sps:$4 sm:$0xff]  }
  0x24   : > { %889 = vmatpush1.bf16.msra.mxu1 %v2491_v21  ;;  %495 = vmatprep.subr.bf16.mxu0 %v2492_v22  ;;  %v2545_v57 = vld [vmem:[%s2746_s19 + $0x1f0] ss:$8 sps:$4 sm:$0xff]   ;;  %v2548_v59 = vld [vmem:[%s2746_s19 + $0x204] ss:$8 sps:$4 sm:$0xff]   ;;  %v2551_v61 = vld [vmem:[%s2746_s19 + $0x200] ss:$8 sps:$4 sm:$0xff]  }
  0x25   : > { %890 = vmatprep.subr.bf16.mxu1 %v2494_v23  ;;  %v2552_v62 = vld [vmem:[%s2746_s19 + $0xf4] ss:$8 sps:$4 sm:$0xff]   ;;  %v2556_v2 = vld [vmem:[%s2746_s19 + $0xf0] ss:$8 sps:$4 sm:$0xff]   ;;  %v2563_v4 = vld [vmem:[%s2746_s19 + $0x104] ss:$8 sps:$4 sm:$0xff]  }
  0x26   : > { %v2554_v63 = vld [vmem:[%s2746_s19 + $0x214] ss:$8 sps:$4 sm:$0xff]   ;;  %v2557_v3 = vld [vmem:[%s2746_s19 + $0x210] ss:$8 sps:$4 sm:$0xff]   ;;  %v2566_v5 = vld [vmem:[%s2746_s19 + $0x224] ss:$8 sps:$4 sm:$0xff]  }
  0x27   : > { %496 = vmatpush1.bf16.msra.mxu0 %v2496_v24  ;;  %v2817_v6 = vld [vmem:[%s3175_s1] ss:$12 sps:$4 sm:$0xff]   ;;  %v2824_v9 = vld [vmem:[%s3175_s1 + $0x1c] ss:$12 sps:$4 sm:$0xff]   ;;  %v2573_v12 = vld [vmem:[%s2746_s19 + $0x110] ss:$8 sps:$4 sm:$0xff]  }
  0x28   : > { %891 = vmatpush1.bf16.msra.mxu1 %v2497_v25  ;;  %497 = vmatprep.subr.bf16.mxu0 %v2498_v26  ;;  %v2561_v7 = vld [vmem:[%s2746_s19 + $0x100] ss:$8 sps:$4 sm:$0xff]   ;;  %v2575_v10 = vld [vmem:[%s2746_s19 + $0x114] ss:$8 sps:$4 sm:$0xff]   ;;  %v2576_v13 = vld [vmem:[%s2746_s19 + $0x230] ss:$8 sps:$4 sm:$0xff]  }
  0x29   : > { %892 = vmatprep.subr.bf16.mxu1 %v2500_v27  ;;  %v2564_v8 = vld [vmem:[%s2746_s19 + $0x220] ss:$8 sps:$4 sm:$0xff]   ;;  %v2578_v11 = vld [vmem:[%s2746_s19 + $0x234] ss:$8 sps:$4 sm:$0xff]   ;;  %v2584_v14 = vld [vmem:[%s2746_s19 + $0x244] ss:$8 sps:$4 sm:$0xff]  }
  0x2a   : > { %v2587_v15 = vld [vmem:[%s2746_s19 + $0x364] ss:$8 sps:$4 sm:$0xff]   ;;  %v2844_v17 = vld [vmem:[%s3175_s1 + $0x34] ss:$12 sps:$4 sm:$0xff]   ;;  %v2853_v18 = vld [vmem:[%s3175_s1 + $0x30] ss:$12 sps:$4 sm:$0xff]  }
  0x2b   : > { %498 = vmatpush1.bf16.msra.mxu0 %v2502_v28  ;;  %v2839_v16 = vld [vmem:[%s3175_s1 + $0x18] ss:$12 sps:$4 sm:$0xff]   ;;  %v2867_v20 = vld [vmem:[%s3175_s1 + $0x48] ss:$12 sps:$4 sm:$0xff]  }
  0x2c   : > { %893 = vmatpush1.bf16.msra.mxu1 %v2503_v29  ;;  %499 = vmatprep.subr.bf16.mxu0 %v2504_v30  ;;  %v2858_v19 = vld [vmem:[%s3175_s1 + $0x4c] ss:$12 sps:$4 sm:$0xff]   ;;  %v2582_v21 = vld [vmem:[%s2746_s19 + $0x240] ss:$8 sps:$4 sm:$0xff]   ;;  %v2591_v24 = vld [vmem:[%s2746_s19 + $0x254] ss:$8 sps:$4 sm:$0xff]  }
  0x2d   : > { %894 = vmatprep.subr.bf16.mxu1 %v2506_v31  ;;  %v2877_v22 = vld [vmem:[%s3175_s1 + $0x8] ss:$12 sps:$4 sm:$0xff]   ;;  %v2589_v26 = vld [vmem:[%s2746_s19 + $0x250] ss:$8 sps:$4 sm:$0xff]   ;;  %v188_v28 = vld [vmem:[%s3176_s2] sm:$0xff] }
  0x2e   : > { %v2585_v23 = vld [vmem:[%s2746_s19 + $0x360] ss:$8 sps:$4 sm:$0xff]   ;;  %v2594_v25 = vld [vmem:[%s2746_s19 + $0x374] ss:$8 sps:$4 sm:$0xff]   ;;  %v2592_v27 = vld [vmem:[%s2746_s19 + $0x370] ss:$8 sps:$4 sm:$0xff]   ;;  %1898 = vperm.xlu0 %2460, %v188_v28  }
  0x2f   : > { %500 = vmatpush1.bf16.msra.mxu0 %v2508_v32  ;;  %v190_v29 = vld [vmem:[%s3176_s2 + $0x10] sm:$0xff]  ;;  %v2597_v30 = vld [vmem:[%s2746_s19 + $0x264] ss:$8 sps:$4 sm:$0xff]  }
  0x30   : > { %895 = vmatpush1.bf16.msra.mxu1 %v2509_v33  ;;  %501 = vmatprep.subr.bf16.mxu0 %v2510_v34  ;;  %v2600_v31 = vld [vmem:[%s2746_s19 + $0x384] ss:$8 sps:$4 sm:$0xff]   ;;  %v2595_v33 = vld [vmem:[%s2746_s19 + $0x260] ss:$8 sps:$4 sm:$0xff]   ;;  %v2666_v28 = vld [vmem:[%s2746_s19 + $0x314] ss:$8 sps:$4 sm:$0xff]  }
  0x31   : > { %896 = vmatprep.subr.bf16.mxu1 %v2512_v35  ;;  %v2901_v32 = vld [vmem:[%s3175_s1 + $0x20] ss:$12 sps:$4 sm:$0xff]   ;;  %1908 = vperm.xlu1 %2461, %v190_v29   ;;  %v2604_v35 = vld [vmem:[%s2746_s19 + $0x274] ss:$8 sps:$4 sm:$0xff]  }
  0x32   : > { %v2598_v34 = vld [vmem:[%s2746_s19 + $0x380] ss:$8 sps:$4 sm:$0xff]   ;;  %v2669_v29 = vld [vmem:[%s2746_s19 + $0x434] ss:$8 sps:$4 sm:$0xff]  }
  0x33   : > { %502 = vmatpush1.bf16.msra.mxu0 %v2514_v36  ;;  %v2607_v36 = vld [vmem:[%s2746_s19 + $0x394] ss:$8 sps:$4 sm:$0xff]  }
  0x34   : > { %897 = vmatpush1.bf16.msra.mxu1 %v2515_v37  ;;  %503 = vmatprep.subr.bf16.mxu0 %v2516_v38  ;;  %v2602_v37 = vld [vmem:[%s2746_s19 + $0x270] ss:$8 sps:$4 sm:$0xff]  }
  0x35   : > { %898 = vmatprep.subr.bf16.mxu1 %v2518_v39  ;;  %v2605_v38 = vld [vmem:[%s2746_s19 + $0x390] ss:$8 sps:$4 sm:$0xff]   ;;  %v189_v39 = vld [vmem:[%s3176_s2 + $0x8] sm:$0xff] }
  0x36   : > { %1903 = vperm.xlu0 %2460, %v189_v39   ;;  %v2676_v39 = vld [vmem:[%s2746_s19 + $0x330] ss:$8 sps:$4 sm:$0xff]  }
  0x37   : > { %504 = vmatpush1.bf16.msra.mxu0 %v2520_v40  ;;  %v191_v40 = vld [vmem:[%s3176_s2 + $0x18] sm:$0xff] }
  0x38   : > { %899 = vmatpush1.bf16.msra.mxu1 %v2521_v41  ;;  %505 = vmatprep.subr.bf16.mxu0 %v2522_v42  ;;  %v2610_v41 = vld [vmem:[%s2746_s19 + $0x284] ss:$8 sps:$4 sm:$0xff]  }
  0x39   : > { %900 = vmatprep.subr.bf16.mxu1 %v2524_v43  ;;  %v2613_v42 = vld [vmem:[%s2746_s19 + $0x3a4] ss:$8 sps:$4 sm:$0xff]   ;;  %1913 = vperm.xlu1 %2461, %v191_v40   ;;  %v2679_v40 = vld [vmem:[%s2746_s19 + $0x450] ss:$8 sps:$4 sm:$0xff]  }
  0x3a   : > { %v2926_v43 = vld [vmem:[%s3175_s1 + $0x38] ss:$12 sps:$4 sm:$0xff]  }
  0x3b   : > { %506 = vmatpush1.bf16.msra.mxu0 %v2526_v44  ;;  %v2608_v44 = vld [vmem:[%s2746_s19 + $0x280] ss:$8 sps:$4 sm:$0xff]  }
  0x3c   : > { %901 = vmatpush1.bf16.msra.mxu1 %v2527_v45  ;;  %507 = vmatprep.subr.bf16.mxu0 %v2528_v46  ;;  %v2611_v45 = vld [vmem:[%s2746_s19 + $0x3a0] ss:$8 sps:$4 sm:$0xff]   ;;  %v2617_v46 = vld [vmem:[%s2746_s19 + $0x294] ss:$8 sps:$4 sm:$0xff]  }
  0x3d   : > { %902 = vmatprep.subr.bf16.mxu1 %v2530_v47  ;;  %v2620_v47 = vld [vmem:[%s2746_s19 + $0x3b4] ss:$8 sps:$4 sm:$0xff]  }
  0x3f   : > { %508 = vmatpush1.bf16.msra.mxu0 %v2532_v48  ;;  %v2615_v48 = vld [vmem:[%s2746_s19 + $0x290] ss:$8 sps:$4 sm:$0xff]  }
  0x40   : > { %903 = vmatpush1.bf16.msra.mxu1 %v2533_v49  ;;  %509 = vmatprep.subr.bf16.mxu0 %v2534_v50  ;;  %v2618_v49 = vld [vmem:[%s2746_s19 + $0x3b0] ss:$8 sps:$4 sm:$0xff]   ;;  %v193_v50 = vld [vmem:[%s3176_s2 + $0x28] sm:$0xff] }
  0x41   : > { %904 = vmatprep.subr.bf16.mxu1 %v2536_v51  ;;  %v192_v51 = vld [vmem:[%s3176_s2 + $0x20] sm:$0xff]  ;;  %1923 = vperm.xlu1 %2461, %v193_v50  }
  0x42   : > { %1918 = vperm.xlu0 %2460, %v192_v51  }
  0x43   : > { %510 = vmatpush1.bf16.msra.mxu0 %v2538_v52  ;;  %v2623_v52 = vld [vmem:[%s2746_s19 + $0x2a4] ss:$8 sps:$4 sm:$0xff]  }
  0x44   : > { %905 = vmatpush1.bf16.msra.mxu1 %v2539_v53  ;;  %511 = vmatprep.subr.bf16.mxu0 %v2540_v54  ;;  %v2626_v53 = vld [vmem:[%s2746_s19 + $0x3c4] ss:$8 sps:$4 sm:$0xff]   ;;  %v2951_v54 = vld [vmem:[%s3175_s1 + $0x50] ss:$12 sps:$4 sm:$0xff]  }
  0x45   : > { %906 = vmatprep.subr.bf16.mxu1 %v2542_v55  ;;  %v2621_v55 = vld [vmem:[%s2746_s19 + $0x2a0] ss:$8 sps:$4 sm:$0xff]  }
  0x47   : > { %512 = vmatpush1.bf16.msra.mxu0 %v2544_v56  ;;  %v2624_v56 = vld [vmem:[%s2746_s19 + $0x3c0] ss:$8 sps:$4 sm:$0xff]  }
  0x48   : > { %907 = vmatpush1.bf16.msra.mxu1 %v2545_v57  ;;  %513 = vmatprep.subr.bf16.mxu0 %v2546_v58  ;;  %v2630_v57 = vld [vmem:[%s2746_s19 + $0x2b4] ss:$8 sps:$4 sm:$0xff]  }
  0x49   : > { %908 = vmatprep.subr.bf16.mxu1 %v2548_v59  ;;  %v2633_v58 = vld [vmem:[%s2746_s19 + $0x3d4] ss:$8 sps:$4 sm:$0xff]   ;;  %v2628_v59 = vld [vmem:[%s2746_s19 + $0x2b0] ss:$8 sps:$4 sm:$0xff]  }
  0x4b   : > { %514 = vmatpush1.bf16.msra.mxu0 %v2550_v60  ;;  %v2631_v60 = vld [vmem:[%s2746_s19 + $0x3d0] ss:$8 sps:$4 sm:$0xff]  }
  0x4c   : > { %909 = vmatpush1.bf16.msra.mxu1 %v2551_v61  ;;  %515 = vmatprep.subr.bf16.mxu0 %v2552_v62  ;;  %v195_v61 = vld [vmem:[%s3176_s2 + $0x38] sm:$0xff]  ;;  %v194_v62 = vld [vmem:[%s3176_s2 + $0x30] sm:$0xff] }
  0x4d   : > { %910 = vmatprep.subr.bf16.mxu1 %v2554_v63  ;;  %v2636_v63 = vld [vmem:[%s2746_s19 + $0x2c4] ss:$8 sps:$4 sm:$0xff]   ;;  %1933 = vperm.xlu1 %2461, %v195_v61  }
  0x4e   : > { %1928 = vperm.xlu0 %2460, %v194_v62  }
  0x4f   : > { %516 = vmatpush1.bf16.msra.mxu0 %v2556_v2  ;;  %v2639_v2 = vld [vmem:[%s2746_s19 + $0x3e4] ss:$8 sps:$4 sm:$0xff]  }
  0x50   : > { %911 = vmatpush1.bf16.msra.mxu1 %v2557_v3  ;;  %558 = vmatprep.subr.bf16.mxu0 %v2563_v4  ;;  %v2634_v3 = vld [vmem:[%s2746_s19 + $0x2c0] ss:$8 sps:$4 sm:$0xff]  }
  0x51   : > { %953 = vmatprep.subr.bf16.mxu1 %v2566_v5  ;;  %v2637_v4 = vld [vmem:[%s2746_s19 + $0x3e0] ss:$8 sps:$4 sm:$0xff]   ;;  %v2642_v5 = vld [vmem:[%s2746_s19 + $0x2d4] ss:$8 sps:$4 sm:$0xff]  }
  0x52   : > { %518 = vmatmul.mubr.bf16.vlgmr.msra.gmra.mrb[0].mxu0 %v2817_v6 }
  0x53   : > { %913 = vmatmul.mubr.bf16.vlgmr.msra.gmra.mrb[0].mxu1 %v2817_v6  ;;  %559 = vmatpush1.bf16.msra.mxu0 %v2561_v7  ;;  %v2645_v7 = vld [vmem:[%s2746_s19 + $0x3f4] ss:$8 sps:$4 sm:$0xff]  }
  0x54   : > { %954 = vmatpush1.bf16.msra.mxu1 %v2564_v8  ;;  %527 = vmatprep.mubr.bf16.mxu0 %v2824_v9  ;;  %v2640_v8 = vld [vmem:[%s2746_s19 + $0x2d0] ss:$8 sps:$4 sm:$0xff]  }
  0x55   : > { %922 = vmatprep.mubr.bf16.mxu1 %v2824_v9  ;;  %560 = vmatprep.subr.bf16.mxu0 %v2575_v10  ;;  %v2648_v10 = vld [vmem:[%s2746_s19 + $0x2e4] ss:$8 sps:$4 sm:$0xff]  }
  0x56   : > { %955 = vmatprep.subr.bf16.mxu1 %v2578_v11  ;;  %v2651_v11 = vld [vmem:[%s2746_s19 + $0x404] ss:$8 sps:$4 sm:$0xff]  }
  0x57   : > { %561 = vmatpush1.bf16.msra.mxu0 %v2573_v12  ;;  %v2646_v12 = vld [vmem:[%s2746_s19 + $0x2e0] ss:$8 sps:$4 sm:$0xff]  }
  0x58   : > { %956 = vmatpush1.bf16.msra.mxu1 %v2576_v13  ;;  %1291 = vmatprep.subr.bf16.mxu0 %v2584_v14  ;;  %v2649_v13 = vld [vmem:[%s2746_s19 + $0x400] ss:$8 sps:$4 sm:$0xff]   ;;  %v2654_v14 = vld [vmem:[%s2746_s19 + $0x2f4] ss:$8 sps:$4 sm:$0xff]  }
  0x59   : > { %1702 = vmatprep.subr.bf16.mxu1 %v2587_v15  ;;  %v2657_v15 = vld [vmem:[%s2746_s19 + $0x414] ss:$8 sps:$4 sm:$0xff]  }
  0x5a   : > { %528 = vmatmul.mubr.bf16.gmra.mrb[4].mxu0 %v2839_v16 }
  0x5b   : > { %923 = vmatmul.mubr.bf16.gmra.mrb[4].mxu1 %v2839_v16  ;;  %537 = vmatprep.mubr.bf16.mxu0 %v2844_v17 }
  0x5c   : > { %932 = vmatprep.mubr.bf16.mxu1 %v2844_v17 }
  0x62   : > { %538 = vmatmul.mubr.bf16.gmra.mrb[8].mxu0 %v2853_v18 }
  0x63   : > { %933 = vmatmul.mubr.bf16.gmra.mrb[8].mxu1 %v2853_v18  ;;  %547 = vmatprep.mubr.bf16.mxu0 %v2858_v19 }
  0x64   : > { %942 = vmatprep.mubr.bf16.mxu1 %v2858_v19 }
  0x6a   : > { %548 = vmatmul.mubr.bf16.gmra.mrb[12].mxu0 %v2867_v20 }
  0x6b   : > { %943 = vmatmul.mubr.bf16.gmra.mrb[12].mxu1 %v2867_v20  ;;  %590 = vmatprep.mubr.bf16.mxu0 %v2702_v1 }
  0x6c   : > { %985 = vmatprep.mubr.bf16.mxu1 %v2702_v1 }
  0x72   : > { %2135 = vmatmul.mubr.msk.bf16.vlgmr.msra.gmra.mrb[0].mxu0 %vm472_vm0, %v2877_v22 }
  0x73   : > { %2211 = vmatmul.mubr.msk.bf16.vlgmr.msra.gmra.mrb[0].mxu1 %vm472_vm0, %v2877_v22  ;;  %1292 = vmatpush1.bf16.msra.mxu0 %v2582_v21  ;;  %v2652_v21 = vld [vmem:[%s2746_s19 + $0x2f0] ss:$8 sps:$4 sm:$0xff]  }
  0x74   : > { %1703 = vmatpush1.bf16.msra.mxu1 %v2585_v23  ;;  %1293 = vmatprep.subr.bf16.mxu0 %v2591_v24  ;;  %v2655_v23 = vld [vmem:[%s2746_s19 + $0x410] ss:$8 sps:$4 sm:$0xff]   ;;  %v2660_v24 = vld [vmem:[%s2746_s19 + $0x304] ss:$8 sps:$4 sm:$0xff]  }
  0x75   : > { %1704 = vmatprep.subr.bf16.mxu1 %v2594_v25  ;;  %600 = vmatprep.mubr.bf16.mxu0 %v2702_v1  ;;  %v2663_v25 = vld [vmem:[%s2746_s19 + $0x424] ss:$8 sps:$4 sm:$0xff]  }
  0x76   : > { %995 = vmatprep.mubr.bf16.mxu1 %v2702_v1 }
  0x77   : > { %1294 = vmatpush1.bf16.msra.mxu0 %v2589_v26  ;;  %v2658_v26 = vld [vmem:[%s2746_s19 + $0x300] ss:$8 sps:$4 sm:$0xff]  }
  0x78   : > { %1705 = vmatpush1.bf16.msra.mxu1 %v2592_v27  ;;  %1295 = vmatprep.subr.bf16.mxu0 %v2597_v30  ;;  %v2661_v27 = vld [vmem:[%s2746_s19 + $0x420] ss:$8 sps:$4 sm:$0xff]   ;;  %v2664_v30 = vld [vmem:[%s2746_s19 + $0x310] ss:$8 sps:$4 sm:$0xff]  }
  0x79   : > { %1706 = vmatprep.subr.bf16.mxu1 %v2600_v31  ;;  %v2667_v31 = vld [vmem:[%s2746_s19 + $0x430] ss:$8 sps:$4 sm:$0xff]  }
  0x7a   : > { %2136 = vmatmul.mubr.msk.bf16.gmra.mrb[4].mxu0 %vm472_vm0, %v2901_v32 }
  0x7b   : > { %2212 = vmatmul.mubr.msk.bf16.gmra.mrb[4].mxu1 %vm472_vm0, %v2901_v32  ;;  %1296 = vmatpush1.bf16.msra.mxu0 %v2595_v33  ;;  %v2672_v33 = vld [vmem:[%s2746_s19 + $0x324] ss:$8 sps:$4 sm:$0xff]  }
  0x7c   : > { %1707 = vmatpush1.bf16.msra.mxu1 %v2598_v34  ;;  %1297 = vmatprep.subr.bf16.mxu0 %v2604_v35  ;;  %v2675_v34 = vld [vmem:[%s2746_s19 + $0x444] ss:$8 sps:$4 sm:$0xff]   ;;  %v2670_v35 = vld [vmem:[%s2746_s19 + $0x320] ss:$8 sps:$4 sm:$0xff]  }
  0x7d   : > { %1708 = vmatprep.subr.bf16.mxu1 %v2607_v36  ;;  %610 = vmatprep.mubr.bf16.mxu0 %v2702_v1  ;;  %v2673_v36 = vld [vmem:[%s2746_s19 + $0x440] ss:$8 sps:$4 sm:$0xff]  }
  0x7e   : > { %1005 = vmatprep.mubr.bf16.mxu1 %v2702_v1 }
  0x7f   : > { %1298 = vmatpush1.bf16.msra.mxu0 %v2602_v37  ;;  %v2678_v37 = vld [vmem:[%s2746_s19 + $0x334] ss:$8 sps:$4 sm:$0xff]  }
  0x80   : > { %1709 = vmatpush1.bf16.msra.mxu1 %v2605_v38  ;;  %1299 = vmatprep.subr.bf16.mxu0 %v2610_v41  ;;  %v2681_v38 = vld [vmem:[%s2746_s19 + $0x454] ss:$8 sps:$4 sm:$0xff]   ;;  %v2684_v41 = vld [vmem:[%s2746_s19 + $0x344] ss:$8 sps:$4 sm:$0xff]  }
  0x81   : > { %1710 = vmatprep.subr.bf16.mxu1 %v2613_v42  ;;  %v2687_v42 = vld [vmem:[%s2746_s19 + $0x464] ss:$8 sps:$4 sm:$0xff]  }
  0x82   : > { %2137 = vmatmul.mubr.msk.bf16.gmra.mrb[8].mxu0 %vm472_vm0, %v2926_v43 }
  0x83   : > { %2213 = vmatmul.mubr.msk.bf16.gmra.mrb[8].mxu1 %vm472_vm0, %v2926_v43  ;;  %1300 = vmatpush1.bf16.msra.mxu0 %v2608_v44  ;;  %v2682_v44 = vld [vmem:[%s2746_s19 + $0x340] ss:$8 sps:$4 sm:$0xff]  }
  0x84   : > { %1711 = vmatpush1.bf16.msra.mxu1 %v2611_v45  ;;  %1301 = vmatprep.subr.bf16.mxu0 %v2617_v46  ;;  %v2685_v45 = vld [vmem:[%s2746_s19 + $0x460] ss:$8 sps:$4 sm:$0xff]   ;;  %v2690_v46 = vld [vmem:[%s2746_s19 + $0x354] ss:$8 sps:$4 sm:$0xff]  }
  0x85   : > { %1712 = vmatprep.subr.bf16.mxu1 %v2620_v47  ;;  %620 = vmatprep.mubr.bf16.mxu0 %v2702_v1  ;;  %v2693_v47 = vld [vmem:[%s2746_s19 + $0x474] ss:$8 sps:$4 sm:$0xff]  }
  0x86   : > { %1015 = vmatprep.mubr.bf16.mxu1 %v2702_v1 }
  0x87   : > { %1302 = vmatpush1.bf16.msra.mxu0 %v2615_v48  ;;  %v2688_v48 = vld [vmem:[%s2746_s19 + $0x350] ss:$8 sps:$4 sm:$0xff]  }
  0x88   : > { %1713 = vmatpush1.bf16.msra.mxu1 %v2618_v49  ;;  %1303 = vmatprep.subr.bf16.mxu0 %v2623_v52  ;;  %v2691_v49 = vld [vmem:[%s2746_s19 + $0x470] ss:$8 sps:$4 sm:$0xff]  }
  0x89   : > { %1714 = vmatprep.subr.bf16.mxu1 %v2626_v53 }
  0x8a   : > { %2138 = vmatmul.mubr.msk.bf16.gmra.mrb[12].mxu0 %vm472_vm0, %v2951_v54 }
  0x8b   : > { %2214 = vmatmul.mubr.msk.bf16.gmra.mrb[12].mxu1 %vm472_vm0, %v2951_v54  ;;  %1304 = vmatpush1.bf16.msra.mxu0 %v2621_v55 }
  0x8c   : > { %1715 = vmatpush1.bf16.msra.mxu1 %v2624_v56  ;;  %1305 = vmatprep.subr.bf16.mxu0 %v2630_v57 }
  0x8d   : > { %1716 = vmatprep.subr.bf16.mxu1 %v2633_v58  ;;  %1323 = vmatprep.mubr.bf16.mxu0 %v2734_v0 }
  0x8e   : > { %1734 = vmatprep.mubr.bf16.mxu1 %v2734_v0  ;;  %v2643_v0 = vld [vmem:[%s2746_s19 + $0x3f0] ss:$8 sps:$4 sm:$0xff]   ;;  %s2377_s19 = sshll.u32 %s3179_s13, 6 }
  0x8f   : > { %1306 = vmatpush1.bf16.msra.mxu0 %v2628_v59  ;;  %s3125_s9 = scalar_lea.vmem %s3177_s3, %s2377_s19 }
  0x90   : > { %1717 = vmatpush1.bf16.msra.mxu1 %v2631_v60  ;;  %1307 = vmatprep.subr.bf16.mxu0 %v2636_v63 }
  0x91   : > { %1718 = vmatprep.subr.bf16.mxu1 %v2639_v2 }
  0x93   : > { %1308 = vmatpush1.bf16.msra.mxu0 %v2634_v3 }
  0x94   : > { %1719 = vmatpush1.bf16.msra.mxu1 %v2637_v4  ;;  %1309 = vmatprep.subr.bf16.mxu0 %v2642_v5 }
  0x95   : > { %1720 = vmatprep.subr.bf16.mxu1 %v2645_v7 }
  0x97   : > { %1310 = vmatpush1.bf16.msra.mxu0 %v2640_v8 }
  0x98   : > { %1721 = vmatpush1.bf16.msra.mxu1 %v2643_v0  ;;  %1311 = vmatprep.subr.bf16.mxu0 %v2648_v10 }
  0x99   : > { %1722 = vmatprep.subr.bf16.mxu1 %v2651_v11 }
  0x9b   : > { %1312 = vmatpush1.bf16.msra.mxu0 %v2646_v12 }
  0x9c   : > { %1723 = vmatpush1.bf16.msra.mxu1 %v2649_v13  ;;  %1313 = vmatprep.subr.bf16.mxu0 %v2654_v14 }
  0x9d   : > { %1724 = vmatprep.subr.bf16.mxu1 %v2657_v15 }
  0x9f   : > { %1314 = vmatpush1.bf16.msra.mxu0 %v2652_v21 }
  0xa0   : > { %1725 = vmatpush1.bf16.msra.mxu1 %v2655_v23  ;;  %1315 = vmatprep.subr.bf16.mxu0 %v2660_v24 }
  0xa1   : > { %1726 = vmatprep.subr.bf16.mxu1 %v2663_v25 }
  0xa3   : > { %1316 = vmatpush1.bf16.msra.mxu0 %v2658_v26 }
  0xa4   : > { %1727 = vmatpush1.bf16.msra.mxu1 %v2661_v27  ;;  %1317 = vmatprep.subr.bf16.mxu0 %v2666_v28 }
  0xa5   : > { %1728 = vmatprep.subr.bf16.mxu1 %v2669_v29 }
  0xa7   : > { %1318 = vmatpush1.bf16.msra.mxu0 %v2664_v30 }
  0xa8   : > { %1729 = vmatpush1.bf16.msra.mxu1 %v2667_v31  ;;  %1319 = vmatprep.subr.bf16.mxu0 %v2672_v33 }
  0xa9   : > { %1730 = vmatprep.subr.bf16.mxu1 %v2675_v34 }
  0xab   : > { %1320 = vmatpush1.bf16.msra.mxu0 %v2670_v35 }
  0xac   : > { %1731 = vmatpush1.bf16.msra.mxu1 %v2673_v36  ;;  %1321 = vmatprep.subr.bf16.mxu0 %v2678_v37 }
  0xad   : > { %1732 = vmatprep.subr.bf16.mxu1 %v2681_v38  ;;  %v1899_v33 = vpop.permute.xlu0 %1898 }
  0xaf   : > { %1322 = vmatpush1.bf16.msra.mxu0 %v2676_v39 }
  0xb0   : > { %1733 = vmatpush1.bf16.msra.mxu1 %v2679_v40  ;;  %1364 = vmatprep.subr.bf16.mxu0 %v2684_v41 }
  0xb1   : > { %1775 = vmatprep.subr.bf16.mxu1 %v2687_v42 }
  0xb2   : > { %1324 = vmatmul.mubr.bf16.vlgmr.msra.gmra.mrb[16].mxu0 %v2817_v6 }
  0xb3   : > { %1735 = vmatmul.mubr.bf16.vlgmr.msra.gmra.mrb[16].mxu1 %v2817_v6  ;;  %1365 = vmatpush1.bf16.msra.mxu0 %v2682_v44 }
  0xb4   : > { %1776 = vmatpush1.bf16.msra.mxu1 %v2685_v45  ;;  %1333 = vmatprep.mubr.bf16.mxu0 %v2824_v9 }
  0xb5   : > { %1744 = vmatprep.mubr.bf16.mxu1 %v2824_v9  ;;  %1366 = vmatprep.subr.bf16.mxu0 %v2690_v46 }
  0xb6   : > { %1777 = vmatprep.subr.bf16.mxu1 %v2693_v47 }
  0xb7   : > { %1367 = vmatpush1.bf16.msra.mxu0 %v2688_v48 }
  0xb8   : > { %1778 = vmatpush1.bf16.msra.mxu1 %v2691_v49  ;;  %v1904_v49 = vpop.permute.xlu0 %1903 }
  0xba   : > { %1334 = vmatmul.mubr.bf16.gmra.mrb[20].mxu0 %v2839_v16 }
  0xbb   : > { %1745 = vmatmul.mubr.bf16.gmra.mrb[20].mxu1 %v2839_v16  ;;  %1343 = vmatprep.mubr.bf16.mxu0 %v2844_v17 }
  0xbc   : > { %1754 = vmatprep.mubr.bf16.mxu1 %v2844_v17 }
  0xc2   : > { %1344 = vmatmul.mubr.bf16.gmra.mrb[24].mxu0 %v2853_v18 }
  0xc3   : > { %1755 = vmatmul.mubr.bf16.gmra.mrb[24].mxu1 %v2853_v18  ;;  %1353 = vmatprep.mubr.bf16.mxu0 %v2858_v19 }
  0xc4   : > { %1764 = vmatprep.mubr.bf16.mxu1 %v2858_v19 }
  0xca   : > { %1354 = vmatmul.mubr.bf16.gmra.mrb[28].mxu0 %v2867_v20 }
  0xcb   : > { %1765 = vmatmul.mubr.bf16.gmra.mrb[28].mxu1 %v2867_v20  ;;  %1396 = vmatprep.mubr.bf16.mxu0 %v2702_v1 }
  0xcc   : > { %1807 = vmatprep.mubr.bf16.mxu1 %v2702_v1 }
  0xd2   : > { %2287 = vmatmul.mubr.msk.bf16.vlgmr.msra.gmra.mrb[16].mxu0 %vm472_vm0, %v2877_v22 }
  0xd3   : > { %2363 = vmatmul.mubr.msk.bf16.vlgmr.msra.gmra.mrb[16].mxu1 %vm472_vm0, %v2877_v22  ;;  %1406 = vmatprep.mubr.bf16.mxu0 %v2702_v1 }
  0xd4   : > { %1817 = vmatprep.mubr.bf16.mxu1 %v2702_v1 }
  0xda   : > { %2288 = vmatmul.mubr.msk.bf16.gmra.mrb[20].mxu0 %vm472_vm0, %v2901_v32 }
  0xdb   : > { %2364 = vmatmul.mubr.msk.bf16.gmra.mrb[20].mxu1 %vm472_vm0, %v2901_v32  ;;  %1416 = vmatprep.mubr.bf16.mxu0 %v2702_v1 }
  0xdc   : > { %1827 = vmatprep.mubr.bf16.mxu1 %v2702_v1 }
  0xe2   : > { %2289 = vmatmul.mubr.msk.bf16.gmra.mrb[24].mxu0 %vm472_vm0, %v2926_v43 }
  0xe3   : > { %2365 = vmatmul.mubr.msk.bf16.gmra.mrb[24].mxu1 %vm472_vm0, %v2926_v43  ;;  %1426 = vmatprep.mubr.bf16.mxu0 %v2702_v1 }
  0xe4   : > { %1837 = vmatprep.mubr.bf16.mxu1 %v2702_v1 }
  0xea   : > { %2290 = vmatmul.mubr.msk.bf16.gmra.mrb[28].mxu0 %vm472_vm0, %v2951_v54 }
  0xeb   : > { %2366 = vmatmul.mubr.msk.bf16.gmra.mrb[28].mxu1 %vm472_vm0, %v2951_v54 }
 0x145   : > { %v592_v6 = vpop.f32.mrb[0].mxu0 }
 0x146   : > { %v987_v9 = vpop.f32.mrb[0].mxu1  ;;  %v594_v17 = vpop.f32.mrb[1].mxu0 }
 0x147   : > { %v1026_v16 = vmax.f32 %v592_v6, %v987_v9  ;;  %v989_v18 = vpop.f32.mrb[1].mxu1  ;;  %v596_v20 = vpop.f32.mrb[2].mxu0 }
 0x148   : > { %v1027_v19 = vmax.f32 %v594_v17, %v989_v18  ;;  %v991_v22 = vpop.f32.mrb[2].mxu1  ;;  %v598_v43 = vpop.f32.mrb[3].mxu0 }
 0x149   : > { %v1028_v32 = vmax.f32 %v596_v20, %v991_v22  ;;  %v993_v50 = vpop.f32.mrb[3].mxu1 }
 0x14a   : > { %v1029_v51 = vmax.f32 %v598_v43, %v993_v50 }
 0x14d   : > { %v3049_v52 = vpop.f32.mrb[4].mxu0 }
 0x14e   : > { %v3051_v1 = vpop.f32.mrb[4].mxu1  ;;  %v3055_v54 = vpop.f32.mrb[5].mxu0 }
 0x14f   : > { %v1030_v53 = vmax.f32 %v3049_v52, %v3051_v1  ;;  %v3057_v55 = vpop.f32.mrb[5].mxu1  ;;  %v3061_v57 = vpop.f32.mrb[6].mxu0 }
 0x150   : > { %v1031_v56 = vmax.f32 %v3055_v54, %v3057_v55  ;;  %v3063_v58 = vpop.f32.mrb[6].mxu1  ;;  %v3067_v60 = vpop.f32.mrb[7].mxu0 }
 0x151   : > { %v1032_v59 = vmax.f32 %v3061_v57, %v3063_v58  ;;  %v3069_v61 = vpop.f32.mrb[7].mxu1 }
 0x152   : > { %v1033_v62 = vmax.f32 %v3067_v60, %v3069_v61 }
 0x155   : > { %v3073_v63 = vpop.f32.mrb[8].mxu0 }
 0x156   : > { %v3075_v2 = vpop.f32.mrb[8].mxu1  ;;  %v3079_v4 = vpop.f32.mrb[9].mxu0 }
 0x157   : > { %v1034_v3 = vmax.f32 %v3073_v63, %v3075_v2  ;;  %v3081_v5 = vpop.f32.mrb[9].mxu1  ;;  %v3085_v8 = vpop.f32.mrb[10].mxu0 }
 0x158   : > { %v1035_v7 = vmax.f32 %v3079_v4, %v3081_v5  ;;  %v3087_v0 = vpop.f32.mrb[10].mxu1  ;;  %v3091_v11 = vpop.f32.mrb[11].mxu0 }
 0x159   : > { %v1036_v10 = vmax.f32 %v3085_v8, %v3087_v0  ;;  %v3093_v12 = vpop.f32.mrb[11].mxu1  ;;  %v1919_v2 = vpop.permute.xlu0 %1918 }
 0x15a   : > { %v1037_v13 = vmax.f32 %v3091_v11, %v3093_v12 }
 0x15d   : > { %v3097_v14 = vpop.f32.mrb[12].mxu0 }
 0x15e   : > { %v3099_v15 = vpop.f32.mrb[12].mxu1  ;;  %v3103_v23 = vpop.f32.mrb[13].mxu0 }
 0x15f   : > { %v1038_v21 = vmax.f32 %v3097_v14, %v3099_v15  ;;  %v3105_v24 = vpop.f32.mrb[13].mxu1  ;;  %v3109_v26 = vpop.f32.mrb[14].mxu0 }
 0x160   : > { %v1039_v25 = vmax.f32 %v3103_v23, %v3105_v24  ;;  %v3111_v27 = vpop.f32.mrb[14].mxu1  ;;  %v3115_v29 = vpop.f32.mrb[15].mxu0 }
 0x161   : > { %v1040_v28 = vmax.f32 %v3109_v26, %v3111_v27  ;;  %v3117_v30 = vpop.f32.mrb[15].mxu1  ;;  %v1929_v15 = vpop.permute.xlu0 %1928 }
 0x162   : > { %v1041_v31 = vmax.f32 %v3115_v29, %v3117_v30 }
 0x1a5   : > { %v1398_v34 = vpop.f32.mrb[16].mxu0 }
 0x1a6   : > { %v1809_v35 = vpop.f32.mrb[16].mxu1  ;;  %v1437_v36 = vmax.f32 %v1026_v16, %v1398_v34  ;;  %v1400_v37 = vpop.f32.mrb[17].mxu0 }
 0x1a7   : > { %v1811_v38 = vpop.f32.mrb[17].mxu1  ;;  %v1438_v39 = vmax.f32 %v1027_v19, %v1400_v37  ;;  %v1402_v40 = vpop.f32.mrb[18].mxu0 }
 0x1a8   : > { %v1813_v41 = vpop.f32.mrb[18].mxu1  ;;  %v1848_v42 = vmax.f32 %v1437_v36, %v1809_v35  ;;  %v1439_v44 = vmax.f32 %v1028_v32, %v1402_v40  ;;  %v1404_v45 = vpop.f32.mrb[19].mxu0 }
 0x1a9   : > { %v1815_v46 = vpop.f32.mrb[19].mxu1  ;;  %v1849_v47 = vmax.f32 %v1438_v39, %v1811_v38  ;;  %v1440_v48 = vmax.f32 %v1029_v51, %v1404_v45  ;;  %v1909_v16 = vpop.permute.xlu1 %1908 }
 0x1aa   : > { %v1936_v6 = vadd.f32 %v1899_v33, %v1848_v42  ;;  %v1850_v9 = vmax.f32 %v1439_v44, %v1813_v41 }
 0x1ab   : > { %v1937_v17 = vadd.f32 %v1899_v33, %v1849_v47  ;;  %v1851_v18 = vmax.f32 %v1440_v48, %v1815_v46 }
 0x1ac   : > { %v1952_v20 = vmax.f32 %v1936_v6, 0.0  ;;  %v1938_v22 = vadd.f32 %v1904_v49, %v1850_v9 }
 0x1ad   : > { %v1953_v43 = vmax.f32 %v1937_v17, 0.0  ;;  %v1939_v50 = vadd.f32 %v1904_v49, %v1851_v18  ;;  %v1408_v19 = vpop.f32.mrb[20].mxu0 }
 0x1ae   : > { %v1819_v34 = vpop.f32.mrb[20].mxu1  ;;  %v1954_v32 = vmax.f32 %v1938_v22, 0.0  ;;  %v1441_v51 = vmax.f32 %v1030_v53, %v1408_v19  ;;  %v1410_v33 = vpop.f32.mrb[21].mxu0 }
 0x1af   : > { %v1821_v35 = vpop.f32.mrb[21].mxu1  ;;  %v2378_v36 = vpack.c.bf16 %v1953_v43, %v1952_v20  ;;  %v1955_v37 = vmax.f32 %v1939_v50, 0.0  ;;  %v1442_v38 = vmax.f32 %v1031_v56, %v1410_v33  ;;  %v1412_v39 = vpop.f32.mrb[22].mxu0 }
 0x1b0   : > { %v1823_v40 = vpop.f32.mrb[22].mxu1  ;;  %v1852_v41 = vmax.f32 %v1441_v51, %v1819_v34  ;;  %v1443_v42 = vmax.f32 %v1032_v59, %v1412_v39  ;;  %v1414_v44 = vpop.f32.mrb[23].mxu0 }
 0x1b1   : > { %v1825_v45 = vpop.f32.mrb[23].mxu1  ;;  %2016 = vst [vmem:[%s3125_s9] sm:$0xff] %v2378_v36  ;;  %v2379_v52 = vpack.c.bf16 %v1955_v37, %v1954_v32  ;;  %v1853_v1 = vmax.f32 %v1442_v38, %v1821_v35  ;;  %v1444_v53 = vmax.f32 %v1033_v62, %v1414_v44  ;;  %v1914_v56 = vpop.permute.xlu1 %1913 }
 0x1b2   : > { %v1940_v46 = vadd.f32 %v1909_v16, %v1852_v41  ;;  %v1854_v47 = vmax.f32 %v1443_v42, %v1823_v40 }
 0x1b3   : > { %2017 = vst [vmem:[%s3125_s9 + $0x8] sm:$0xff] %v2379_v52  ;;  %v1941_v54 = vadd.f32 %v1909_v16, %v1853_v1  ;;  %v1855_v55 = vmax.f32 %v1444_v53, %v1825_v45 }
 0x1b4   : > { %v1956_v48 = vmax.f32 %v1940_v46, 0.0  ;;  %v1942_v49 = vadd.f32 %v1914_v56, %v1854_v47 }
 0x1b5   : > { %v1957_v6 = vmax.f32 %v1941_v54, 0.0  ;;  %v1943_v57 = vadd.f32 %v1914_v56, %v1855_v55  ;;  %v1418_v58 = vpop.f32.mrb[24].mxu0  ;;  %v1924_v5 = vpop.permute.xlu1 %1923 }
 0x1b6   : > { %v1829_v59 = vpop.f32.mrb[24].mxu1  ;;  %v1958_v9 = vmax.f32 %v1942_v49, 0.0  ;;  %v1445_v17 = vmax.f32 %v1034_v3, %v1418_v58  ;;  %v1420_v60 = vpop.f32.mrb[25].mxu0 }
 0x1b7   : > { %v1831_v61 = vpop.f32.mrb[25].mxu1  ;;  %v2380_v62 = vpack.c.bf16 %v1957_v6, %v1956_v48  ;;  %v1959_v18 = vmax.f32 %v1943_v57, 0.0  ;;  %v1446_v20 = vmax.f32 %v1035_v7, %v1420_v60  ;;  %v1422_v22 = vpop.f32.mrb[26].mxu0 }
 0x1b8   : > { %v1833_v16 = vpop.f32.mrb[26].mxu1  ;;  %v1856_v43 = vmax.f32 %v1445_v17, %v1829_v59  ;;  %v1447_v50 = vmax.f32 %v1036_v10, %v1422_v22  ;;  %v1424_v19 = vpop.f32.mrb[27].mxu0 }
 0x1b9   : > { %v1835_v34 = vpop.f32.mrb[27].mxu1  ;;  %2018 = vst [vmem:[%s3125_s9 + $0x10] sm:$0xff] %v2380_v62  ;;  %v2381_v63 = vpack.c.bf16 %v1959_v18, %v1958_v9  ;;  %v1857_v3 = vmax.f32 %v1446_v20, %v1831_v61  ;;  %v1448_v32 = vmax.f32 %v1037_v13, %v1424_v19 }
 0x1ba   : > { %v1944_v51 = vadd.f32 %v1919_v2, %v1856_v43  ;;  %v1858_v4 = vmax.f32 %v1447_v50, %v1833_v16 }
 0x1bb   : > { %2019 = vst [vmem:[%s3125_s9 + $0x18] sm:$0xff] %v2381_v63  ;;  %v1945_v7 = vadd.f32 %v1919_v2, %v1857_v3  ;;  %v1859_v33 = vmax.f32 %v1448_v32, %v1835_v34 }
 0x1bc   : > { %v1960_v35 = vmax.f32 %v1944_v51, 0.0  ;;  %v1946_v36 = vadd.f32 %v1924_v5, %v1858_v4 }
 0x1bd   : > { %v1961_v8 = vmax.f32 %v1945_v7, 0.0  ;;  %v1947_v0 = vadd.f32 %v1924_v5, %v1859_v33  ;;  %v1428_v10 = vpop.f32.mrb[28].mxu0 }
 0x1be   : > { %v1839_v37 = vpop.f32.mrb[28].mxu1  ;;  %v1962_v38 = vmax.f32 %v1946_v36, 0.0  ;;  %v1449_v39 = vmax.f32 %v1038_v21, %v1428_v10  ;;  %v1430_v11 = vpop.f32.mrb[29].mxu0 }
 0x1bf   : > { %v1841_v12 = vpop.f32.mrb[29].mxu1  ;;  %v2382_v13 = vpack.c.bf16 %v1961_v8, %v1960_v35  ;;  %v1963_v40 = vmax.f32 %v1947_v0, 0.0  ;;  %v1450_v41 = vmax.f32 %v1039_v25, %v1430_v11  ;;  %v1432_v42 = vpop.f32.mrb[30].mxu0 }
 0x1c0   : > { %v1843_v44 = vpop.f32.mrb[30].mxu1  ;;  %v1860_v45 = vmax.f32 %v1449_v39, %v1839_v37  ;;  %v1451_v52 = vmax.f32 %v1040_v28, %v1432_v42  ;;  %v1434_v1 = vpop.f32.mrb[31].mxu0 }
 0x1c1   : > { %v1845_v53 = vpop.f32.mrb[31].mxu1  ;;  %2020 = vst [vmem:[%s3125_s9 + $0x20] sm:$0xff] %v2382_v13  ;;  %v2383_v14 = vpack.c.bf16 %v1963_v40, %v1962_v38  ;;  %v1861_v21 = vmax.f32 %v1450_v41, %v1841_v12  ;;  %v1452_v46 = vmax.f32 %v1041_v31, %v1434_v1  ;;  %v1934_v25 = vpop.permute.xlu1 %1933 }
 0x1c2   : > { %v1948_v23 = vadd.f32 %v1929_v15, %v1860_v45  ;;  %v1862_v24 = vmax.f32 %v1451_v52, %v1843_v44 }
 0x1c3   : > { %2021 = vst [vmem:[%s3125_s9 + $0x28] sm:$0xff] %v2383_v14  ;;  %v1949_v47 = vadd.f32 %v1929_v15, %v1861_v21  ;;  %v1863_v54 = vmax.f32 %v1452_v46, %v1845_v53 }
 0x1c4   : > { %v1964_v26 = vmax.f32 %v1948_v23, 0.0  ;;  %v1950_v27 = vadd.f32 %v1934_v25, %v1862_v24 }
 0x1c5   : > { %v1965_v28 = vmax.f32 %v1949_v47, 0.0  ;;  %v1951_v55 = vadd.f32 %v1934_v25, %v1863_v54 }
 0x1c6   : > { %v1966_v56 = vmax.f32 %v1950_v27, 0.0 }
 0x1c7   : > { %v2384_v48 = vpack.c.bf16 %v1965_v28, %v1964_v26  ;;  %v1967_v49 = vmax.f32 %v1951_v55, 0.0 }
 0x1c9   : > { %2022 = vst [vmem:[%s3125_s9 + $0x30] sm:$0xff] %v2384_v48  ;;  %v2385_v6 = vpack.c.bf16 %v1967_v49, %v1966_v56 }
 0x1cb   : > { %2023 = vst [vmem:[%s3125_s9 + $0x38] sm:$0xff] %v2385_v6 }
 0x1cc PF: > { %s13_s12 = sadd.s32 1, %s2700_s12  }
 0x1cd   : > { %p10_p4 = scmp.ge.s32.totalorder %s13_s12, 4  }
 0x1cf   :  { %12 = sbr.rel (!%p10_p4) target bundleno = 1 (0x1), region = 65 }

// kernel: symbol_classifier_forward.5
= control target key start
LH: loop header
LB: loop body
LE: loop exit
PB: predicated region body
PF: predicated region fallthrough
CT: control target
= control target key end

     0   :  { %10 = vsyncpa [#allocation4], 0  ;;  %s4382_s18 = smov 0   ;;  %s4792_s0 = inlined_call_operand.vmem [shape: bf16[2,16384], index: 0, kind: input, shape index: {}]   ;;  %s4793_s1 = inlined_call_operand.vmem [shape: bf16[16384,128], index: 1, kind: input, shape index: {}]   ;;  %s4794_s2 = inlined_call_operand.vmem [shape: f32[1,128], index: 2, kind: input, shape index: {}]   ;;  %s4795_s3 = inlined_call_operand.vmem [shape: f32[128,15], index: 3, kind: input, shape index: {}]   ;;  %s4796_s4 = inlined_call_operand.vmem [shape: f32[1,15], index: 4, kind: input, shape index: {}]   ;;  %s4797_s5 = inlined_call_operand.hbm [shape: f32[2,15], index: 5, kind: output, shape index: {}]  }
   0x1 LB: > { %s4388_s19 = sadd.s32 4294967295, %s4344_s18   ;;  %p3332_p0 = scmp.ge.s32.totalorder %s4344_s18, 1  ;;  %s4344_s18 = sphi %s4382_s18, %s16_s18  }
   0x2   : > { %p194_p1 = scmp.lt.s32.totalorder %s4344_s18, 5 }
   0x4   : > { %p195_p2 = pnand %p3332_p0, %p194_p1 }
   0x5   : > { %s3333_s20 = sshll.u32 (!%p195_p2), %s4388_s19, 5  ;;  %s3334_s21 = sshll.u32 (!%p195_p2), %s4388_s19, 9 }
   0x6   : > { %198 = sbr.rel (%p195_p2) target bundleno = 753 (0x2f1), region = 40  ;;  %p222_p3 = scmp.lt.s32.totalorder (!%p195_p2), %s3333_s20, 127 }
   0x7   : > { %p227_p4 = scmp.lt.s32.totalorder (!%p195_p2), %s3334_s21, 2047  ;;  %p3336_p5 = scmp.ne.s32.totalorder (!%p195_p2), %s4388_s19, 0 }
   0xd   : > { %s4799_s20 = smov (!%p222_p3, %s3333_s20), 127  ;;  %s4801_s21 = smov (!%p227_p4, %s3334_s21), 2047 }
   0xe   : > { %s4397_s24 = scalar_lea.vmem %s4792_s0, %s4799_s20  ;;  %s3335_s25 = sshll.u32 %s4801_s21, 2  ;;  %v4346_v0 = vmov (!%p3336_p5), 0.0  }
   0xf   : > { %s4402_s28 = scalar_lea.vmem %s4793_s1, %s3335_s25  ;;  %236 = sbr.rel (%p3336_p5) target bundleno = 22 (0x16), region = 44  ;;  %237 = vst [vmem:[#allocation2] sm:$0x3] (!%p3336_p5), %v4346_v0 }
  0x16 PF: > { %v4048_v1 = vld [vmem:[%s4402_s28 + $0x40] sm:$0xff]   ;;  %v4052_v5 = vld [vmem:[%s4402_s28 + $0x48] sm:$0xff]   ;;  %v4056_v9 = vld [vmem:[%s4402_s28 + $0x50] sm:$0xff]   ;;  %v763_v29 = vlaneseq  ;;  %v4347_v37 = vmov 1966171168   ;;  %p3593_p6 = scmp.ne.s32.totalorder %s4388_s19, 3 }
  0x17   : > { %v4049_v2 = vld [vmem:[%s4402_s28 + $0xc0] sm:$0xff]   ;;  %3600 = vmatprep.subr.bf16.mxu0 %v4048_v1  ;;  %v4053_v6 = vld [vmem:[%s4402_s28 + $0xc8] sm:$0xff]   ;;  %v4057_v10 = vld [vmem:[%s4402_s28 + $0xd0] sm:$0xff]   ;;  %v761_v38 = vunpack.c.l.s4 %v4347_v37  ;;  %vm4349_vm0 = vmmov (!%p3593_p6), 0   ;;  %vm3272_vm1 = vcmask (!%p3593_p6), 115712  }
  0x18   : > { %v4050_v3 = vld [vmem:[%s4402_s28] sm:$0xff]   ;;  %3622 = vmatprep.subr.bf16.mxu1 %v4049_v2  ;;  %v4054_v7 = vld [vmem:[%s4402_s28 + $0x8] sm:$0xff]   ;;  %v4058_v11 = vld [vmem:[%s4402_s28 + $0x10] sm:$0xff]   ;;  %v764_v34 = vshrl.u32 %v763_v29, 7 }
  0x19   : > { %v4051_v4 = vld [vmem:[%s4402_s28 + $0x80] sm:$0xff]   ;;  %3601 = vmatpush3.bf16.msra.mxu0 %v4050_v3  ;;  %v4055_v8 = vld [vmem:[%s4402_s28 + $0x88] sm:$0xff]   ;;  %v4059_v12 = vld [vmem:[%s4402_s28 + $0x90] sm:$0xff]   ;;  %v762_v41 = vunpack.c.0.s8 %v761_v38 }
  0x1a   : > { %3623 = vmatpush3.bf16.msra.mxu1 %v4051_v4  ;;  %3602 = vmatprep.subr.bf16.mxu0 %v4052_v5  ;;  %v4060_v13 = vld [vmem:[%s4402_s28 + $0x58] sm:$0xff]   ;;  %v4064_v17 = vld [vmem:[%s4402_s28 + $0x60] sm:$0xff]   ;;  %v4068_v21 = vld [vmem:[%s4402_s28 + $0x68] sm:$0xff]  }
  0x1b   : > { %3624 = vmatprep.subr.bf16.mxu1 %v4053_v6  ;;  %v4061_v14 = vld [vmem:[%s4402_s28 + $0xd8] sm:$0xff]   ;;  %v4065_v18 = vld [vmem:[%s4402_s28 + $0xe0] sm:$0xff]   ;;  %v4069_v22 = vld [vmem:[%s4402_s28 + $0xe8] sm:$0xff]   ;;  %v4440_v42 = vsub.s32 %v762_v41, %v764_v34 }
  0x1c   : > { %v4062_v15 = vld [vmem:[%s4402_s28 + $0x18] sm:$0xff]   ;;  %v4066_v19 = vld [vmem:[%s4402_s28 + $0x20] sm:$0xff]   ;;  %v4070_v23 = vld [vmem:[%s4402_s28 + $0x28] sm:$0xff]  }
  0x1d   : > { %3603 = vmatpush3.bf16.msra.mxu0 %v4054_v7  ;;  %v4063_v16 = vld [vmem:[%s4402_s28 + $0x98] sm:$0xff]   ;;  %v4067_v20 = vld [vmem:[%s4402_s28 + $0xa0] sm:$0xff]   ;;  %v4071_v24 = vld [vmem:[%s4402_s28 + $0xa8] sm:$0xff]  }
  0x1e   : > { %3625 = vmatpush3.bf16.msra.mxu1 %v4055_v8  ;;  %3604 = vmatprep.subr.bf16.mxu0 %v4056_v9  ;;  %v4072_v25 = vld [vmem:[%s4402_s28 + $0x70] sm:$0xff]   ;;  %v4076_v30 = vld [vmem:[%s4402_s28 + $0x78] sm:$0xff]   ;;  %v239_v35 = vld [vmem:[%s4397_s24] sm:$0xff] }
  0x1f   : > { %3626 = vmatprep.subr.bf16.mxu1 %v4057_v10  ;;  %v4073_v26 = vld [vmem:[%s4402_s28 + $0xf0] sm:$0xff]   ;;  %v4077_v31 = vld [vmem:[%s4402_s28 + $0xf8] sm:$0xff]   ;;  %v4081_v36 = vld [vmem:[%s4402_s28 + $0x140] sm:$0xff]   ;;  %v759_v40 = vcombine.high %v239_v35, %v239_v35  ;;  %v766_v43 = vrot.slane %v239_v35, %v4440_v42 }
  0x20   : > { %v4074_v27 = vld [vmem:[%s4402_s28 + $0x30] sm:$0xff]   ;;  %v4078_v32 = vld [vmem:[%s4402_s28 + $0x38] sm:$0xff]   ;;  %v4082_v39 = vld [vmem:[%s4402_s28 + $0x1c0] sm:$0xff]  }
  0x21   : > { %3605 = vmatpush3.bf16.msra.mxu0 %v4058_v11  ;;  %v4075_v28 = vld [vmem:[%s4402_s28 + $0xb0] sm:$0xff]   ;;  %v4079_v33 = vld [vmem:[%s4402_s28 + $0xb8] sm:$0xff]   ;;  %v4444_v44 = vrot.slane %v759_v40, %v4440_v42  ;;  %v774_v45 = vcombine.high %v766_v43, %v766_v43  ;;  %v782_v46 = vrot.slane %v766_v43, %v4440_v42  ;;  %v4083_v48 = vld [vmem:[%s4402_s28 + $0x100] sm:$0xff]  }
  0x22   : > { %3627 = vmatpush3.bf16.msra.mxu1 %v4059_v12  ;;  %3606 = vmatprep.subr.bf16.mxu0 %v4060_v13  ;;  %v4084_v50 = vld [vmem:[%s4402_s28 + $0x180] sm:$0xff]   ;;  %v4085_v53 = vld [vmem:[%s4402_s28 + $0x148] sm:$0xff]   ;;  %v4089_v59 = vld [vmem:[%s4402_s28 + $0x150] sm:$0xff]  }
  0x23   : > { %3628 = vmatprep.subr.bf16.mxu1 %v4061_v14  ;;  %v775_v47 = vcombine.high %v4444_v44, %v4444_v44  ;;  %v796_v49 = vrot.slane %v774_v45, %v4440_v42  ;;  %v804_v52 = vcombine.high %v782_v46, %v782_v46  ;;  %v4086_v55 = vld [vmem:[%s4402_s28 + $0x1c8] sm:$0xff]   ;;  %v4090_v60 = vld [vmem:[%s4402_s28 + $0x1d0] sm:$0xff]   ;;  %v4093_v63 = vld [vmem:[%s4402_s28 + $0x158] sm:$0xff]  }
  0x24   : > { %v4087_v56 = vld [vmem:[%s4402_s28 + $0x108] sm:$0xff]   ;;  %v4091_v61 = vld [vmem:[%s4402_s28 + $0x110] sm:$0xff]   ;;  %v4094_v0 = vld [vmem:[%s4402_s28 + $0x1d8] sm:$0xff]  }
  0x25   : > { %3607 = vmatpush3.bf16.msra.mxu0 %v4062_v15  ;;  %v803_v51 = vrot.slane %v775_v47, %v4440_v42  ;;  %2555 = vmatprep.mubr.bf16.mxu0 %v796_v49  ;;  %v806_v54 = vcombine.high %v796_v49, %v796_v49  ;;  %v4088_v58 = vld [vmem:[%s4402_s28 + $0x188] sm:$0xff]   ;;  %v4092_v62 = vld [vmem:[%s4402_s28 + $0x190] sm:$0xff]   ;;  %v4095_v1 = vld [vmem:[%s4402_s28 + $0x118] sm:$0xff]  }
  0x26   : > { %3629 = vmatpush3.bf16.msra.mxu1 %v4063_v16  ;;  %3608 = vmatprep.subr.bf16.mxu0 %v4064_v17  ;;  %v4096_v2 = vld [vmem:[%s4402_s28 + $0x198] sm:$0xff]   ;;  %v4097_v3 = vld [vmem:[%s4402_s28 + $0x160] sm:$0xff]   ;;  %v4101_v7 = vld [vmem:[%s4402_s28 + $0x168] sm:$0xff]  }
  0x27   : > { %3630 = vmatprep.subr.bf16.mxu1 %v4065_v18  ;;  %v807_v57 = vcombine.high %v803_v51, %v803_v51  ;;  %2595 = vmatprep.mubr.bf16.mxu1 %v806_v54  ;;  %v4098_v4 = vld [vmem:[%s4402_s28 + $0x1e0] sm:$0xff]   ;;  %v4102_v8 = vld [vmem:[%s4402_s28 + $0x1e8] sm:$0xff]   ;;  %v4105_v11 = vld [vmem:[%s4402_s28 + $0x170] sm:$0xff]  }
  0x28   : > { %v4099_v5 = vld [vmem:[%s4402_s28 + $0x120] sm:$0xff]   ;;  %v4103_v9 = vld [vmem:[%s4402_s28 + $0x128] sm:$0xff]   ;;  %v4106_v12 = vld [vmem:[%s4402_s28 + $0x1f0] sm:$0xff]  }
  0x29   : > { %3609 = vmatpush3.bf16.msra.mxu0 %v4066_v19  ;;  %v4100_v6 = vld [vmem:[%s4402_s28 + $0x1a0] sm:$0xff]   ;;  %v4104_v10 = vld [vmem:[%s4402_s28 + $0x1a8] sm:$0xff]   ;;  %v4107_v13 = vld [vmem:[%s4402_s28 + $0x130] sm:$0xff]   ;;  %v789_v19 = vrot.slane %v4444_v44, %v4440_v42 }
  0x2a   : > { %3631 = vmatpush3.bf16.msra.mxu1 %v4067_v20  ;;  %3610 = vmatprep.subr.bf16.mxu0 %v4068_v21  ;;  %v4108_v14 = vld [vmem:[%s4402_s28 + $0x1b0] sm:$0xff]   ;;  %v4109_v15 = vld [vmem:[%s4402_s28 + $0x178] sm:$0xff]   ;;  %v4113_v20 = vld [vmem:[%s4402_s28 + $0x240] sm:$0xff]  }
  0x2b   : > { %3632 = vmatprep.subr.bf16.mxu1 %v4069_v22  ;;  %v4110_v16 = vld [vmem:[%s4402_s28 + $0x1f8] sm:$0xff]   ;;  %v4114_v21 = vld [vmem:[%s4402_s28 + $0x2c0] sm:$0xff]   ;;  %v4121_v29 = vld [vmem:[%s4402_s28 + $0x250] sm:$0xff]  }
  0x2c   : > { %v4111_v17 = vld [vmem:[%s4402_s28 + $0x138] sm:$0xff]   ;;  %v4115_v22 = vld [vmem:[%s4402_s28 + $0x200] sm:$0xff]   ;;  %v4133_v41 = vld [vmem:[%s4402_s28 + $0x268] sm:$0xff]  }
  0x2d   : > { %3611 = vmatpush3.bf16.msra.mxu0 %v4070_v23  ;;  %v4112_v18 = vld [vmem:[%s4402_s28 + $0x1b8] sm:$0xff]   ;;  %v4116_v23 = vld [vmem:[%s4402_s28 + $0x280] sm:$0xff]   ;;  %v4134_v43 = vld [vmem:[%s4402_s28 + $0x2e8] sm:$0xff]  }
  0x2e   : > { %3633 = vmatpush3.bf16.msra.mxu1 %v4071_v24  ;;  %3612 = vmatprep.subr.bf16.mxu0 %v4072_v25  ;;  %v805_v24 = vcombine.high %v789_v19, %v789_v19  ;;  %v4117_v25 = vld [vmem:[%s4402_s28 + $0x248] sm:$0xff]   ;;  %v4126_v34 = vld [vmem:[%s4402_s28 + $0x2d8] sm:$0xff]   ;;  %v4129_v37 = vld [vmem:[%s4402_s28 + $0x260] sm:$0xff]  }
  0x2f   : > { %3634 = vmatprep.subr.bf16.mxu1 %v4073_v26  ;;  %v4118_v26 = vld [vmem:[%s4402_s28 + $0x2c8] sm:$0xff]   ;;  %v4127_v35 = vld [vmem:[%s4402_s28 + $0x218] sm:$0xff]   ;;  %v4130_v38 = vld [vmem:[%s4402_s28 + $0x2e0] sm:$0xff]  }
  0x30   : > { %v4132_v40 = vld [vmem:[%s4402_s28 + $0x2a0] sm:$0xff]   ;;  %v4135_v44 = vld [vmem:[%s4402_s28 + $0x228] sm:$0xff]  }
  0x31   : > { %3613 = vmatpush3.bf16.msra.mxu0 %v4074_v27  ;;  %v4119_v27 = vld [vmem:[%s4402_s28 + $0x208] sm:$0xff]  }
  0x32   : > { %3635 = vmatpush3.bf16.msra.mxu1 %v4075_v28  ;;  %3614 = vmatprep.subr.bf16.mxu0 %v4076_v30  ;;  %v4120_v28 = vld [vmem:[%s4402_s28 + $0x288] sm:$0xff]   ;;  %v4122_v30 = vld [vmem:[%s4402_s28 + $0x2d0] sm:$0xff]  }
  0x33   : > { %3636 = vmatprep.subr.bf16.mxu1 %v4077_v31  ;;  %v4123_v31 = vld [vmem:[%s4402_s28 + $0x210] sm:$0xff]   ;;  %v4136_v45 = vld [vmem:[%s4402_s28 + $0x2a8] sm:$0xff]  }
  0x34   : > { %v240_v47 = vld [vmem:[%s4397_s24 + $0x8] sm:$0xff] }
  0x35   : > { %3615 = vmatpush3.bf16.msra.mxu0 %v4078_v32  ;;  %v4124_v32 = vld [vmem:[%s4402_s28 + $0x290] sm:$0xff]   ;;  %v815_v49 = vrot.slane %v240_v47, %v4440_v42 }
  0x36   : > { %3637 = vmatpush3.bf16.msra.mxu1 %v4079_v33  ;;  %3644 = vmatprep.subr.bf16.mxu0 %v4081_v36  ;;  %v4125_v33 = vld [vmem:[%s4402_s28 + $0x258] sm:$0xff]  }
  0x37   : > { %3666 = vmatprep.subr.bf16.mxu1 %v4082_v39  ;;  %v4128_v36 = vld [vmem:[%s4402_s28 + $0x298] sm:$0xff]   ;;  %v4131_v39 = vld [vmem:[%s4402_s28 + $0x220] sm:$0xff]  }
  0x38   : > { %2556 = vmatmul.mubr.bf16.vlgmr.msra.gmra.mrb[0].mxu0 %v782_v46  ;;  %v4137_v46 = vld [vmem:[%s4402_s28 + $0x270] sm:$0xff]  }
  0x39   : > { %3645 = vmatpush3.bf16.msra.mxu0 %v4083_v48  ;;  %2596 = vmatmul.mubr.bf16.vlgmr.msra.gmra.mrb[0].mxu1 %v804_v52  ;;  %v4138_v48 = vld [vmem:[%s4402_s28 + $0x2f0] sm:$0xff]  }
  0x3a   : > { %3646 = vmatprep.subr.bf16.mxu0 %v4085_v53  ;;  %3667 = vmatpush3.bf16.msra.mxu1 %v4084_v50  ;;  %v808_v50 = vcombine.high %v240_v47, %v240_v47  ;;  %v4140_v52 = vld [vmem:[%s4402_s28 + $0x2b0] sm:$0xff]   ;;  %v823_v53 = vcombine.high %v815_v49, %v815_v49 }
  0x3b   : > { %2635 = vmatprep.mubr.bf16.mxu0 %v803_v51  ;;  %3668 = vmatprep.subr.bf16.mxu1 %v4086_v55  ;;  %v4139_v51 = vld [vmem:[%s4402_s28 + $0x230] sm:$0xff]   ;;  %v4141_v55 = vld [vmem:[%s4402_s28 + $0x278] sm:$0xff]  }
  0x3c   : > { %2675 = vmatprep.mubr.bf16.mxu1 %v807_v57  ;;  %v4514_v54 = vrot.slane %v808_v50, %v4440_v42  ;;  %v845_v57 = vrot.slane %v823_v53, %v4440_v42  ;;  %v4188_v47 = vld [vmem:[%s4402_s28 + $0x410] sm:$0xff]   ;;  %v4191_v50 = vld [vmem:[%s4402_s28 + $0x4d8] sm:$0xff]   ;;  %v4194_v53 = vld [vmem:[%s4402_s28 + $0x460] sm:$0xff]  }
  0x3d   : > { %3647 = vmatpush3.bf16.msra.mxu0 %v4087_v56  ;;  %v4142_v56 = vld [vmem:[%s4402_s28 + $0x2f8] sm:$0xff]  }
  0x3e   : > { %3648 = vmatprep.subr.bf16.mxu0 %v4089_v59  ;;  %3669 = vmatpush3.bf16.msra.mxu1 %v4088_v58  ;;  %v824_v58 = vcombine.high %v4514_v54, %v4514_v54  ;;  %v4143_v59 = vld [vmem:[%s4402_s28 + $0x238] sm:$0xff]  }
  0x3f   : > { %3670 = vmatprep.subr.bf16.mxu1 %v4090_v60  ;;  %v4144_v60 = vld [vmem:[%s4402_s28 + $0x2b8] sm:$0xff]  }
  0x41   : > { %3649 = vmatpush3.bf16.msra.mxu0 %v4091_v61  ;;  %v855_v61 = vcombine.high %v845_v57, %v845_v57 }
  0x42   : > { %3650 = vmatprep.subr.bf16.mxu0 %v4093_v63  ;;  %3671 = vmatpush3.bf16.msra.mxu1 %v4092_v62  ;;  %v831_v62 = vrot.slane %v815_v49, %v4440_v42  ;;  %v4145_v63 = vld [vmem:[%s4402_s28 + $0x340] sm:$0xff]   ;;  %v4190_v49 = vld [vmem:[%s4402_s28 + $0x458] sm:$0xff]  }
  0x43   : > { %3672 = vmatprep.subr.bf16.mxu1 %v4094_v0  ;;  %v4146_v0 = vld [vmem:[%s4402_s28 + $0x3c0] sm:$0xff]  }
  0x45   : > { %3651 = vmatpush3.bf16.msra.mxu0 %v4095_v1  ;;  %v852_v1 = vrot.slane %v824_v58, %v4440_v42  ;;  %v4199_v58 = vld [vmem:[%s4402_s28 + $0x4e8] sm:$0xff]  }
  0x46   : > { %3652 = vmatprep.subr.bf16.mxu0 %v4097_v3  ;;  %3673 = vmatpush3.bf16.msra.mxu1 %v4096_v2  ;;  %v4147_v2 = vld [vmem:[%s4402_s28 + $0x300] sm:$0xff]  }
  0x47   : > { %3674 = vmatprep.subr.bf16.mxu1 %v4098_v4  ;;  %v4148_v3 = vld [vmem:[%s4402_s28 + $0x380] sm:$0xff]   ;;  %v853_v4 = vcombine.high %v831_v62, %v831_v62 }
  0x49   : > { %3653 = vmatpush3.bf16.msra.mxu0 %v4099_v5  ;;  %v4149_v5 = vld [vmem:[%s4402_s28 + $0x348] sm:$0xff]  }
  0x4a   : > { %3654 = vmatprep.subr.bf16.mxu0 %v4101_v7  ;;  %3675 = vmatpush3.bf16.msra.mxu1 %v4100_v6  ;;  %v4150_v6 = vld [vmem:[%s4402_s28 + $0x3c8] sm:$0xff]   ;;  %v856_v7 = vcombine.high %v852_v1, %v852_v1 }
  0x4b   : > { %3676 = vmatprep.subr.bf16.mxu1 %v4102_v8  ;;  %v4151_v8 = vld [vmem:[%s4402_s28 + $0x308] sm:$0xff]  }
  0x4d   : > { %3655 = vmatpush3.bf16.msra.mxu0 %v4103_v9  ;;  %v4152_v9 = vld [vmem:[%s4402_s28 + $0x388] sm:$0xff]  }
  0x4e   : > { %3656 = vmatprep.subr.bf16.mxu0 %v4105_v11  ;;  %3677 = vmatpush3.bf16.msra.mxu1 %v4104_v10  ;;  %v4153_v10 = vld [vmem:[%s4402_s28 + $0x350] sm:$0xff]  }
  0x4f   : > { %3678 = vmatprep.subr.bf16.mxu1 %v4106_v12  ;;  %v4154_v11 = vld [vmem:[%s4402_s28 + $0x3d0] sm:$0xff]  }
  0x50   : > { %v4155_v12 = vld [vmem:[%s4402_s28 + $0x310] sm:$0xff]  }
  0x51   : > { %3657 = vmatpush3.bf16.msra.mxu0 %v4107_v13  ;;  %v4156_v13 = vld [vmem:[%s4402_s28 + $0x390] sm:$0xff]  }
  0x52   : > { %3658 = vmatprep.subr.bf16.mxu0 %v4109_v15  ;;  %3679 = vmatpush3.bf16.msra.mxu1 %v4108_v14  ;;  %v4157_v14 = vld [vmem:[%s4402_s28 + $0x358] sm:$0xff]  }
  0x53   : > { %3680 = vmatprep.subr.bf16.mxu1 %v4110_v16  ;;  %v4158_v15 = vld [vmem:[%s4402_s28 + $0x3d8] sm:$0xff]  }
  0x54   : > { %v4159_v16 = vld [vmem:[%s4402_s28 + $0x318] sm:$0xff]  }
  0x55   : > { %3659 = vmatpush3.bf16.msra.mxu0 %v4111_v17  ;;  %v4160_v17 = vld [vmem:[%s4402_s28 + $0x398] sm:$0xff]  }
  0x56   : > { %3688 = vmatprep.subr.bf16.mxu0 %v4113_v20  ;;  %3681 = vmatpush3.bf16.msra.mxu1 %v4112_v18  ;;  %v4161_v18 = vld [vmem:[%s4402_s28 + $0x360] sm:$0xff]  }
  0x57   : > { %3710 = vmatprep.subr.bf16.mxu1 %v4114_v21  ;;  %v4163_v20 = vld [vmem:[%s4402_s28 + $0x320] sm:$0xff]  }
  0x58   : > { %2636 = vmatmul.mubr.bf16.vlgmr.msra.gmra.mrb[4].mxu0 %v789_v19  ;;  %v4162_v19 = vld [vmem:[%s4402_s28 + $0x3e0] sm:$0xff]  }
  0x59   : > { %3689 = vmatpush3.bf16.msra.mxu0 %v4115_v22  ;;  %2676 = vmatmul.mubr.bf16.vlgmr.msra.gmra.mrb[4].mxu1 %v805_v24  ;;  %v4164_v21 = vld [vmem:[%s4402_s28 + $0x3a0] sm:$0xff]   ;;  %v4165_v22 = vld [vmem:[%s4402_s28 + $0x368] sm:$0xff]  }
  0x5a   : > { %3690 = vmatprep.subr.bf16.mxu0 %v4117_v25  ;;  %3711 = vmatpush3.bf16.msra.mxu1 %v4116_v23  ;;  %v4166_v23 = vld [vmem:[%s4402_s28 + $0x3e8] sm:$0xff]  }
  0x5b   : > { %3712 = vmatprep.subr.bf16.mxu1 %v4118_v26  ;;  %2715 = vmatprep.mubr.bf16.mxu0 %v845_v57  ;;  %v4167_v24 = vld [vmem:[%s4402_s28 + $0x328] sm:$0xff]   ;;  %v4169_v26 = vld [vmem:[%s4402_s28 + $0x370] sm:$0xff]  }
  0x5c   : > { %2755 = vmatprep.mubr.bf16.mxu1 %v855_v61  ;;  %v4168_v25 = vld [vmem:[%s4402_s28 + $0x3a8] sm:$0xff]   ;;  %v4202_v61 = vld [vmem:[%s4402_s28 + $0x470] sm:$0xff]  }
  0x5d   : > { %3691 = vmatpush3.bf16.msra.mxu0 %v4119_v27  ;;  %v4170_v27 = vld [vmem:[%s4402_s28 + $0x3f0] sm:$0xff]   ;;  %v4198_v57 = vld [vmem:[%s4402_s28 + $0x468] sm:$0xff]  }
  0x5e   : > { %3692 = vmatprep.subr.bf16.mxu0 %v4121_v29  ;;  %3713 = vmatpush3.bf16.msra.mxu1 %v4120_v28  ;;  %v4171_v28 = vld [vmem:[%s4402_s28 + $0x330] sm:$0xff]  }
  0x5f   : > { %3714 = vmatprep.subr.bf16.mxu1 %v4122_v30  ;;  %v4172_v29 = vld [vmem:[%s4402_s28 + $0x3b0] sm:$0xff]   ;;  %v4173_v30 = vld [vmem:[%s4402_s28 + $0x378] sm:$0xff]  }
  0x61   : > { %3693 = vmatpush3.bf16.msra.mxu0 %v4123_v31  ;;  %v4174_v31 = vld [vmem:[%s4402_s28 + $0x3f8] sm:$0xff]  }
  0x62   : > { %3694 = vmatprep.subr.bf16.mxu0 %v4125_v33  ;;  %3715 = vmatpush3.bf16.msra.mxu1 %v4124_v32  ;;  %v4175_v32 = vld [vmem:[%s4402_s28 + $0x338] sm:$0xff]  }
  0x63   : > { %3716 = vmatprep.subr.bf16.mxu1 %v4126_v34  ;;  %v4176_v33 = vld [vmem:[%s4402_s28 + $0x3b8] sm:$0xff]   ;;  %v838_v34 = vrot.slane %v4514_v54, %v4440_v42  ;;  %v4195_v54 = vld [vmem:[%s4402_s28 + $0x4e0] sm:$0xff]  }
  0x65   : > { %3695 = vmatpush3.bf16.msra.mxu0 %v4127_v35  ;;  %v4178_v35 = vld [vmem:[%s4402_s28 + $0x440] sm:$0xff]  }
  0x66   : > { %3696 = vmatprep.subr.bf16.mxu0 %v4129_v37  ;;  %3717 = vmatpush3.bf16.msra.mxu1 %v4128_v36  ;;  %v4179_v36 = vld [vmem:[%s4402_s28 + $0x4c0] sm:$0xff]  }
  0x67   : > { %3718 = vmatprep.subr.bf16.mxu1 %v4130_v38  ;;  %v4180_v37 = vld [vmem:[%s4402_s28 + $0x400] sm:$0xff]  }
  0x68   : > { %v4181_v38 = vld [vmem:[%s4402_s28 + $0x480] sm:$0xff]  }
  0x69   : > { %3697 = vmatpush3.bf16.msra.mxu0 %v4131_v39  ;;  %v854_v39 = vcombine.high %v838_v34, %v838_v34 }
  0x6a   : > { %3698 = vmatprep.subr.bf16.mxu0 %v4133_v41  ;;  %3719 = vmatpush3.bf16.msra.mxu1 %v4132_v40  ;;  %v4182_v40 = vld [vmem:[%s4402_s28 + $0x448] sm:$0xff]  }
  0x6b   : > { %3720 = vmatprep.subr.bf16.mxu1 %v4134_v43  ;;  %v4183_v41 = vld [vmem:[%s4402_s28 + $0x4c8] sm:$0xff]  }
  0x6c   : > { %v4184_v43 = vld [vmem:[%s4402_s28 + $0x408] sm:$0xff]  }
  0x6d   : > { %3699 = vmatpush3.bf16.msra.mxu0 %v4135_v44  ;;  %v4185_v44 = vld [vmem:[%s4402_s28 + $0x488] sm:$0xff]  }
  0x6e   : > { %3700 = vmatprep.subr.bf16.mxu0 %v4137_v46  ;;  %3721 = vmatpush3.bf16.msra.mxu1 %v4136_v45  ;;  %v4186_v45 = vld [vmem:[%s4402_s28 + $0x450] sm:$0xff]  }
  0x6f   : > { %3722 = vmatprep.subr.bf16.mxu1 %v4138_v48  ;;  %v4187_v46 = vld [vmem:[%s4402_s28 + $0x4d0] sm:$0xff]  }
  0x70   : > { %v4189_v48 = vld [vmem:[%s4402_s28 + $0x490] sm:$0xff]  }
  0x71   : > { %3701 = vmatpush3.bf16.msra.mxu0 %v4139_v51  ;;  %v4192_v51 = vld [vmem:[%s4402_s28 + $0x418] sm:$0xff]  }
  0x72   : > { %3702 = vmatprep.subr.bf16.mxu0 %v4141_v55  ;;  %3723 = vmatpush3.bf16.msra.mxu1 %v4140_v52  ;;  %v4193_v52 = vld [vmem:[%s4402_s28 + $0x498] sm:$0xff]   ;;  %v4196_v55 = vld [vmem:[%s4402_s28 + $0x420] sm:$0xff]  }
  0x73   : > { %3724 = vmatprep.subr.bf16.mxu1 %v4142_v56  ;;  %v4197_v56 = vld [vmem:[%s4402_s28 + $0x4a0] sm:$0xff]  }
  0x75   : > { %3703 = vmatpush3.bf16.msra.mxu0 %v4143_v59  ;;  %v4200_v59 = vld [vmem:[%s4402_s28 + $0x428] sm:$0xff]  }
  0x76   : > { %3732 = vmatprep.subr.bf16.mxu0 %v4145_v63  ;;  %3725 = vmatpush3.bf16.msra.mxu1 %v4144_v60  ;;  %v4201_v60 = vld [vmem:[%s4402_s28 + $0x4a8] sm:$0xff]   ;;  %v4203_v63 = vld [vmem:[%s4402_s28 + $0x4f0] sm:$0xff]  }
  0x77   : > { %3754 = vmatprep.subr.bf16.mxu1 %v4146_v0 }
  0x78   : > { %2716 = vmatmul.mubr.bf16.vlgmr.msra.gmra.mrb[8].mxu0 %v831_v62  ;;  %v241_v62 = vld [vmem:[%s4397_s24 + $0x10] sm:$0xff] }
  0x79   : > { %3733 = vmatpush3.bf16.msra.mxu0 %v4147_v2  ;;  %2795 = vmatprep.mubr.bf16.mxu0 %v852_v1  ;;  %v864_v0 = vrot.slane %v241_v62, %v4440_v42  ;;  %v857_v1 = vcombine.high %v241_v62, %v241_v62  ;;  %v4204_v2 = vld [vmem:[%s4402_s28 + $0x430] sm:$0xff]  }
  0x7a   : > { %2756 = vmatmul.mubr.bf16.vlgmr.msra.gmra.mrb[8].mxu1 %v853_v4  ;;  %3734 = vmatprep.subr.bf16.mxu0 %v4149_v5  ;;  %v4253_v62 = vld [vmem:[%s4402_s28 + $0x610] sm:$0xff]  }
  0x7b   : > { %3755 = vmatpush3.bf16.msra.mxu1 %v4148_v3  ;;  %2835 = vmatprep.mubr.bf16.mxu1 %v856_v7  ;;  %v4205_v3 = vld [vmem:[%s4402_s28 + $0x4b0] sm:$0xff]   ;;  %v872_v4 = vcombine.high %v864_v0, %v864_v0  ;;  %v4590_v5 = vrot.slane %v857_v1, %v4440_v42  ;;  %v4207_v7 = vld [vmem:[%s4402_s28 + $0x4f8] sm:$0xff]  }
  0x7c   : > { %3756 = vmatprep.subr.bf16.mxu1 %v4150_v6  ;;  %v4206_v6 = vld [vmem:[%s4402_s28 + $0x478] sm:$0xff]  }
  0x7d   : > { %3735 = vmatpush3.bf16.msra.mxu0 %v4151_v8  ;;  %v894_v8 = vrot.slane %v872_v4, %v4440_v42  ;;  %v4256_v1 = vld [vmem:[%s4402_s28 + $0x6d8] sm:$0xff]   ;;  %v4259_v4 = vld [vmem:[%s4402_s28 + $0x660] sm:$0xff]  }
  0x7e   : > { %3736 = vmatprep.subr.bf16.mxu0 %v4153_v10  ;;  %v4208_v10 = vld [vmem:[%s4402_s28 + $0x438] sm:$0xff]  }
  0x7f   : > { %3757 = vmatpush3.bf16.msra.mxu1 %v4152_v9  ;;  %v873_v9 = vcombine.high %v4590_v5, %v4590_v5 }
  0x80   : > { %3758 = vmatprep.subr.bf16.mxu1 %v4154_v11  ;;  %v4209_v11 = vld [vmem:[%s4402_s28 + $0x4b8] sm:$0xff]  }
  0x81   : > { %3737 = vmatpush3.bf16.msra.mxu0 %v4155_v12  ;;  %v904_v12 = vcombine.high %v894_v8, %v894_v8 }
  0x82   : > { %3738 = vmatprep.subr.bf16.mxu0 %v4157_v14  ;;  %v4210_v14 = vld [vmem:[%s4402_s28 + $0x540] sm:$0xff]  }
  0x83   : > { %3759 = vmatpush3.bf16.msra.mxu1 %v4156_v13  ;;  %v880_v13 = vrot.slane %v864_v0, %v4440_v42  ;;  %v4255_v0 = vld [vmem:[%s4402_s28 + $0x658] sm:$0xff]  }
  0x84   : > { %3760 = vmatprep.subr.bf16.mxu1 %v4158_v15  ;;  %v4211_v15 = vld [vmem:[%s4402_s28 + $0x5c0] sm:$0xff]  }
  0x85   : > { %3739 = vmatpush3.bf16.msra.mxu0 %v4159_v16  ;;  %v901_v16 = vrot.slane %v873_v9, %v4440_v42  ;;  %v4264_v9 = vld [vmem:[%s4402_s28 + $0x6e8] sm:$0xff]  }
  0x86   : > { %3740 = vmatprep.subr.bf16.mxu0 %v4161_v18  ;;  %v4213_v18 = vld [vmem:[%s4402_s28 + $0x580] sm:$0xff]  }
  0x87   : > { %3761 = vmatpush3.bf16.msra.mxu1 %v4160_v17  ;;  %v4212_v17 = vld [vmem:[%s4402_s28 + $0x500] sm:$0xff]  }
  0x88   : > { %3762 = vmatprep.subr.bf16.mxu1 %v4162_v19  ;;  %v902_v19 = vcombine.high %v880_v13, %v880_v13 }
  0x89   : > { %3741 = vmatpush3.bf16.msra.mxu0 %v4163_v20  ;;  %v4214_v20 = vld [vmem:[%s4402_s28 + $0x548] sm:$0xff]  }
  0x8a   : > { %3742 = vmatprep.subr.bf16.mxu0 %v4165_v22  ;;  %v905_v22 = vcombine.high %v901_v16, %v901_v16 }
  0x8b   : > { %3763 = vmatpush3.bf16.msra.mxu1 %v4164_v21  ;;  %v4215_v21 = vld [vmem:[%s4402_s28 + $0x5c8] sm:$0xff]  }
  0x8c   : > { %3764 = vmatprep.subr.bf16.mxu1 %v4166_v23  ;;  %v4216_v23 = vld [vmem:[%s4402_s28 + $0x508] sm:$0xff]  }
  0x8d   : > { %3743 = vmatpush3.bf16.msra.mxu0 %v4167_v24  ;;  %v4217_v24 = vld [vmem:[%s4402_s28 + $0x588] sm:$0xff]  }
  0x8e   : > { %3744 = vmatprep.subr.bf16.mxu0 %v4169_v26  ;;  %v4219_v26 = vld [vmem:[%s4402_s28 + $0x5d0] sm:$0xff]  }
  0x8f   : > { %3765 = vmatpush3.bf16.msra.mxu1 %v4168_v25  ;;  %v4218_v25 = vld [vmem:[%s4402_s28 + $0x550] sm:$0xff]  }
  0x90   : > { %3766 = vmatprep.subr.bf16.mxu1 %v4170_v27  ;;  %v4220_v27 = vld [vmem:[%s4402_s28 + $0x510] sm:$0xff]  }
  0x91   : > { %3745 = vmatpush3.bf16.msra.mxu0 %v4171_v28  ;;  %v4221_v28 = vld [vmem:[%s4402_s28 + $0x590] sm:$0xff]  }
  0x92   : > { %3746 = vmatprep.subr.bf16.mxu0 %v4173_v30  ;;  %v4223_v30 = vld [vmem:[%s4402_s28 + $0x5d8] sm:$0xff]  }
  0x93   : > { %3767 = vmatpush3.bf16.msra.mxu1 %v4172_v29  ;;  %v4222_v29 = vld [vmem:[%s4402_s28 + $0x558] sm:$0xff]  }
  0x94   : > { %3768 = vmatprep.subr.bf16.mxu1 %v4174_v31  ;;  %v4224_v31 = vld [vmem:[%s4402_s28 + $0x518] sm:$0xff]  }
  0x95   : > { %3747 = vmatpush3.bf16.msra.mxu0 %v4175_v32  ;;  %v4225_v32 = vld [vmem:[%s4402_s28 + $0x598] sm:$0xff]  }
  0x96   : > { %3776 = vmatprep.subr.bf16.mxu0 %v4178_v35  ;;  %v4228_v35 = vld [vmem:[%s4402_s28 + $0x520] sm:$0xff]  }
  0x97   : > { %3769 = vmatpush3.bf16.msra.mxu1 %v4176_v33  ;;  %v4226_v33 = vld [vmem:[%s4402_s28 + $0x560] sm:$0xff]  }
  0x98   : > { %2796 = vmatmul.mubr.bf16.vlgmr.msra.gmra.mrb[12].mxu0 %v838_v34  ;;  %3798 = vmatprep.subr.bf16.mxu1 %v4179_v36  ;;  %v4227_v34 = vld [vmem:[%s4402_s28 + $0x5e0] sm:$0xff]  }
  0x99   : > { %3777 = vmatpush3.bf16.msra.mxu0 %v4180_v37  ;;  %2875 = vmatprep.mubr.bf16.mxu0 %v894_v8  ;;  %v4229_v36 = vld [vmem:[%s4402_s28 + $0x5a0] sm:$0xff]   ;;  %v4230_v37 = vld [vmem:[%s4402_s28 + $0x568] sm:$0xff]  }
  0x9a   : > { %2836 = vmatmul.mubr.bf16.vlgmr.msra.gmra.mrb[12].mxu1 %v854_v39  ;;  %3778 = vmatprep.subr.bf16.mxu0 %v4182_v40  ;;  %v4232_v39 = vld [vmem:[%s4402_s28 + $0x528] sm:$0xff]  }
  0x9b   : > { %3799 = vmatpush3.bf16.msra.mxu1 %v4181_v38  ;;  %2915 = vmatprep.mubr.bf16.mxu1 %v904_v12  ;;  %v4231_v38 = vld [vmem:[%s4402_s28 + $0x5e8] sm:$0xff]   ;;  %v4267_v12 = vld [vmem:[%s4402_s28 + $0x670] sm:$0xff]  }
  0x9c   : > { %3800 = vmatprep.subr.bf16.mxu1 %v4183_v41  ;;  %v4233_v40 = vld [vmem:[%s4402_s28 + $0x5a8] sm:$0xff]   ;;  %v4234_v41 = vld [vmem:[%s4402_s28 + $0x570] sm:$0xff]  }
  0x9d   : > { %3779 = vmatpush3.bf16.msra.mxu0 %v4184_v43  ;;  %v4235_v43 = vld [vmem:[%s4402_s28 + $0x5f0] sm:$0xff]   ;;  %v4263_v8 = vld [vmem:[%s4402_s28 + $0x668] sm:$0xff]  }
  0x9e   : > { %3780 = vmatprep.subr.bf16.mxu0 %v4186_v45  ;;  %v4237_v45 = vld [vmem:[%s4402_s28 + $0x5b0] sm:$0xff]  }
  0x9f   : > { %3801 = vmatpush3.bf16.msra.mxu1 %v4185_v44  ;;  %v4236_v44 = vld [vmem:[%s4402_s28 + $0x530] sm:$0xff]  }
  0xa0   : > { %3802 = vmatprep.subr.bf16.mxu1 %v4187_v46  ;;  %v4238_v46 = vld [vmem:[%s4402_s28 + $0x578] sm:$0xff]  }
  0xa1   : > { %3781 = vmatpush3.bf16.msra.mxu0 %v4188_v47  ;;  %v4239_v47 = vld [vmem:[%s4402_s28 + $0x5f8] sm:$0xff]  }
  0xa2   : > { %3782 = vmatprep.subr.bf16.mxu0 %v4190_v49  ;;  %v4241_v49 = vld [vmem:[%s4402_s28 + $0x5b8] sm:$0xff]  }
  0xa3   : > { %3803 = vmatpush3.bf16.msra.mxu1 %v4189_v48  ;;  %v4240_v48 = vld [vmem:[%s4402_s28 + $0x538] sm:$0xff]  }
  0xa4   : > { %3804 = vmatprep.subr.bf16.mxu1 %v4191_v50  ;;  %v887_v50 = vrot.slane %v4590_v5, %v4440_v42  ;;  %v4260_v5 = vld [vmem:[%s4402_s28 + $0x6e0] sm:$0xff]  }
  0xa5   : > { %3783 = vmatpush3.bf16.msra.mxu0 %v4192_v51  ;;  %v4243_v51 = vld [vmem:[%s4402_s28 + $0x640] sm:$0xff]  }
  0xa6   : > { %3784 = vmatprep.subr.bf16.mxu0 %v4194_v53  ;;  %v4245_v53 = vld [vmem:[%s4402_s28 + $0x600] sm:$0xff]  }
  0xa7   : > { %3805 = vmatpush3.bf16.msra.mxu1 %v4193_v52  ;;  %v4244_v52 = vld [vmem:[%s4402_s28 + $0x6c0] sm:$0xff]  }
  0xa8   : > { %3806 = vmatprep.subr.bf16.mxu1 %v4195_v54  ;;  %v4246_v54 = vld [vmem:[%s4402_s28 + $0x680] sm:$0xff]  }
  0xa9   : > { %3785 = vmatpush3.bf16.msra.mxu0 %v4196_v55  ;;  %v903_v55 = vcombine.high %v887_v50, %v887_v50 }
  0xaa   : > { %3786 = vmatprep.subr.bf16.mxu0 %v4198_v57  ;;  %v4248_v57 = vld [vmem:[%s4402_s28 + $0x6c8] sm:$0xff]  }
  0xab   : > { %3807 = vmatpush3.bf16.msra.mxu1 %v4197_v56  ;;  %v4247_v56 = vld [vmem:[%s4402_s28 + $0x648] sm:$0xff]  }
  0xac   : > { %3808 = vmatprep.subr.bf16.mxu1 %v4199_v58  ;;  %v4249_v58 = vld [vmem:[%s4402_s28 + $0x608] sm:$0xff]  }
  0xad   : > { %3787 = vmatpush3.bf16.msra.mxu0 %v4200_v59  ;;  %v4250_v59 = vld [vmem:[%s4402_s28 + $0x688] sm:$0xff]  }
  0xae   : > { %3788 = vmatprep.subr.bf16.mxu0 %v4202_v61  ;;  %v4252_v61 = vld [vmem:[%s4402_s28 + $0x6d0] sm:$0xff]  }
  0xaf   : > { %3809 = vmatpush3.bf16.msra.mxu1 %v4201_v60  ;;  %v4251_v60 = vld [vmem:[%s4402_s28 + $0x650] sm:$0xff]  }
  0xb0   : > { %3810 = vmatprep.subr.bf16.mxu1 %v4203_v63  ;;  %v4254_v63 = vld [vmem:[%s4402_s28 + $0x690] sm:$0xff]  }
  0xb1   : > { %3789 = vmatpush3.bf16.msra.mxu0 %v4204_v2  ;;  %v4257_v2 = vld [vmem:[%s4402_s28 + $0x618] sm:$0xff]  }
  0xb2   : > { %3790 = vmatprep.subr.bf16.mxu0 %v4206_v6  ;;  %v4261_v6 = vld [vmem:[%s4402_s28 + $0x620] sm:$0xff]  }
  0xb3   : > { %3811 = vmatpush3.bf16.msra.mxu1 %v4205_v3  ;;  %v4258_v3 = vld [vmem:[%s4402_s28 + $0x698] sm:$0xff]  }
  0xb4   : > { %3812 = vmatprep.subr.bf16.mxu1 %v4207_v7  ;;  %v4262_v7 = vld [vmem:[%s4402_s28 + $0x6a0] sm:$0xff]  }
  0xb5   : > { %3791 = vmatpush3.bf16.msra.mxu0 %v4208_v10  ;;  %v4265_v10 = vld [vmem:[%s4402_s28 + $0x628] sm:$0xff]  }
  0xb6   : > { %3820 = vmatprep.subr.bf16.mxu0 %v4210_v14  ;;  %v4268_v14 = vld [vmem:[%s4402_s28 + $0x6f0] sm:$0xff]  }
  0xb7   : > { %3813 = vmatpush3.bf16.msra.mxu1 %v4209_v11  ;;  %v4266_v11 = vld [vmem:[%s4402_s28 + $0x6a8] sm:$0xff]  }
  0xb8   : > { %2876 = vmatmul.mubr.bf16.vlgmr.msra.gmra.mrb[16].mxu0 %v880_v13  ;;  %3842 = vmatprep.subr.bf16.mxu1 %v4211_v15  ;;  %v242_v13 = vld [vmem:[%s4397_s24 + $0x18] sm:$0xff] }
  0xb9   : > { %3821 = vmatpush3.bf16.msra.mxu0 %v4212_v17  ;;  %2955 = vmatprep.mubr.bf16.mxu0 %v901_v16  ;;  %v913_v15 = vrot.slane %v242_v13, %v4440_v42  ;;  %v906_v16 = vcombine.high %v242_v13, %v242_v13  ;;  %v4269_v17 = vld [vmem:[%s4402_s28 + $0x630] sm:$0xff]  }
  0xba   : > { %2916 = vmatmul.mubr.bf16.vlgmr.msra.gmra.mrb[16].mxu1 %v902_v19  ;;  %3822 = vmatprep.subr.bf16.mxu0 %v4214_v20 }
  0xbb   : > { %3843 = vmatpush3.bf16.msra.mxu1 %v4213_v18  ;;  %2995 = vmatprep.mubr.bf16.mxu1 %v905_v22  ;;  %v4271_v18 = vld [vmem:[%s4402_s28 + $0x678] sm:$0xff]   ;;  %v921_v19 = vcombine.high %v913_v15, %v913_v15  ;;  %v4666_v20 = vrot.slane %v906_v16, %v4440_v42 }
  0xbc   : > { %3844 = vmatprep.subr.bf16.mxu1 %v4215_v21  ;;  %v4270_v21 = vld [vmem:[%s4402_s28 + $0x6b0] sm:$0xff]   ;;  %v4272_v22 = vld [vmem:[%s4402_s28 + $0x6f8] sm:$0xff]  }
  0xbd   : > { %3823 = vmatpush3.bf16.msra.mxu0 %v4216_v23  ;;  %v943_v23 = vrot.slane %v921_v19, %v4440_v42 }
  0xbe   : > { %3824 = vmatprep.subr.bf16.mxu0 %v4218_v25  ;;  %v4273_v25 = vld [vmem:[%s4402_s28 + $0x638] sm:$0xff]  }
  0xbf   : > { %3845 = vmatpush3.bf16.msra.mxu1 %v4217_v24  ;;  %v922_v24 = vcombine.high %v4666_v20, %v4666_v20 }
  0xc0   : > { %3846 = vmatprep.subr.bf16.mxu1 %v4219_v26  ;;  %v953_v26 = vcombine.high %v943_v23, %v943_v23 }
  0xc1   : > { %3825 = vmatpush3.bf16.msra.mxu0 %v4220_v27  ;;  %v929_v27 = vrot.slane %v913_v15, %v4440_v42 }
  0xc2   : > { %3826 = vmatprep.subr.bf16.mxu0 %v4222_v29  ;;  %v4274_v29 = vld [vmem:[%s4402_s28 + $0x6b8] sm:$0xff]  }
  0xc3   : > { %3847 = vmatpush3.bf16.msra.mxu1 %v4221_v28  ;;  %v4275_v28 = vld [vmem:[%s4402_s28 + $0x740] sm:$0xff]  }
  0xc4   : > { %3848 = vmatprep.subr.bf16.mxu1 %v4223_v30  ;;  %v950_v30 = vrot.slane %v922_v24, %v4440_v42 }
  0xc5   : > { %3827 = vmatpush3.bf16.msra.mxu0 %v4224_v31  ;;  %v4276_v31 = vld [vmem:[%s4402_s28 + $0x7c0] sm:$0xff]  }
  0xc6   : > { %3828 = vmatprep.subr.bf16.mxu0 %v4226_v33  ;;  %v951_v33 = vcombine.high %v929_v27, %v929_v27 }
  0xc7   : > { %3849 = vmatpush3.bf16.msra.mxu1 %v4225_v32  ;;  %v4277_v32 = vld [vmem:[%s4402_s28 + $0x700] sm:$0xff]  }
  0xc8   : > { %3850 = vmatprep.subr.bf16.mxu1 %v4227_v34  ;;  %v4279_v34 = vld [vmem:[%s4402_s28 + $0x748] sm:$0xff]  }
  0xc9   : > { %3829 = vmatpush3.bf16.msra.mxu0 %v4228_v35  ;;  %v4278_v35 = vld [vmem:[%s4402_s28 + $0x780] sm:$0xff]  }
  0xca   : > { %3830 = vmatprep.subr.bf16.mxu0 %v4230_v37  ;;  %v4280_v37 = vld [vmem:[%s4402_s28 + $0x7c8] sm:$0xff]  }
  0xcb   : > { %3851 = vmatpush3.bf16.msra.mxu1 %v4229_v36  ;;  %v954_v36 = vcombine.high %v950_v30, %v950_v30 }
  0xcc   : > { %3852 = vmatprep.subr.bf16.mxu1 %v4231_v38  ;;  %v4281_v38 = vld [vmem:[%s4402_s28 + $0x708] sm:$0xff]  }
  0xcd   : > { %3831 = vmatpush3.bf16.msra.mxu0 %v4232_v39  ;;  %v4283_v39 = vld [vmem:[%s4402_s28 + $0x750] sm:$0xff]  }
  0xce   : > { %3832 = vmatprep.subr.bf16.mxu0 %v4234_v41  ;;  %v4284_v41 = vld [vmem:[%s4402_s28 + $0x7d0] sm:$0xff]  }
  0xcf   : > { %3853 = vmatpush3.bf16.msra.mxu1 %v4233_v40  ;;  %v4282_v40 = vld [vmem:[%s4402_s28 + $0x788] sm:$0xff]  }
  0xd0   : > { %3854 = vmatprep.subr.bf16.mxu1 %v4235_v43  ;;  %v4285_v43 = vld [vmem:[%s4402_s28 + $0x710] sm:$0xff]  }
  0xd1   : > { %3833 = vmatpush3.bf16.msra.mxu0 %v4236_v44  ;;  %v4287_v44 = vld [vmem:[%s4402_s28 + $0x758] sm:$0xff]  }
  0xd2   : > { %3834 = vmatprep.subr.bf16.mxu0 %v4238_v46  ;;  %v4288_v46 = vld [vmem:[%s4402_s28 + $0x7d8] sm:$0xff]  }
  0xd3   : > { %3855 = vmatpush3.bf16.msra.mxu1 %v4237_v45  ;;  %v4286_v45 = vld [vmem:[%s4402_s28 + $0x790] sm:$0xff]  }
  0xd4   : > { %3856 = vmatprep.subr.bf16.mxu1 %v4239_v47  ;;  %v4289_v47 = vld [vmem:[%s4402_s28 + $0x718] sm:$0xff]  }
  0xd5   : > { %3835 = vmatpush3.bf16.msra.mxu0 %v4240_v48  ;;  %v4291_v48 = vld [vmem:[%s4402_s28 + $0x760] sm:$0xff]  }
  0xd6   : > { %3864 = vmatprep.subr.bf16.mxu0 %v4243_v51  ;;  %v4293_v51 = vld [vmem:[%s4402_s28 + $0x720] sm:$0xff]  }
  0xd7   : > { %3857 = vmatpush3.bf16.msra.mxu1 %v4241_v49  ;;  %v4290_v49 = vld [vmem:[%s4402_s28 + $0x798] sm:$0xff]  }
  0xd8   : > { %2956 = vmatmul.mubr.bf16.vlgmr.msra.gmra.mrb[20].mxu0 %v887_v50  ;;  %3886 = vmatprep.subr.bf16.mxu1 %v4244_v52  ;;  %v4292_v50 = vld [vmem:[%s4402_s28 + $0x7e0] sm:$0xff]   ;;  %v4295_v52 = vld [vmem:[%s4402_s28 + $0x768] sm:$0xff]  }
  0xd9   : > { %3865 = vmatpush3.bf16.msra.mxu0 %v4245_v53  ;;  %3035 = vmatprep.mubr.bf16.mxu0 %v943_v23  ;;  %v4294_v53 = vld [vmem:[%s4402_s28 + $0x7a0] sm:$0xff]  }
  0xda   : > { %2996 = vmatmul.mubr.bf16.vlgmr.msra.gmra.mrb[20].mxu1 %v903_v55  ;;  %3866 = vmatprep.subr.bf16.mxu0 %v4247_v56  ;;  %v4297_v55 = vld [vmem:[%s4402_s28 + $0x728] sm:$0xff]   ;;  %v4299_v56 = vld [vmem:[%s4402_s28 + $0x770] sm:$0xff]  }
  0xdb   : > { %3887 = vmatpush3.bf16.msra.mxu1 %v4246_v54  ;;  %3075 = vmatprep.mubr.bf16.mxu1 %v953_v26  ;;  %v4296_v54 = vld [vmem:[%s4402_s28 + $0x7e8] sm:$0xff]  }
  0xdc   : > { %3888 = vmatprep.subr.bf16.mxu1 %v4248_v57 }
  0xdd   : > { %3867 = vmatpush3.bf16.msra.mxu0 %v4249_v58  ;;  %v4298_v58 = vld [vmem:[%s4402_s28 + $0x7a8] sm:$0xff]  }
  0xde   : > { %3868 = vmatprep.subr.bf16.mxu0 %v4251_v60  ;;  %v4300_v60 = vld [vmem:[%s4402_s28 + $0x7f0] sm:$0xff]  }
  0xdf   : > { %3889 = vmatpush3.bf16.msra.mxu1 %v4250_v59 }
  0xe0   : > { %3890 = vmatprep.subr.bf16.mxu1 %v4252_v61 }
  0xe1   : > { %3869 = vmatpush3.bf16.msra.mxu0 %v4253_v62 }
  0xe2   : > { %3870 = vmatprep.subr.bf16.mxu0 %v4255_v0  ;;  %v4301_v0 = vld [vmem:[%s4402_s28 + $0x730] sm:$0xff]  }
  0xe3   : > { %3891 = vmatpush3.bf16.msra.mxu1 %v4254_v63 }
  0xe4   : > { %3892 = vmatprep.subr.bf16.mxu1 %v4256_v1 }
  0xe5   : > { %3871 = vmatpush3.bf16.msra.mxu0 %v4257_v2 }
  0xe6   : > { %3872 = vmatprep.subr.bf16.mxu0 %v4259_v4 }
  0xe7   : > { %3893 = vmatpush3.bf16.msra.mxu1 %v4258_v3  ;;  %v4303_v3 = vld [vmem:[%s4402_s28 + $0x778] sm:$0xff]  }
  0xe8   : > { %3894 = vmatprep.subr.bf16.mxu1 %v4260_v5 }
  0xe9   : > { %3873 = vmatpush3.bf16.msra.mxu0 %v4261_v6  ;;  %v4302_v6 = vld [vmem:[%s4402_s28 + $0x7b0] sm:$0xff]  }
  0xea   : > { %3874 = vmatprep.subr.bf16.mxu0 %v4263_v8  ;;  %v4304_v8 = vld [vmem:[%s4402_s28 + $0x7f8] sm:$0xff]  }
  0xeb   : > { %3895 = vmatpush3.bf16.msra.mxu1 %v4262_v7 }
  0xec   : > { %3896 = vmatprep.subr.bf16.mxu1 %v4264_v9 }
  0xed   : > { %3875 = vmatpush3.bf16.msra.mxu0 %v4265_v10  ;;  %v4305_v10 = vld [vmem:[%s4402_s28 + $0x738] sm:$0xff]  }
  0xee   : > { %3876 = vmatprep.subr.bf16.mxu0 %v4267_v12  ;;  %v4306_v12 = vld [vmem:[%s4402_s28 + $0x7b8] sm:$0xff]  }
  0xef   : > { %3897 = vmatpush3.bf16.msra.mxu1 %v4266_v11  ;;  %v936_v11 = vrot.slane %v4666_v20, %v4440_v42 }
  0xf0   : > { %3898 = vmatprep.subr.bf16.mxu1 %v4268_v14 }
  0xf1   : > { %3877 = vmatpush3.bf16.msra.mxu0 %v4269_v17  ;;  %v952_v13 = vcombine.high %v936_v11, %v936_v11 }
  0xf2   : > { %3878 = vmatprep.subr.bf16.mxu0 %v4271_v18 }
  0xf3   : > { %3899 = vmatpush3.bf16.msra.mxu1 %v4270_v21 }
  0xf4   : > { %3900 = vmatprep.subr.bf16.mxu1 %v4272_v22 }
  0xf5   : > { %3879 = vmatpush3.bf16.msra.mxu0 %v4273_v25 }
  0xf6   : > { %3908 = vmatprep.subr.bf16.mxu0 %v4275_v28 }
  0xf7   : > { %3901 = vmatpush3.bf16.msra.mxu1 %v4274_v29 }
  0xf8   : > { %3036 = vmatmul.mubr.bf16.vlgmr.msra.gmra.mrb[24].mxu0 %v929_v27  ;;  %3930 = vmatprep.subr.bf16.mxu1 %v4276_v31 }
  0xf9   : > { %3909 = vmatpush3.bf16.msra.mxu0 %v4277_v32  ;;  %3115 = vmatprep.mubr.bf16.mxu0 %v950_v30 }
  0xfa   : > { %3076 = vmatmul.mubr.bf16.vlgmr.msra.gmra.mrb[24].mxu1 %v951_v33  ;;  %3910 = vmatprep.subr.bf16.mxu0 %v4279_v34 }
  0xfb   : > { %3931 = vmatpush3.bf16.msra.mxu1 %v4278_v35  ;;  %3155 = vmatprep.mubr.bf16.mxu1 %v954_v36 }
  0xfc   : > { %3932 = vmatprep.subr.bf16.mxu1 %v4280_v37 }
  0xfd   : > { %3911 = vmatpush3.bf16.msra.mxu0 %v4281_v38 }
  0xfe   : > { %3912 = vmatprep.subr.bf16.mxu0 %v4283_v39 }
  0xff   : > { %3933 = vmatpush3.bf16.msra.mxu1 %v4282_v40 }
 0x100   : > { %3934 = vmatprep.subr.bf16.mxu1 %v4284_v41 }
 0x101   : > { %3913 = vmatpush3.bf16.msra.mxu0 %v4285_v43 }
 0x102   : > { %3914 = vmatprep.subr.bf16.mxu0 %v4287_v44 }
 0x103   : > { %3935 = vmatpush3.bf16.msra.mxu1 %v4286_v45 }
 0x104   : > { %3936 = vmatprep.subr.bf16.mxu1 %v4288_v46 }
 0x105   : > { %3915 = vmatpush3.bf16.msra.mxu0 %v4289_v47 }
 0x106   : > { %3916 = vmatprep.subr.bf16.mxu0 %v4291_v48 }
 0x107   : > { %3937 = vmatpush3.bf16.msra.mxu1 %v4290_v49 }
 0x108   : > { %3938 = vmatprep.subr.bf16.mxu1 %v4292_v50 }
 0x109   : > { %3917 = vmatpush3.bf16.msra.mxu0 %v4293_v51 }
 0x10a   : > { %3918 = vmatprep.subr.bf16.mxu0 %v4295_v52 }
 0x10b   : > { %3939 = vmatpush3.bf16.msra.mxu1 %v4294_v53  ;;  %v3616_v57 = vpop.f32.mrb[0].mxu0 }
 0x10c   : > { %v3617_v59 = vpop.f32.mrb[1].mxu0  ;;  %3940 = vmatprep.subr.bf16.mxu1 %v4296_v54  ;;  %v3638_v61 = vpop.f32.mrb[0].mxu1 }
 0x10d   : > { %v3618_v62 = vadd.f32 %v3617_v59, %v3616_v57  ;;  %v3619_v63 = vpop.f32.mrb[2].mxu0  ;;  %3919 = vmatpush3.bf16.msra.mxu0 %v4297_v55  ;;  %v3639_v1 = vpop.f32.mrb[1].mxu1 }
 0x10e   : > { %v3620_v2 = vpop.f32.mrb[3].mxu0  ;;  %3920 = vmatprep.subr.bf16.mxu0 %v4299_v56  ;;  %v3640_v4 = vadd.f32 %v3639_v1, %v3638_v61  ;;  %v3641_v5 = vpop.f32.mrb[2].mxu1 }
 0x10f   : > { %3941 = vmatpush3.bf16.msra.mxu1 %v4298_v58  ;;  %v3642_v7 = vpop.f32.mrb[3].mxu1 }
 0x110   : > { %3942 = vmatprep.subr.bf16.mxu1 %v4300_v60  ;;  %v2598_v9 = vadd.f32 %v3640_v4, %v3618_v62 }
 0x111   : > { %3921 = vmatpush3.bf16.msra.mxu0 %v4301_v0 }
 0x112   : > { %3922 = vmatprep.subr.bf16.mxu0 %v4303_v3 }
 0x113   : > { %3943 = vmatpush3.bf16.msra.mxu1 %v4302_v6 }
 0x114   : > { %3944 = vmatprep.subr.bf16.mxu1 %v4304_v8 }
 0x115   : > { %3923 = vmatpush3.bf16.msra.mxu0 %v4305_v10 }
 0x117   : > { %3945 = vmatpush3.bf16.msra.mxu1 %v4306_v12 }
 0x118   : > { %3116 = vmatmul.mubr.bf16.vlgmr.msra.gmra.mrb[28].mxu0 %v936_v11 }
 0x11a   : > { %3156 = vmatmul.mubr.bf16.vlgmr.msra.gmra.mrb[28].mxu1 %v952_v13 }
 0x12b   : > { %v3660_v14 = vpop.f32.mrb[4].mxu0 }
 0x12c   : > { %v3661_v15 = vpop.f32.mrb[5].mxu0  ;;  %v3682_v16 = vpop.f32.mrb[4].mxu1 }
 0x12d   : > { %v3662_v17 = vadd.f32 %v3661_v15, %v3660_v14  ;;  %v3663_v18 = vpop.f32.mrb[6].mxu0  ;;  %v3683_v19 = vpop.f32.mrb[5].mxu1 }
 0x12e   : > { %v3664_v21 = vpop.f32.mrb[7].mxu0  ;;  %v3684_v23 = vadd.f32 %v3683_v19, %v3682_v16  ;;  %v3685_v24 = vpop.f32.mrb[6].mxu1 }
 0x12f   : > { %v2638_v22 = vadd.f32 %v3662_v17, %v2598_v9  ;;  %v3686_v25 = vpop.f32.mrb[7].mxu1 }
 0x131   : > { %v2678_v42 = vadd.f32 %v3684_v23, %v2638_v22 }
 0x14b   : > { %v3704_v20 = vpop.f32.mrb[8].mxu0 }
 0x14c   : > { %v3705_v26 = vpop.f32.mrb[9].mxu0 }
 0x14d   : > { %v3726_v27 = vpop.f32.mrb[8].mxu1  ;;  %v3706_v28 = vadd.f32 %v3705_v26, %v3704_v20  ;;  %v3707_v29 = vpop.f32.mrb[10].mxu0 }
 0x14e   : > { %v3727_v30 = vpop.f32.mrb[9].mxu1  ;;  %v3708_v31 = vpop.f32.mrb[11].mxu0 }
 0x14f   : > { %v2718_v32 = vadd.f32 %v3706_v28, %v2678_v42  ;;  %v3728_v33 = vadd.f32 %v3727_v30, %v3726_v27  ;;  %v3729_v34 = vpop.f32.mrb[10].mxu1  ;;  %v238_v31 = vld [vmem:[#allocation2] sm:$0x3] }
 0x150   : > { %v3730_v35 = vpop.f32.mrb[11].mxu1 }
 0x151   : > { %v2758_v36 = vadd.f32 %v3728_v33, %v2718_v32  ;;  %v3179_v35 = vld [vmem:[%s4795_s3] sm:$0xff] (!%p3593_p6) }
 0x16b   : > { %v3748_v37 = vpop.f32.mrb[12].mxu0 }
 0x16c   : > { %v3749_v38 = vpop.f32.mrb[13].mxu0 }
 0x16d   : > { %v3770_v39 = vpop.f32.mrb[12].mxu1  ;;  %v3750_v40 = vadd.f32 %v3749_v38, %v3748_v37  ;;  %v3751_v41 = vpop.f32.mrb[14].mxu0  ;;  %v3181_v37 = vld [vmem:[%s4795_s3 + $0x10] sm:$0xff] (!%p3593_p6)  ;;  %v4348_v38 = vmov (!%p3593_p6), 0.0|0.0  }
 0x16e   : > { %v3771_v43 = vpop.f32.mrb[13].mxu1  ;;  %v3752_v44 = vpop.f32.mrb[15].mxu0  ;;  %4004 = vmatprep.subr.bf16.mxu0 (!%p3593_p6), %v4348_v38  ;;  %v4350_v41 = vmov (!%p3593_p6), 0.0  }
 0x16f   : > { %v2798_v45 = vadd.f32 %v3750_v40, %v2758_v36  ;;  %v3772_v46 = vadd.f32 %v3771_v43, %v3770_v39  ;;  %v3773_v47 = vpop.f32.mrb[14].mxu1  ;;  %v3180_v36 = vld [vmem:[%s4795_s3 + $0x8] sm:$0xff] (!%p3593_p6)  ;;  %v3182_v40 = vld [vmem:[%s4795_s3 + $0x18] sm:$0xff] (!%p3593_p6)  ;;  %4001 = vmatprep.mubr.msk.f32.mxu0 (!%p3593_p6), %vm4349_vm0, %v4350_v41  ;;  %v3183_v44 = vld [vmem:[%s4795_s3 + $0x20] sm:$0xff] (!%p3593_p6) }
 0x170   : > { %v3774_v48 = vpop.f32.mrb[15].mxu1  ;;  %v4005_v39 = vpack.c.bf16 (!%p3593_p6), %v3180_v36, %v3179_v35  ;;  %v4008_v43 = vpack.c.bf16 (!%p3593_p6), %v3182_v40, %v3181_v37  ;;  %v3185_v47 = vld [vmem:[%s4795_s3 + $0x30] sm:$0xff] (!%p3593_p6) }
 0x171   : > { %v2838_v49 = vadd.f32 %v3772_v46, %v2798_v45  ;;  %v3184_v45 = vld [vmem:[%s4795_s3 + $0x28] sm:$0xff] (!%p3593_p6)  ;;  %v3186_v48 = vld [vmem:[%s4795_s3 + $0x38] sm:$0xff] (!%p3593_p6) }
 0x172   : > { %4006 = vmatpush3.bf16.msra.mxu0 (!%p3593_p6), %v4005_v39  ;;  %v4011_v46 = vpack.c.bf16 (!%p3593_p6), %v3184_v45, %v3183_v44 }
 0x173   : > { %4007 = vmatprep.subr.bf16.mxu0 (!%p3593_p6), %v4348_v38 }
 0x176   : > { %4009 = vmatpush3.bf16.msra.mxu0 (!%p3593_p6), %v4008_v43 }
 0x177   : > { %4010 = vmatprep.subr.bf16.mxu0 (!%p3593_p6), %v4348_v38 }
 0x17a   : > { %4012 = vmatpush3.bf16.msra.mxu0 (!%p3593_p6), %v4011_v46 }
 0x17b   : > { %4013 = vmatprep.subr.bf16.mxu0 (!%p3593_p6), %v4348_v38 }
 0x18b   : > { %v3792_v50 = vpop.f32.mrb[16].mxu0 }
 0x18c   : > { %v3793_v51 = vpop.f32.mrb[17].mxu0 }
 0x18d   : > { %v3814_v52 = vpop.f32.mrb[16].mxu1  ;;  %v3794_v53 = vadd.f32 %v3793_v51, %v3792_v50  ;;  %v3795_v54 = vpop.f32.mrb[18].mxu0  ;;  %v3187_v50 = vld [vmem:[%s4795_s3 + $0x40] sm:$0xff] (!%p3593_p6)  ;;  %v3188_v51 = vld [vmem:[%s4795_s3 + $0x48] sm:$0xff] (!%p3593_p6) }
 0x18e   : > { %v3815_v55 = vpop.f32.mrb[17].mxu1  ;;  %v3796_v56 = vpop.f32.mrb[19].mxu0  ;;  %v3190_v54 = vld [vmem:[%s4795_s3 + $0x58] sm:$0xff] (!%p3593_p6) }
 0x18f   : > { %v2878_v57 = vadd.f32 %v3794_v53, %v2838_v49  ;;  %v3816_v58 = vadd.f32 %v3815_v55, %v3814_v52  ;;  %v3817_v59 = vpop.f32.mrb[18].mxu1  ;;  %v4014_v49 = vpack.c.bf16 (!%p3593_p6), %v3186_v48, %v3185_v47  ;;  %v4017_v52 = vpack.c.bf16 (!%p3593_p6), %v3188_v51, %v3187_v50  ;;  %v3189_v53 = vld [vmem:[%s4795_s3 + $0x50] sm:$0xff] (!%p3593_p6)  ;;  %v3191_v56 = vld [vmem:[%s4795_s3 + $0x60] sm:$0xff] (!%p3593_p6) }
 0x190   : > { %v3818_v60 = vpop.f32.mrb[19].mxu1  ;;  %v4020_v55 = vpack.c.bf16 (!%p3593_p6), %v3190_v54, %v3189_v53 }
 0x191   : > { %v2918_v61 = vadd.f32 %v3816_v58, %v2878_v57  ;;  %4015 = vmatpush3.bf16.msra.mxu0 (!%p3593_p6), %v4014_v49  ;;  %v3192_v57 = vld [vmem:[%s4795_s3 + $0x68] sm:$0xff] (!%p3593_p6)  ;;  %v3594_v60 = vld [vmem:[%s4794_s2] ss:$0 sm:$0xff] (!%p3593_p6) }
 0x192   : > { %4016 = vmatprep.subr.bf16.mxu0 (!%p3593_p6), %v4348_v38  ;;  %v4023_v58 = vpack.c.bf16 (!%p3593_p6), %v3192_v57, %v3191_v56 }
 0x195   : > { %4018 = vmatpush3.bf16.msra.mxu0 (!%p3593_p6), %v4017_v52 }
 0x196   : > { %4019 = vmatprep.subr.bf16.mxu0 (!%p3593_p6), %v4348_v38 }
 0x199   : > { %4021 = vmatpush3.bf16.msra.mxu0 (!%p3593_p6), %v4020_v55 }
 0x19a   : > { %4022 = vmatprep.subr.bf16.mxu0 (!%p3593_p6), %v4348_v38 }
 0x19d   : > { %4024 = vmatpush3.bf16.msra.mxu0 (!%p3593_p6), %v4023_v58 }
 0x19e   : > { %4025 = vmatprep.subr.bf16.mxu0 (!%p3593_p6), %v4348_v38 }
 0x1ab   : > { %v3836_v62 = vpop.f32.mrb[20].mxu0 }
 0x1ac   : > { %v3837_v63 = vpop.f32.mrb[21].mxu0 }
 0x1ad   : > { %v3858_v0 = vpop.f32.mrb[20].mxu1  ;;  %v3838_v1 = vadd.f32 %v3837_v63, %v3836_v62  ;;  %v3839_v2 = vpop.f32.mrb[22].mxu0  ;;  %v3194_v62 = vld [vmem:[%s4795_s3 + $0x78] sm:$0xff] (!%p3593_p6) }
 0x1ae   : > { %v3859_v3 = vpop.f32.mrb[21].mxu1  ;;  %v3840_v4 = vpop.f32.mrb[23].mxu0  ;;  %v3595_v2 = vld [vmem:[%s4796_s4] ss:$0 sm:$0xff] (!%p3593_p6) }
 0x1af   : > { %v2958_v5 = vadd.f32 %v3838_v1, %v2918_v61  ;;  %v3860_v6 = vadd.f32 %v3859_v3, %v3858_v0  ;;  %v3861_v7 = vpop.f32.mrb[22].mxu1  ;;  %v3193_v61 = vld [vmem:[%s4795_s3 + $0x70] sm:$0xff] (!%p3593_p6) }
 0x1b0   : > { %v3862_v8 = vpop.f32.mrb[23].mxu1  ;;  %v4026_v0 = vpack.c.bf16 (!%p3593_p6), %v3194_v62, %v3193_v61 }
 0x1b1   : > { %v2998_v9 = vadd.f32 %v3860_v6, %v2958_v5 }
 0x1b2   : > { %4027 = vmatpush3.bf16.msra.mxu0 (!%p3593_p6), %v4026_v0 }
 0x1cb   : > { %v3880_v10 = vpop.f32.mrb[24].mxu0 }
 0x1cc   : > { %v3881_v11 = vpop.f32.mrb[25].mxu0 }
 0x1cd   : > { %v3902_v12 = vpop.f32.mrb[24].mxu1  ;;  %v3882_v13 = vadd.f32 %v3881_v11, %v3880_v10  ;;  %v3883_v14 = vpop.f32.mrb[26].mxu0 }
 0x1ce   : > { %v3903_v15 = vpop.f32.mrb[25].mxu1  ;;  %v3884_v16 = vpop.f32.mrb[27].mxu0 }
 0x1cf   : > { %v3038_v17 = vadd.f32 %v3882_v13, %v2998_v9  ;;  %v3904_v18 = vadd.f32 %v3903_v15, %v3902_v12  ;;  %v3905_v19 = vpop.f32.mrb[26].mxu1 }
 0x1d0   : > { %v3906_v21 = vpop.f32.mrb[27].mxu1 }
 0x1d1   : > { %v3078_v22 = vadd.f32 %v3904_v18, %v3038_v17 }
 0x1eb   : > { %v3924_v23 = vpop.f32.mrb[28].mxu0 }
 0x1ec   : > { %v3925_v24 = vpop.f32.mrb[29].mxu0 }
 0x1ed   : > { %v3946_v25 = vpop.f32.mrb[28].mxu1  ;;  %v3926_v42 = vadd.f32 %v3925_v24, %v3924_v23  ;;  %v3927_v20 = vpop.f32.mrb[30].mxu0 }
 0x1ee   : > { %v3947_v26 = vpop.f32.mrb[29].mxu1  ;;  %v3928_v27 = vpop.f32.mrb[31].mxu0 }
 0x1ef   : > { %v3118_v28 = vadd.f32 %v3926_v42, %v3078_v22  ;;  %v3948_v29 = vadd.f32 %v3947_v26, %v3946_v25  ;;  %v3949_v30 = vpop.f32.mrb[30].mxu1  ;;  %3168 = sbr.rel (%p3593_p6) target bundleno = 728 (0x2d8), region = 48 }
 0x1f0   : > { %v3950_v32 = vpop.f32.mrb[31].mxu1 }
 0x1f1   : > { %v3158_v33 = vadd.f32 %v3948_v29, %v3118_v28 }
 0x1f3   : > { %v3163_v34 = vadd.f32 %v3158_v33, %v238_v31 }
 0x1f5   : > { %3164 = vst [vmem:[#allocation2] sm:$0x3] %v3163_v34 }
 0x1fc   : > { %v3169_v59 = vld [vmem:[#allocation2] sm:$0x3] }
 0x1fd   : > { %v3177_v63 = vadd.f32 %v3594_v60, %v3169_v59 }
 0x1ff   : > { %v3178_v1 = vmax.f32 %v3177_v63, 0.0 }
 0x201   : > { %4002 = vmatmul.mubr.f32.vlgmr.msra.gmra.mrb[0].mxu0 %v3178_v1 }
 0x2d4   : > { %v3268_v3 = vpop.f32.mrb[0].mxu0 }
 0x2d5   : > { %v3269_v4 = vadd.f32 %v3595_v2, %v3268_v3  ;;  %v4003_v5 = vpop.f32.mrb[1].mxu0 }
 0x2d7   : > { %3273 = vst.msk [vmem:[#allocation3] sm:$0x3] %vm3272_vm1, %v3269_v4 }
 0x2d8 PF: > { %p4032_p7 = scmp.eq.s32.totalorder %s4388_s19, 3  ;;  %s4351_s17 = smov [#allocation3]  }
 0x2d9   : > { %s3281_s20 = sshll.u32 %s4351_s17, 4  ;;  %s3282_s20 = int_to_ptr.vmem [resolvable:$true] %s3281_s20 }
 0x2da   : > { %s4308_s21 = scalar_lea.vmem %s3282_s20, 32  ;;  %p4315_p11 = scmp.lt.s32.totalorder %s3282_s20, %s3282_s20 }
 0x2db   : > { %p4309_p8 = scmp.ne.s32.totalorder %s3282_s20, %s4308_s21  ;;  %p4316_p12 = scmp.lt.s32.totalorder %s4308_s21, %s4308_s21 }
 0x2dd   : > { %p4310_p9 = pnand %p4309_p8, %p4032_p7  ;;  %p4317_p13 = por %p4316_p12, %p4315_p11 }
 0x2df   : > { %p4311_p10 = pneg %p4310_p9 }
 0x2e1   : > { %p4318_p0 = pnand %p4317_p13, %p4311_p10 }
 0x2e3   : > { %4321 = shalt.err (!%p4318_p0)
}
 0x2e4   : > { %s4322_s24 = scalar_lea.hbm %s4797_s5, 32 }
 0x2e5   : > { %p4323_p1 = scmp.ne.s32.totalorder %s4797_s5, %s4322_s24  ;;  %p4328_p4 = scmp.lt.u32.totalorder %s4322_s24, %s4797_s5 }
 0x2e7   : > { %p4324_p2 = pnand %p4323_p1, %p4032_p7 }
 0x2e9   : > { %p4325_p3 = pneg %p4324_p2 }
 0x2eb   : > { %p4330_p5 = pnand %p4328_p4, %p4325_p3 }
 0x2ed   : > { %4333 = shalt.err (!%p4330_p5)
}
 0x2ee   : > { %4029 = dma.vmem_to_hbm [thread:$0]  (%p4032_p7), %s3282_s20, 32, %s4797_s5, [#allocation4]  }
 0x2ef   : > { %4339 = dma.done.wait (%p4032_p7), [#allocation4], 32  }
 0x2f0   : > { %4341 = vsyncadd (%p4032_p7), [#allocation4], 4294967264 }
 0x2f1 PF: > { %s16_s18 = sadd.s32 1, %s4344_s18  }
 0x2f2   : > { %p13_p6 = scmp.ge.s32.totalorder %s16_s18, 6  }
 0x2f4   :  { %15 = sbr.rel (!%p13_p6) target bundleno = 1 (0x1), region = 78 }
 0x2fb   :  { %3294 = vsyncpa [#allocation4], 1 }
 0x2fc   :  { %3296 = vsyncpa [#allocation4 + $0x1], 1 }

</bundles_post_ra>
